<compile_context>
chip_gen: v6e
topology: v6e:2x2x1
jax: 0.10.0
libtpu: 0.0.40
codegen_flags: <defaults>
</compile_context>

<pallas_src>
import math
import functools

import jax
import jax.numpy as jnp
from jax import lax
from jax.experimental import pallas as pl
from jax.experimental.pallas import tpu as pltpu

EPS = 1e-6
NEG_INF = -1e9


# ---------------------------------------------------------------------------
# In-kernel helpers
# ---------------------------------------------------------------------------
def _ln_f32(x, alpha, bias):
    """LayerNormalization of the spec: alpha*(x-mean)/(std+eps)+bias, std with
    unbiased=False and eps OUTSIDE the sqrt.  The (rows,1) reciprocal keeps the
    expensive elementwise divide off the (rows, D) tile."""
    mean = jnp.mean(x, axis=-1, keepdims=True)
    var = jnp.mean((x - mean) ** 2, axis=-1, keepdims=True)
    inv = 1.0 / (jnp.sqrt(var) + EPS)
    return alpha * ((x - mean) * inv) + bias


def _split_heads_store(val, out_ref, num_heads, dk):
    """Write a (rows, D) value into a head-major (H, rows, dk) output block."""
    for h in range(num_heads):
        lo = h * dk
        out_ref[h] = val[:, lo:lo + dk]


# ---------------------------------------------------------------------------
# Kernels
# ---------------------------------------------------------------------------
def ln_qkv_kernel(x_ref, a_ref, b_ref,
                  wq_ref, bq_ref, wk_ref, bk_ref, wv_ref, bv_ref,
                  q_ref, k_ref, v_ref, *, num_heads):
    """Fused LayerNorm + Q/K/V projections, head-major outputs.
    Wq / bq already carry the 1/sqrt(dk) scale."""
    dk = q_ref.shape[-1]
    x = x_ref[...].astype(jnp.float32)
    t = _ln_f32(x, a_ref[...], b_ref[...]).astype(jnp.bfloat16)
    q = (jnp.dot(t, wq_ref[...], preferred_element_type=jnp.float32)
         + bq_ref[...]).astype(q_ref.dtype)
    k = (jnp.dot(t, wk_ref[...], preferred_element_type=jnp.float32)
         + bk_ref[...]).astype(k_ref.dtype)
    v = (jnp.dot(t, wv_ref[...], preferred_element_type=jnp.float32)
         + bv_ref[...]).astype(v_ref.dtype)
    _split_heads_store(q, q_ref, num_heads, dk)
    _split_heads_store(k, k_ref, num_heads, dk)
    _split_heads_store(v, v_ref, num_heads, dk)


def ln_q_kernel(x_ref, a_ref, b_ref, w_ref, wb_ref, q_ref, *, num_heads):
    """Fused LayerNorm + query projection (cross-attention), head-major out."""
    dk = q_ref.shape[-1]
    x = x_ref[...].astype(jnp.float32)
    t = _ln_f32(x, a_ref[...], b_ref[...]).astype(jnp.bfloat16)
    q = (jnp.dot(t, w_ref[...], preferred_element_type=jnp.float32)
         + wb_ref[...]).astype(q_ref.dtype)
    _split_heads_store(q, q_ref, num_heads, dk)


def kv_kernel(x_ref, wk_ref, bk_ref, wv_ref, bv_ref, k_ref, v_ref, *, num_heads):
    """K/V projections of the encoder output (no LayerNorm), head-major out."""
    dk = k_ref.shape[-1]
    t = x_ref[...].astype(jnp.bfloat16)
    k = (jnp.dot(t, wk_ref[...], preferred_element_type=jnp.float32)
         + bk_ref[...]).astype(k_ref.dtype)
    v = (jnp.dot(t, wv_ref[...], preferred_element_type=jnp.float32)
         + bv_ref[...]).astype(v_ref.dtype)
    _split_heads_store(k, k_ref, num_heads, dk)
    _split_heads_store(v, v_ref, num_heads, dk)


def _attention_body(q_ref, k_ref, v_ref, bias_ref, wo_ref, bo_ref, res_ref,
                    o_ref, acc_ref, *, num_heads, causal):
    """One (batch, head) grid step: softmax(masked q k^T) v, project through
    this head's Wo slab and accumulate (+ residual + bo) into VMEM scratch."""
    h = pl.program_id(1)
    q = q_ref[...]                                   # (Sq, dk) bf16, pre-scaled
    k = k_ref[...]                                   # (Sk, dk) bf16
    s = lax.dot_general(q, k, (((1,), (1,)), ((), ())),
                        preferred_element_type=jnp.float32)       # (Sq, Sk)
    if causal:
        rows = lax.broadcasted_iota(jnp.int32, s.shape, 0)
        cols = lax.broadcasted_iota(jnp.int32, s.shape, 1)
        s = jnp.where(rows >= cols, s, NEG_INF)
    if bias_ref is not None:
        s = s + bias_ref[...].astype(jnp.float32)     # additive mask bias

    s = s - jnp.max(s, axis=-1, keepdims=True)
    e = jnp.exp(s)
    p = e * pl.reciprocal(jnp.sum(e, axis=-1, keepdims=True), approx=True)
    ctx = jnp.dot(p.astype(jnp.bfloat16), v_ref[...],
                  preferred_element_type=jnp.float32)             # (Sq, dk)
    y = jnp.dot(ctx.astype(jnp.bfloat16), wo_ref[...],
                preferred_element_type=jnp.float32)               # (Sq, D)

    @pl.when(h == 0)
    def _():
        acc_ref[...] = res_ref[...].astype(jnp.float32) + bo_ref[...]

    acc_ref[...] += y

    @pl.when(h == num_heads - 1)
    def _():
        o_ref[...] = acc_ref[...].astype(o_ref.dtype)


def attention_bias_kernel(q_ref, k_ref, v_ref, bias_ref, wo_ref, bo_ref,
                          res_ref, o_ref, acc_ref, *, num_heads, causal):
    _attention_body(q_ref, k_ref, v_ref, bias_ref, wo_ref, bo_ref, res_ref,
                    o_ref, acc_ref, num_heads=num_heads, causal=causal)


def attention_nobias_kernel(q_ref, k_ref, v_ref, wo_ref, bo_ref,
                            res_ref, o_ref, acc_ref, *, num_heads, causal):
    _attention_body(q_ref, k_ref, v_ref, None, wo_ref, bo_ref, res_ref,
                    o_ref, acc_ref, num_heads=num_heads, causal=causal)


def ln_ff_kernel(x_ref, a_ref, b_ref, w1_ref, b1_ref, w2_ref, b2_ref,
                 o_ref, t_ref, acc_ref):
    """x + W2 @ relu(W1 @ LN(x) + b1) + b2, tiled over d_ff (reduction axis)."""
    j = pl.program_id(1)

    @pl.when(j == 0)
    def _():
        x = x_ref[...].astype(jnp.float32)
        t_ref[...] = _ln_f32(x, a_ref[...], b_ref[...]).astype(jnp.bfloat16)
        acc_ref[...] = x + b2_ref[...]               # residual + final bias

    hdn = jnp.dot(t_ref[...], w1_ref[...],
                  preferred_element_type=jnp.float32) + b1_ref[...]
    hdn = jnp.maximum(hdn, 0.0).astype(jnp.bfloat16)
    acc_ref[...] += jnp.dot(hdn, w2_ref[...], preferred_element_type=jnp.float32)

    @pl.when(j == pl.num_programs(1) - 1)
    def _():
        o_ref[...] = acc_ref[...].astype(o_ref.dtype)


def layernorm_kernel(x_ref, a_ref, b_ref, o_ref):
    x = x_ref[...].astype(jnp.float32)
    o_ref[...] = _ln_f32(x, a_ref[...], b_ref[...]).astype(o_ref.dtype)


# ---------------------------------------------------------------------------
# Tiling / compiler-parameter helpers
# ---------------------------------------------------------------------------
def _row_tile(n, target=512):
    """Row tile: multiple of 8, capped at `target`, and small enough that the
    grid gets >= 2 steps whenever possible (feeds both v7x TensorCores).
    Non-divisible tails are handled via pl.cdiv grids (row-wise kernels)."""
    tm = min(n, target)
    if n > 8:
        tm = min(tm, -(-n // 2))
    if n >= 8:
        tm = max(8, (tm // 8) * 8)
    return tm


def _ff_tile(dff, target=1024):
    """d_ff reduction tile: a 128-multiple divisor of d_ff (reduction axes must
    divide exactly)."""
    if dff <= target:
        return dff
    for t in range(target - target % 128, 127, -128):
        if dff % t == 0:
            return t
    return dff   # TODO(synk): pad d_ff when it has no 128-multiple divisor.


def _mk_params(semantics, est_block_bytes):
    """Explicit VMEM limit: ~2x the per-step block working set (double
    buffering) plus margin, clamped to [16 MiB, 128 MiB]."""
    limit = int(min(128 << 20, max(16 << 20, 2 * est_block_bytes + (2 << 20))))
    return pltpu.CompilerParams(dimension_semantics=semantics,
                                vmem_limit_bytes=limit)


# ---------------------------------------------------------------------------
# Pallas wrappers
# ---------------------------------------------------------------------------
def ln_qkv_pl(x2d, ln_a, ln_b, p, num_heads):
    n, d = x2d.shape
    dk = d // num_heads
    tm = _row_tile(n)
    row = lambda i: (i, 0)
    rep = lambda i: (0, 0)
    hrow = lambda i: (0, i, 0)
    out = jax.ShapeDtypeStruct((num_heads, n, dk), jnp.bfloat16)
    est = tm * d * 4 + 3 * d * d * 2 + 3 * tm * d * 2 + 8 * d * 4
    return pl.pallas_call(
        functools.partial(ln_qkv_kernel, num_heads=num_heads),
        out_shape=(out, out, out),
        grid=(pl.cdiv(n, tm),),
        in_specs=[pl.BlockSpec((tm, d), row),
                  pl.BlockSpec((1, d), rep), pl.BlockSpec((1, d), rep),
                  pl.BlockSpec((d, d), rep), pl.BlockSpec((1, d), rep),
                  pl.BlockSpec((d, d), rep), pl.BlockSpec((1, d), rep),
                  pl.BlockSpec((d, d), rep), pl.BlockSpec((1, d), rep)],
        out_specs=(pl.BlockSpec((num_heads, tm, dk), hrow),) * 3,
        compiler_params=_mk_params(("parallel",), est),
    )(x2d, ln_a, ln_b,
      p["wq_t"], p["bq"], p["wk_t"], p["bk"], p["wv_t"], p["bv"])


def ln_q_pl(x2d, ln_a, ln_b, wq_t, bq, num_heads):
    n, d = x2d.shape
    dk = d // num_heads
    tm = _row_tile(n)
    row = lambda i: (i, 0)
    rep = lambda i: (0, 0)
    hrow = lambda i: (0, i, 0)
    est = tm * d * 4 + d * d * 2 + tm * d * 2 + 4 * d * 4
    return pl.pallas_call(
        functools.partial(ln_q_kernel, num_heads=num_heads),
        out_shape=jax.ShapeDtypeStruct((num_heads, n, dk), jnp.bfloat16),
        grid=(pl.cdiv(n, tm),),
        in_specs=[pl.BlockSpec((tm, d), row),
                  pl.BlockSpec((1, d), rep), pl.BlockSpec((1, d), rep),
                  pl.BlockSpec((d, d), rep), pl.BlockSpec((1, d), rep)],
        out_specs=pl.BlockSpec((num_heads, tm, dk), hrow),
        compiler_params=_mk_params(("parallel",), est),
    )(x2d, ln_a, ln_b, wq_t, bq)


def kv_pl(x2d, p, num_heads):
    n, d = x2d.shape
    dk = d // num_heads
    tm = _row_tile(n)
    row = lambda i: (i, 0)
    rep = lambda i: (0, 0)
    hrow = lambda i: (0, i, 0)
    out = jax.ShapeDtypeStruct((num_heads, n, dk), jnp.bfloat16)
    est = tm * d * 4 + 2 * d * d * 2 + 2 * tm * d * 2 + 4 * d * 4
    return pl.pallas_call(
        functools.partial(kv_kernel, num_heads=num_heads),
        out_shape=(out, out),
        grid=(pl.cdiv(n, tm),),
        in_specs=[pl.BlockSpec((tm, d), row),
                  pl.BlockSpec((d, d), rep), pl.BlockSpec((1, d), rep),
                  pl.BlockSpec((d, d), rep), pl.BlockSpec((1, d), rep)],
        out_specs=(pl.BlockSpec((num_heads, tm, dk), hrow),) * 2,
        compiler_params=_mk_params(("parallel",), est),
    )(x2d, p["wk_t"], p["bk"], p["wv_t"], p["bv"])


def attention_pl(q, k, v, wo_hd, bo, res, *, num_heads, bias=None, causal=False):
    """q/k/v head-major (H, B*S, dk); output = residual + concat_h(ctx_h) @ Wo^T + bo."""
    B, Sq, D = res.shape
    dk = D // num_heads
    Sk = k.shape[1] // B
    has_bias = bias is not None

    qkv_spec = lambda s: pl.BlockSpec((None, s, dk), lambda b, h: (h, b, 0))
    in_specs = [qkv_spec(Sq), qkv_spec(Sk), qkv_spec(Sk)]
    args = [q, k, v]
    if has_bias:
        in_specs.append(pl.BlockSpec((None, Sq, Sk), lambda b, h: (b, 0, 0)))
        args.append(bias)
        kern = functools.partial(attention_bias_kernel,
                                 num_heads=num_heads, causal=causal)
    else:
        kern = functools.partial(attention_nobias_kernel,
                                 num_heads=num_heads, causal=causal)
    in_specs += [pl.BlockSpec((None, dk, D), lambda b, h: (h, 0, 0)),
                 pl.BlockSpec((1, D), lambda b, h: (0, 0)),
                 pl.BlockSpec((None, Sq, D), lambda b, h: (b, 0, 0))]
    args += [wo_hd, bo, res]

    est = ((Sq + 2 * Sk) * dk * 2 + Sq * Sk * 6 + dk * D * 2
           + 3 * Sq * D * 4 + D * 4)
    return pl.pallas_call(
        kern,
        out_shape=jax.ShapeDtypeStruct((B, Sq, D), res.dtype),
        grid=(B, num_heads),
        in_specs=in_specs,
        out_specs=pl.BlockSpec((None, Sq, D), lambda b, h: (b, 0, 0)),
        scratch_shapes=[pltpu.VMEM((Sq, D), jnp.float32)],
        compiler_params=_mk_params(("parallel", "arbitrary"), est),
    )(*args)


def ln_ff_pl(x2d, ln_a, ln_b, w1_t, b1, w2_t, b2):
    n, d = x2d.shape
    dff = w1_t.shape[1]
    tm = _row_tile(n)
    tf = _ff_tile(dff)
    rowc = lambda i, j: (i, 0)
    repc = lambda i, j: (0, 0)
    est = (tm * d * 4 + 2 * d * 4 + d * tf * 2 + tf * 4 + tf * d * 2 + d * 4
           + tm * d * 4 + tm * d * 2 + tm * d * 4 + tm * tf * 4)
    return pl.pallas_call(
        ln_ff_kernel,
        out_shape=jax.ShapeDtypeStruct((n, d), x2d.dtype),
        grid=(pl.cdiv(n, tm), dff // tf),
        in_specs=[pl.BlockSpec((tm, d), rowc),
                  pl.BlockSpec((1, d), repc), pl.BlockSpec((1, d), repc),
                  pl.BlockSpec((d, tf), lambda i, j: (0, j)),
                  pl.BlockSpec((1, tf), lambda i, j: (0, j)),
                  pl.BlockSpec((tf, d), lambda i, j: (j, 0)),
                  pl.BlockSpec((1, d), repc)],
        out_specs=pl.BlockSpec((tm, d), rowc),
        scratch_shapes=[pltpu.VMEM((tm, d), jnp.bfloat16),
                        pltpu.VMEM((tm, d), jnp.float32)],
        compiler_params=_mk_params(("parallel", "arbitrary"), est),
    )(x2d, ln_a, ln_b, w1_t, b1, w2_t, b2)


def layernorm_pl(x2d, ln_a, ln_b):
    n, d = x2d.shape
    tm = _row_tile(n)
    row = lambda i: (i, 0)
    rep = lambda i: (0, 0)
    est = 2 * tm * d * 4 + 2 * d * 4
    return pl.pallas_call(
        layernorm_kernel,
        out_shape=jax.ShapeDtypeStruct((n, d), x2d.dtype),
        grid=(pl.cdiv(n, tm),),
        in_specs=[pl.BlockSpec((tm, d), row),
                  pl.BlockSpec((1, d), rep), pl.BlockSpec((1, d), rep)],
        out_specs=pl.BlockSpec((tm, d), row),
        compiler_params=_mk_params(("parallel",), est),
    )(x2d, ln_a, ln_b)


# ---------------------------------------------------------------------------
# Decoder forward (thin JAX glue between fused Pallas kernels)
# ---------------------------------------------------------------------------
def decoder_block_forward(p, x, enc_out, tgt_bias, src_bias, num_heads,
                          tgt_is_causal):
    B, S, D = x.shape
    Se = enc_out.shape[1]

    # residual 0: pre-norm self attention (causal mask generated in-kernel
    # when tgt_is_causal, otherwise additive bias mask)
    q, k, v = ln_qkv_pl(x.reshape(B * S, D), p["ln0_a"], p["ln0_b"],
                        p["self_mha"], num_heads)
    x = attention_pl(q, k, v, p["self_mha"]["wo_hd"], p["self_mha"]["bo"], x,
                     num_heads=num_heads, bias=tgt_bias, causal=tgt_is_causal)

    # residual 1: pre-norm cross attention (LN on query side only)
    q = ln_q_pl(x.reshape(B * S, D), p["ln1_a"], p["ln1_b"],
                p["cross_mha"]["wq_t"], p["cross_mha"]["bq"], num_heads)
    k, v = kv_pl(enc_out.reshape(B * Se, D), p["cross_mha"], num_heads)
    x = attention_pl(q, k, v, p["cross_mha"]["wo_hd"], p["cross_mha"]["bo"], x,
                     num_heads=num_heads, bias=src_bias, causal=False)

    # residual 2: pre-norm feed forward (residual fused, d_ff tiled reduction)
    x = ln_ff_pl(x.reshape(B * S, D), p["ln2_a"], p["ln2_b"],
                 p["ff_w1_t"], p["ff_b1"], p["ff_w2_t"], p["ff_b2"]
                 ).reshape(B, S, D)
    return x


def decoder_forward(params, x, enc_out, src_mask, tgt_mask, num_heads,
                    *, tgt_is_causal=False, src_all_valid=False):
    B, S, D = x.shape
    Se = enc_out.shape[1]

    # Masks are converted ONCE per forward into additive bf16 biases; the
    # optimized paths (in-kernel causal / no masking) skip the DMA entirely.
    tgt_bias = None
    if not tgt_is_causal:
        m = jnp.broadcast_to(tgt_mask[:, 0], (B, S, S))
        tgt_bias = jnp.where(m == 0, NEG_INF, 0.0).astype(jnp.bfloat16)
    src_bias = None
    if not src_all_valid:
        m = jnp.broadcast_to(src_mask[:, 0], (B, S, Se))
        src_bias = jnp.where(m == 0, NEG_INF, 0.0).astype(jnp.bfloat16)

    for lp in params["layers"]:
        x = decoder_block_forward(lp, x, enc_out, tgt_bias, src_bias,
                                  num_heads, tgt_is_causal)
    return layernorm_pl(x.reshape(B * S, D), params["norm_a"],
                        params["norm_b"]).reshape(B, S, D)


# ---------------------------------------------------------------------------
# Pure-JAX reference (f32) for verification
# ---------------------------------------------------------------------------
def _ln_ref(x, a, b):
    mean = jnp.mean(x, axis=-1, keepdims=True)
    std = jnp.sqrt(jnp.mean((x - mean) ** 2, axis=-1, keepdims=True))
    return a * (x - mean) / (std + EPS) + b


def _mha_ref(p, q_in, k_in, v_in, mask, h):
    B, Sq, D = q_in.shape
    Sk = k_in.shape[1]
    dk = D // h
    q = (q_in @ p["wq"].T + p["bq"]).reshape(B, Sq, h, dk).transpose(0, 2, 1, 3)
    k = (k_in @ p["wk"].T + p["bk"]).reshape(B, Sk, h, dk).transpose(0, 2, 1, 3)
    v = (v_in @ p["wv"].T + p["bv"]).reshape(B, Sk, h, dk).transpose(0, 2, 1, 3)
    s = jnp.einsum("bhqd,bhkd->bhqk", q, k) / math.sqrt(dk)
    s = jnp.where(mask == 0, -1e9, s)
    a = jax.nn.softmax(s, axis=-1)
    o = jnp.einsum("bhqk,bhkd->bhqd", a, v).transpose(0, 2, 1, 3).reshape(B, Sq, D)
    return o @ p["wo"].T + p["bo"]


def decoder_block_ref(p, x, enc_out, src_mask, tgt_mask, h):
    t = _ln_ref(x, p["ln0_a"], p["ln0_b"])
    x = x + _mha_ref(p["self_mha"], t, t, t, tgt_mask, h)
    t = _ln_ref(x, p["ln1_a"], p["ln1_b"])
    x = x + _mha_ref(p["cross_mha"], t, enc_out, enc_out, src_mask, h)
    t = _ln_ref(x, p["ln2_a"], p["ln2_b"])
    hdn = jnp.maximum(t @ p["ff_w1"].T + p["ff_b1"], 0.0)
    return x + (hdn @ p["ff_w2"].T + p["ff_b2"])


def decoder_ref(params, x, enc_out, src_mask, tgt_mask, h):
    for lp in params["layers"]:
        x = decoder_block_ref(lp, x, enc_out, src_mask, tgt_mask, h)
    return _ln_ref(x, params["norm_a"], params["norm_b"])


# ---------------------------------------------------------------------------
# Parameters (PyTorch layout) + one-time preprocessing for the Pallas path
# ---------------------------------------------------------------------------
def make_params(key, n_layers, d_model, d_ff):
    std = 0.02

    def mk_mha(k):
        ks = jax.random.split(k, 4)
        w = lambda kk: jax.random.normal(kk, (d_model, d_model), jnp.float32) * std
        z = lambda: jnp.zeros((d_model,), jnp.float32)
        return {"wq": w(ks[0]), "bq": z(), "wk": w(ks[1]), "bk": z(),
                "wv": w(ks[2]), "bv": z(), "wo": w(ks[3]), "bo": z()}

    def mk_layer(k):
        ks = jax.random.split(k, 4)
        return {
            "self_mha": mk_mha(ks[0]),
            "cross_mha": mk_mha(ks[1]),
            "ff_w1": jax.random.normal(ks[2], (d_ff, d_model), jnp.float32) * std,
            "ff_b1": jnp.zeros((d_ff,), jnp.float32),
            "ff_w2": jax.random.normal(ks[3], (d_model, d_ff), jnp.float32) * std,
            "ff_b2": jnp.zeros((d_model,), jnp.float32),
            "ln0_a": jnp.ones((d_model,), jnp.float32), "ln0_b": jnp.zeros((d_model,), jnp.float32),
            "ln1_a": jnp.ones((d_model,), jnp.float32), "ln1_b": jnp.zeros((d_model,), jnp.float32),
            "ln2_a": jnp.ones((d_model,), jnp.float32), "ln2_b": jnp.zeros((d_model,), jnp.float32),
        }

    keys = jax.random.split(key, n_layers)
    return {"layers": [mk_layer(keys[i]) for i in range(n_layers)],
            "norm_a": jnp.ones((d_model,), jnp.float32),
            "norm_b": jnp.zeros((d_model,), jnp.float32)}


def preprocess_params(params, num_heads):
    """One-time weight prep: transpose to (Din, Dout) bf16, fold 1/sqrt(dk)
    into Wq/bq, reshape Wo^T to head-major (H, dk, D), biases/LN to (1, dim)."""
    d_model = params["norm_a"].shape[0]
    dk = d_model // num_heads
    scale = 1.0 / math.sqrt(dk)
    row = lambda v: v.reshape(1, -1).astype(jnp.float32)

    def prep_mha(p):
        return {
            "wq_t": (p["wq"] * scale).T.astype(jnp.bfloat16), "bq": row(p["bq"] * scale),
            "wk_t": p["wk"].T.astype(jnp.bfloat16), "bk": row(p["bk"]),
            "wv_t": p["wv"].T.astype(jnp.bfloat16), "bv": row(p["bv"]),
            "wo_hd": p["wo"].T.reshape(num_heads, dk, d_model).astype(jnp.bfloat16),
            "bo": row(p["bo"]),
        }

    layers = []
    for lp in params["layers"]:
        layers.append({
            "self_mha": prep_mha(lp["self_mha"]),
            "cross_mha": prep_mha(lp["cross_mha"]),
            "ff_w1_t": lp["ff_w1"].T.astype(jnp.bfloat16), "ff_b1": row(lp["ff_b1"]),
            "ff_w2_t": lp["ff_w2"].T.astype(jnp.bfloat16), "ff_b2": row(lp["ff_b2"]),
            "ln0_a": row(lp["ln0_a"]), "ln0_b": row(lp["ln0_b"]),
            "ln1_a": row(lp["ln1_a"]), "ln1_b": row(lp["ln1_b"]),
            "ln2_a": row(lp["ln2_a"]), "ln2_b": row(lp["ln2_b"]),
        })
    return {"layers": layers,
            "norm_a": row(params["norm_a"]), "norm_b": row(params["norm_b"])}


if __name__ == "__main__":
    # Small but lane-friendly shapes (d_model = 128 keeps activations lane-dense).
    B, S_TGT, S_SRC = 2, 16, 16
    D_MODEL, N_HEADS, D_FF, N_LAYERS = 128, 4, 256, 2

    key = jax.random.PRNGKey(0)
    k_x, k_enc, k_p = jax.random.split(key, 3)

    x = jax.random.normal(k_x, (B, S_TGT, D_MODEL), jnp.float32)
    enc_out = jax.random.normal(k_enc, (B, S_SRC, D_MODEL), jnp.float32)

    # tgt_mask: causal (handled in-kernel via iota).  src_mask: padding mask
    # with batch 1 missing its last 4 source tokens (exercises the additive
    # bias path).
    causal = jnp.tril(jnp.ones((S_TGT, S_TGT), jnp.float32))
    tgt_mask = jnp.broadcast_to(causal, (B, 1, S_TGT, S_TGT))
    src_valid = jnp.array([[1.0] * S_SRC,
                           [1.0] * (S_SRC - 4) + [0.0] * 4], jnp.float32)
    src_mask = jnp.broadcast_to(src_valid[:, None, None, :], (B, 1, S_TGT, S_SRC))

    raw_params = make_params(k_p, N_LAYERS, D_MODEL, D_FF)
    pl_params = preprocess_params(raw_params, N_HEADS)     # once, outside jit

    fwd = jax.jit(functools.partial(decoder_forward, num_heads=N_HEADS,
                                    tgt_is_causal=True, src_all_valid=False))
    out = jax.block_until_ready(fwd(pl_params, x, enc_out, src_mask, tgt_mask))

    ref = decoder_ref(raw_params, x, enc_out, src_mask, tgt_mask, N_HEADS)
    assert out.shape == (B, S_TGT, D_MODEL)
    # bf16 MXU operands (f32 accumulation) + approx softmax reciprocal vs a
    # pure-f32 reference -> loose tolerance reflects rounding, not structure.
    err = float(jnp.max(jnp.abs(out - ref)))
    assert err < 3e-2, f"Pallas output mismatch vs reference: {err}"

    print("KERNEL_OK")
</pallas_src>

<mosaic_0001>
module attributes {stable_mosaic.version = 11 : i64} {
  func.func @ln_q_kernel(%arg0: i32, %arg1: memref<16x128xf32, #tpu.memory_space<vmem>>, %arg2: memref<1x128xf32, #tpu.memory_space<vmem>>, %arg3: memref<1x128xf32, #tpu.memory_space<vmem>>, %arg4: memref<128x128xbf16, #tpu.memory_space<vmem>>, %arg5: memref<1x128xf32, #tpu.memory_space<vmem>>, %arg6: memref<4x16x32xbf16, #tpu.memory_space<vmem>>) attributes {dimension_semantics = [#tpu.dimension_semantics<parallel>], iteration_bounds = array<i64: 2>, scalar_prefetch = 0 : i64, scratch_operands = 0 : i64, tpu.core_type = #tpu.core_type<tc>, window_params = [{transform_indices = @transform_0, window_bounds = array<i64: 16, 128>}, {pipeline_mode = #tpu.pipeline_mode<synchronous>, transform_indices = @transform_1, window_bounds = array<i64: 1, 128>}, {pipeline_mode = #tpu.pipeline_mode<synchronous>, transform_indices = @transform_2, window_bounds = array<i64: 1, 128>}, {pipeline_mode = #tpu.pipeline_mode<synchronous>, transform_indices = @transform_3, window_bounds = array<i64: 128, 128>}, {pipeline_mode = #tpu.pipeline_mode<synchronous>, transform_indices = @transform_4, window_bounds = array<i64: 1, 128>}, {transform_indices = @transform_5, window_bounds = array<i64: 4, 16, 32>}]} {
    %c0 = arith.constant 0 : index
    %c0_0 = arith.constant 0 : index
    %0 = vector.load %arg1[%c0, %c0_0] : memref<16x128xf32, #tpu.memory_space<vmem>>, vector<16x128xf32>
    %c0_1 = arith.constant 0 : index
    %c0_2 = arith.constant 0 : index
    %1 = vector.load %arg2[%c0_1, %c0_2] : memref<1x128xf32, #tpu.memory_space<vmem>>, vector<1x128xf32>
    %c0_3 = arith.constant 0 : index
    %c0_4 = arith.constant 0 : index
    %2 = vector.load %arg3[%c0_3, %c0_4] : memref<1x128xf32, #tpu.memory_space<vmem>>, vector<1x128xf32>
    %cst = arith.constant dense<0.000000e+00> : vector<16xf32>
    %3 = vector.multi_reduction <add>, %0, %cst [1] : vector<16x128xf32> to vector<16xf32>
    %4 = vector.shape_cast %3 : vector<16xf32> to vector<16x1xf32>
    %cst_5 = arith.constant 1.280000e+02 : f32
    %5 = vector.broadcast %cst_5 : f32 to vector<16x1xf32>
    %6 = arith.divf %4, %5 : vector<16x1xf32>
    %7 = vector.broadcast %6 : vector<16x1xf32> to vector<16x128xf32>
    %8 = arith.subf %0, %7 : vector<16x128xf32>
    %9 = arith.mulf %8, %8 : vector<16x128xf32>
    %cst_6 = arith.constant dense<0.000000e+00> : vector<16xf32>
    %10 = vector.multi_reduction <add>, %9, %cst_6 [1] : vector<16x128xf32> to vector<16xf32>
    %11 = vector.shape_cast %10 : vector<16xf32> to vector<16x1xf32>
    %cst_7 = arith.constant 1.280000e+02 : f32
    %12 = vector.broadcast %cst_7 : f32 to vector<16x1xf32>
    %13 = arith.divf %11, %12 : vector<16x1xf32>
    %14 = math.sqrt %13 : vector<16x1xf32>
    %cst_8 = arith.constant 9.99999997E-7 : f32
    %15 = vector.broadcast %cst_8 : f32 to vector<16x1xf32>
    %16 = arith.addf %14, %15 : vector<16x1xf32>
    %cst_9 = arith.constant 1.000000e+00 : f32
    %17 = vector.broadcast %cst_9 : f32 to vector<16x1xf32>
    %18 = arith.divf %17, %16 : vector<16x1xf32>
    %19 = vector.broadcast %6 : vector<16x1xf32> to vector<16x128xf32>
    %20 = arith.subf %0, %19 : vector<16x128xf32>
    %21 = vector.broadcast %18 : vector<16x1xf32> to vector<16x128xf32>
    %22 = arith.mulf %20, %21 : vector<16x128xf32>
    %23 = vector.broadcast %1 : vector<1x128xf32> to vector<16x128xf32>
    %24 = arith.mulf %23, %22 : vector<16x128xf32>
    %25 = vector.broadcast %2 : vector<1x128xf32> to vector<16x128xf32>
    %26 = arith.addf %24, %25 : vector<16x128xf32>
    %27 = arith.truncf %26 : vector<16x128xf32> to vector<16x128xbf16>
    %c0_10 = arith.constant 0 : index
    %c0_11 = arith.constant 0 : index
    %28 = vector.load %arg4[%c0_10, %c0_11] : memref<128x128xbf16, #tpu.memory_space<vmem>>, vector<128x128xbf16>
    %cst_12 = arith.constant dense<0.000000e+00> : vector<16x128xf32>
    %29 = tpu.matmul %27, %28, %cst_12 {dimension_numbers = #tpu.dot_dimension_numbers<[1], [0], [0], [1], [0, 0, 1, 1], [], []>} : vector<16x128xbf16>, vector<128x128xbf16>, vector<16x128xf32> -> vector<16x128xf32>
    %c0_13 = arith.constant 0 : index
    %c0_14 = arith.constant 0 : index
    %30 = vector.load %arg5[%c0_13, %c0_14] : memref<1x128xf32, #tpu.memory_space<vmem>>, vector<1x128xf32>
    %31 = vector.broadcast %30 : vector<1x128xf32> to vector<16x128xf32>
    %32 = arith.addf %29, %31 : vector<16x128xf32>
    %33 = arith.truncf %32 : vector<16x128xf32> to vector<16x128xbf16>
    %34 = vector.extract_strided_slice %33 {offsets = [0, 0], sizes = [16, 32], strides = [1, 1]} : vector<16x128xbf16> to vector<16x32xbf16>
    %c0_15 = arith.constant 0 : index
    %c0_16 = arith.constant 0 : index
    %c0_17 = arith.constant 0 : index
    %35 = vector.load %arg6[%c0_15, %c0_16, %c0_17] : memref<4x16x32xbf16, #tpu.memory_space<vmem>>, vector<1x16x32xbf16>
    %36 = vector.shape_cast %35 : vector<1x16x32xbf16> to vector<16x32xbf16>
    %37 = vector.shape_cast %34 : vector<16x32xbf16> to vector<1x16x32xbf16>
    tpu.vector_store %arg6[%c0_15, %c0_16, %c0_17], %37 {strides = array<i32>} : memref<4x16x32xbf16, #tpu.memory_space<vmem>>, vector<1x16x32xbf16>,
    %38 = vector.extract_strided_slice %33 {offsets = [0, 32], sizes = [16, 32], strides = [1, 1]} : vector<16x128xbf16> to vector<16x32xbf16>
    %c1 = arith.constant 1 : index
    %c0_18 = arith.constant 0 : index
    %c0_19 = arith.constant 0 : index
    %39 = vector.load %arg6[%c1, %c0_18, %c0_19] : memref<4x16x32xbf16, #tpu.memory_space<vmem>>, vector<1x16x32xbf16>
    %40 = vector.shape_cast %39 : vector<1x16x32xbf16> to vector<16x32xbf16>
    %41 = vector.shape_cast %38 : vector<16x32xbf16> to vector<1x16x32xbf16>
    tpu.vector_store %arg6[%c1, %c0_18, %c0_19], %41 {strides = array<i32>} : memref<4x16x32xbf16, #tpu.memory_space<vmem>>, vector<1x16x32xbf16>,
    %42 = vector.extract_strided_slice %33 {offsets = [0, 64], sizes = [16, 32], strides = [1, 1]} : vector<16x128xbf16> to vector<16x32xbf16>
    %c2 = arith.constant 2 : index
    %c0_20 = arith.constant 0 : index
    %c0_21 = arith.constant 0 : index
    %43 = vector.load %arg6[%c2, %c0_20, %c0_21] : memref<4x16x32xbf16, #tpu.memory_space<vmem>>, vector<1x16x32xbf16>
    %44 = vector.shape_cast %43 : vector<1x16x32xbf16> to vector<16x32xbf16>
    %45 = vector.shape_cast %42 : vector<16x32xbf16> to vector<1x16x32xbf16>
    tpu.vector_store %arg6[%c2, %c0_20, %c0_21], %45 {strides = array<i32>} : memref<4x16x32xbf16, #tpu.memory_space<vmem>>, vector<1x16x32xbf16>,
    %46 = vector.extract_strided_slice %33 {offsets = [0, 96], sizes = [16, 32], strides = [1, 1]} : vector<16x128xbf16> to vector<16x32xbf16>
    %c3 = arith.constant 3 : index
    %c0_22 = arith.constant 0 : index
    %c0_23 = arith.constant 0 : index
    %47 = vector.load %arg6[%c3, %c0_22, %c0_23] : memref<4x16x32xbf16, #tpu.memory_space<vmem>>, vector<1x16x32xbf16>
    %48 = vector.shape_cast %47 : vector<1x16x32xbf16> to vector<16x32xbf16>
    %49 = vector.shape_cast %46 : vector<16x32xbf16> to vector<1x16x32xbf16>
    tpu.vector_store %arg6[%c3, %c0_22, %c0_23], %49 {strides = array<i32>} : memref<4x16x32xbf16, #tpu.memory_space<vmem>>, vector<1x16x32xbf16>,
    return
  }
  func.func @transform_0(%arg0: i32) -> (i32, i32) {
    %c0_i32 = arith.constant 0 : i32
    %c0_i32_0 = arith.constant 0 : i32
    return %arg0, %c0_i32 : i32, i32
  }
  func.func @transform_1(%arg0: i32) -> (i32, i32) {
    %c0_i32 = arith.constant 0 : i32
    %c0_i32_0 = arith.constant 0 : i32
    %c0_i32_1 = arith.constant 0 : i32
    return %c0_i32, %c0_i32_0 : i32, i32
  }
  func.func @transform_2(%arg0: i32) -> (i32, i32) {
    %c0_i32 = arith.constant 0 : i32
    %c0_i32_0 = arith.constant 0 : i32
    %c0_i32_1 = arith.constant 0 : i32
    return %c0_i32, %c0_i32_0 : i32, i32
  }
  func.func @transform_3(%arg0: i32) -> (i32, i32) {
    %c0_i32 = arith.constant 0 : i32
    %c0_i32_0 = arith.constant 0 : i32
    %c0_i32_1 = arith.constant 0 : i32
    return %c0_i32, %c0_i32_0 : i32, i32
  }
  func.func @transform_4(%arg0: i32) -> (i32, i32) {
    %c0_i32 = arith.constant 0 : i32
    %c0_i32_0 = arith.constant 0 : i32
    %c0_i32_1 = arith.constant 0 : i32
    return %c0_i32, %c0_i32_0 : i32, i32
  }
  func.func @transform_5(%arg0: i32) -> (i32, i32, i32) {
    %c0_i32 = arith.constant 0 : i32
    %c0_i32_0 = arith.constant 0 : i32
    %c0_i32_1 = arith.constant 0 : i32
    return %c0_i32, %arg0, %c0_i32_0 : i32, i32, i32
  }
}

module attributes {stable_mosaic.version = 11 : i64} {
  func.func @attention_nobias_kernel(%arg0: i32, %arg1: i32, %arg2: memref<1x16x32xbf16, #tpu.memory_space<vmem>>, %arg3: memref<1x16x32xbf16, #tpu.memory_space<vmem>>, %arg4: memref<1x16x32xbf16, #tpu.memory_space<vmem>>, %arg5: memref<1x32x128xbf16, #tpu.memory_space<vmem>>, %arg6: memref<1x128xf32, #tpu.memory_space<vmem>>, %arg7: memref<1x16x128xf32, #tpu.memory_space<vmem>>, %arg8: memref<1x16x128xf32, #tpu.memory_space<vmem>>, %arg9: memref<16x128xf32, #tpu.memory_space<vmem>>) attributes {dimension_semantics = [#tpu.dimension_semantics<parallel>, #tpu.dimension_semantics<arbitrary>], iteration_bounds = array<i64: 2, 4>, scalar_prefetch = 0 : i64, scratch_operands = 1 : i64, tpu.core_type = #tpu.core_type<tc>, window_params = [{transform_indices = @transform_0, window_bounds = array<i64: 1, 16, 32>}, {transform_indices = @transform_1, window_bounds = array<i64: 1, 16, 32>}, {transform_indices = @transform_2, window_bounds = array<i64: 1, 16, 32>}, {transform_indices = @transform_3, window_bounds = array<i64: 1, 32, 128>}, {pipeline_mode = #tpu.pipeline_mode<synchronous>, transform_indices = @transform_4, window_bounds = array<i64: 1, 128>}, {transform_indices = @transform_5, window_bounds = array<i64: 1, 16, 128>}, {transform_indices = @transform_6, window_bounds = array<i64: 1, 16, 128>}]} {
    %c0 = arith.constant 0 : index
    %c0_0 = arith.constant 0 : index
    %c0_1 = arith.constant 0 : index
    %0 = vector.load %arg2[%c0, %c0_0, %c0_1] : memref<1x16x32xbf16, #tpu.memory_space<vmem>>, vector<1x16x32xbf16>
    %1 = vector.shape_cast %0 : vector<1x16x32xbf16> to vector<16x32xbf16>
    %c0_2 = arith.constant 0 : index
    %c0_3 = arith.constant 0 : index
    %c0_4 = arith.constant 0 : index
    %2 = vector.load %arg3[%c0_2, %c0_3, %c0_4] : memref<1x16x32xbf16, #tpu.memory_space<vmem>>, vector<1x16x32xbf16>
    %3 = vector.shape_cast %2 : vector<1x16x32xbf16> to vector<16x32xbf16>
    %cst = arith.constant dense<0.000000e+00> : vector<16x16xf32>
    %4 = tpu.matmul %1, %3, %cst {dimension_numbers = #tpu.dot_dimension_numbers<[1], [1], [0], [0], [0, 0, 1, 0], [], []>} : vector<16x32xbf16>, vector<16x32xbf16>, vector<16x16xf32> -> vector<16x16xf32>
    %5 = tpu.iota {dimensions = array<i32: 0>} : vector<16x16xi32>
    %6 = tpu.iota {dimensions = array<i32: 1>} : vector<16x16xi32>
    %7 = arith.cmpi sge, %5, %6 : vector<16x16xi32>
    %cst_5 = arith.constant -1.000000e+09 : f32
    %8 = vector.broadcast %cst_5 : f32 to vector<16x16xf32>
    %9 = arith.select %7, %4, %8 : vector<16x16xi1>, vector<16x16xf32>
    %cst_6 = arith.constant dense<0xFF800000> : vector<16xf32>
    %10 = vector.multi_reduction <maximumf>, %9, %cst_6 [1] : vector<16x16xf32> to vector<16xf32>
    %11 = vector.shape_cast %10 : vector<16xf32> to vector<16x1xf32>
    %12 = vector.broadcast %11 : vector<16x1xf32> to vector<16x16xf32>
    %13 = arith.subf %9, %12 : vector<16x16xf32>
    %14 = math.exp %13 : vector<16x16xf32>
    %cst_7 = arith.constant dense<0.000000e+00> : vector<16xf32>
    %15 = vector.multi_reduction <add>, %14, %cst_7 [1] : vector<16x16xf32> to vector<16xf32>
    %16 = vector.shape_cast %15 : vector<16xf32> to vector<16x1xf32>
    %17 = tpu.reciprocal %16 {approx = true} : vector<16x1xf32> -> vector<16x1xf32>
    %18 = vector.broadcast %17 : vector<16x1xf32> to vector<16x16xf32>
    %19 = arith.mulf %14, %18 : vector<16x16xf32>
    %20 = arith.truncf %19 : vector<16x16xf32> to vector<16x16xbf16>
    %c0_8 = arith.constant 0 : index
    %c0_9 = arith.constant 0 : index
    %c0_10 = arith.constant 0 : index
    %21 = vector.load %arg4[%c0_8, %c0_9, %c0_10] : memref<1x16x32xbf16, #tpu.memory_space<vmem>>, vector<1x16x32xbf16>
    %22 = vector.shape_cast %21 : vector<1x16x32xbf16> to vector<16x32xbf16>
    %cst_11 = arith.constant dense<0.000000e+00> : vector<16x32xf32>
    %23 = tpu.matmul %20, %22, %cst_11 {dimension_numbers = #tpu.dot_dimension_numbers<[1], [0], [0], [1], [0, 0, 1, 1], [], []>} : vector<16x16xbf16>, vector<16x32xbf16>, vector<16x32xf32> -> vector<16x32xf32>
    %24 = arith.truncf %23 : vector<16x32xf32> to vector<16x32xbf16>
    %c0_12 = arith.constant 0 : index
    %c0_13 = arith.constant 0 : index
    %c0_14 = arith.constant 0 : index
    %25 = vector.load %arg5[%c0_12, %c0_13, %c0_14] : memref<1x32x128xbf16, #tpu.memory_space<vmem>>, vector<1x32x128xbf16>
    %26 = vector.shape_cast %25 : vector<1x32x128xbf16> to vector<32x128xbf16>
    %cst_15 = arith.constant dense<0.000000e+00> : vector<16x128xf32>
    %27 = tpu.matmul %24, %26, %cst_15 {dimension_numbers = #tpu.dot_dimension_numbers<[1], [0], [0], [1], [0, 0, 1, 1], [], []>} : vector<16x32xbf16>, vector<32x128xbf16>, vector<16x128xf32> -> vector<16x128xf32>
    %c0_i32 = arith.constant 0 : i32
    %28 = arith.cmpi eq, %arg1, %c0_i32 : i32
    %29 = arith.extui %28 : i1 to i32
    %c0_i32_16 = arith.constant 0 : i32
    %30 = arith.cmpi ne, %29, %c0_i32_16 : i32
    scf.if %30 {
      %c0_22 = arith.constant 0 : index
      %c0_23 = arith.constant 0 : index
      %c0_24 = arith.constant 0 : index
      %37 = vector.load %arg7[%c0_22, %c0_23, %c0_24] : memref<1x16x128xf32, #tpu.memory_space<vmem>>, vector<1x16x128xf32>
      %38 = vector.shape_cast %37 : vector<1x16x128xf32> to vector<16x128xf32>
      %c0_25 = arith.constant 0 : index
      %c0_26 = arith.constant 0 : index
      %39 = vector.load %arg6[%c0_25, %c0_26] : memref<1x128xf32, #tpu.memory_space<vmem>>, vector<1x128xf32>
      %40 = vector.broadcast %39 : vector<1x128xf32> to vector<16x128xf32>
      %41 = arith.addf %38, %40 : vector<16x128xf32>
      %c0_27 = arith.constant 0 : index
      %c0_28 = arith.constant 0 : index
      %42 = vector.load %arg9[%c0_27, %c0_28] : memref<16x128xf32, #tpu.memory_space<vmem>>, vector<16x128xf32>
      tpu.vector_store %arg9[%c0_27, %c0_28], %41 {strides = array<i32>} : memref<16x128xf32, #tpu.memory_space<vmem>>, vector<16x128xf32>,
    } else {
    }
    %c0_17 = arith.constant 0 : index
    %c0_18 = arith.constant 0 : index
    %31 = vector.load %arg9[%c0_17, %c0_18] : memref<16x128xf32, #tpu.memory_space<vmem>>, vector<16x128xf32>
    %32 = arith.addf %31, %27 : vector<16x128xf32>
    %c0_19 = arith.constant 0 : index
    %c0_20 = arith.constant 0 : index
    %33 = vector.load %arg9[%c0_19, %c0_20] : memref<16x128xf32, #tpu.memory_space<vmem>>, vector<16x128xf32>
    tpu.vector_store %arg9[%c0_19, %c0_20], %32 {strides = array<i32>} : memref<16x128xf32, #tpu.memory_space<vmem>>, vector<16x128xf32>,
    %c3_i32 = arith.constant 3 : i32
    %34 = arith.cmpi eq, %arg1, %c3_i32 : i32
    %35 = arith.extui %34 : i1 to i32
    %c0_i32_21 = arith.constant 0 : i32
    %36 = arith.cmpi ne, %35, %c0_i32_21 : i32
    scf.if %36 {
      %c0_22 = arith.constant 0 : index
      %c0_23 = arith.constant 0 : index
      %37 = vector.load %arg9[%c0_22, %c0_23] : memref<16x128xf32, #tpu.memory_space<vmem>>, vector<16x128xf32>
      %c0_24 = arith.constant 0 : index
      %c0_25 = arith.constant 0 : index
      %c0_26 = arith.constant 0 : index
      %38 = vector.load %arg8[%c0_24, %c0_25, %c0_26] : memref<1x16x128xf32, #tpu.memory_space<vmem>>, vector<1x16x128xf32>
      %39 = vector.shape_cast %38 : vector<1x16x128xf32> to vector<16x128xf32>
      %40 = vector.shape_cast %37 : vector<16x128xf32> to vector<1x16x128xf32>
      tpu.vector_store %arg8[%c0_24, %c0_25, %c0_26], %40 {strides = array<i32>} : memref<1x16x128xf32, #tpu.memory_space<vmem>>, vector<1x16x128xf32>,
    } else {
    }
    return
  }
  func.func @transform_0(%arg0: i32, %arg1: i32) -> (i32, i32, i32) {
    %c0_i32 = arith.constant 0 : i32
    %c0_i32_0 = arith.constant 0 : i32
    return %arg1, %arg0, %c0_i32 : i32, i32, i32
  }
  func.func @transform_1(%arg0: i32, %arg1: i32) -> (i32, i32, i32) {
    %c0_i32 = arith.constant 0 : i32
    %c0_i32_0 = arith.constant 0 : i32
    return %arg1, %arg0, %c0_i32 : i32, i32, i32
  }
  func.func @transform_2(%arg0: i32, %arg1: i32) -> (i32, i32, i32) {
    %c0_i32 = arith.constant 0 : i32
    %c0_i32_0 = arith.constant 0 : i32
    return %arg1, %arg0, %c0_i32 : i32, i32, i32
  }
  func.func @transform_3(%arg0: i32, %arg1: i32) -> (i32, i32, i32) {
    %c0_i32 = arith.constant 0 : i32
    %c0_i32_0 = arith.constant 0 : i32
    %c0_i32_1 = arith.constant 0 : i32
    return %arg1, %c0_i32, %c0_i32_0 : i32, i32, i32
  }
  func.func @transform_4(%arg0: i32, %arg1: i32) -> (i32, i32) {
    %c0_i32 = arith.constant 0 : i32
    %c0_i32_0 = arith.constant 0 : i32
    %c0_i32_1 = arith.constant 0 : i32
    return %c0_i32, %c0_i32_0 : i32, i32
  }
  func.func @transform_5(%arg0: i32, %arg1: i32) -> (i32, i32, i32) {
    %c0_i32 = arith.constant 0 : i32
    %c0_i32_0 = arith.constant 0 : i32
    %c0_i32_1 = arith.constant 0 : i32
    return %arg0, %c0_i32, %c0_i32_0 : i32, i32, i32
  }
  func.func @transform_6(%arg0: i32, %arg1: i32) -> (i32, i32, i32) {
    %c0_i32 = arith.constant 0 : i32
    %c0_i32_0 = arith.constant 0 : i32
    %c0_i32_1 = arith.constant 0 : i32
    return %arg0, %c0_i32, %c0_i32_0 : i32, i32, i32
  }
}

module attributes {stable_mosaic.version = 11 : i64} {
  func.func @ln_qkv_kernel(%arg0: i32, %arg1: memref<16x128xf32, #tpu.memory_space<vmem>>, %arg2: memref<1x128xf32, #tpu.memory_space<vmem>>, %arg3: memref<1x128xf32, #tpu.memory_space<vmem>>, %arg4: memref<128x128xbf16, #tpu.memory_space<vmem>>, %arg5: memref<1x128xf32, #tpu.memory_space<vmem>>, %arg6: memref<128x128xbf16, #tpu.memory_space<vmem>>, %arg7: memref<1x128xf32, #tpu.memory_space<vmem>>, %arg8: memref<128x128xbf16, #tpu.memory_space<vmem>>, %arg9: memref<1x128xf32, #tpu.memory_space<vmem>>, %arg10: memref<4x16x32xbf16, #tpu.memory_space<vmem>>, %arg11: memref<4x16x32xbf16, #tpu.memory_space<vmem>>, %arg12: memref<4x16x32xbf16, #tpu.memory_space<vmem>>) attributes {dimension_semantics = [#tpu.dimension_semantics<parallel>], iteration_bounds = array<i64: 2>, scalar_prefetch = 0 : i64, scratch_operands = 0 : i64, tpu.core_type = #tpu.core_type<tc>, window_params = [{transform_indices = @transform_0, window_bounds = array<i64: 16, 128>}, {pipeline_mode = #tpu.pipeline_mode<synchronous>, transform_indices = @transform_1, window_bounds = array<i64: 1, 128>}, {pipeline_mode = #tpu.pipeline_mode<synchronous>, transform_indices = @transform_2, window_bounds = array<i64: 1, 128>}, {pipeline_mode = #tpu.pipeline_mode<synchronous>, transform_indices = @transform_3, window_bounds = array<i64: 128, 128>}, {pipeline_mode = #tpu.pipeline_mode<synchronous>, transform_indices = @transform_4, window_bounds = array<i64: 1, 128>}, {pipeline_mode = #tpu.pipeline_mode<synchronous>, transform_indices = @transform_5, window_bounds = array<i64: 128, 128>}, {pipeline_mode = #tpu.pipeline_mode<synchronous>, transform_indices = @transform_6, window_bounds = array<i64: 1, 128>}, {pipeline_mode = #tpu.pipeline_mode<synchronous>, transform_indices = @transform_7, window_bounds = array<i64: 128, 128>}, {pipeline_mode = #tpu.pipeline_mode<synchronous>, transform_indices = @transform_8, window_bounds = array<i64: 1, 128>}, {transform_indices = @transform_9, window_bounds = array<i64: 4, 16, 32>}, {transform_indices = @transform_10, window_bounds = array<i64: 4, 16, 32>}, {transform_indices = @transform_11, window_bounds = array<i64: 4, 16, 32>}]} {
    %c0 = arith.constant 0 : index
    %c0_0 = arith.constant 0 : index
    %0 = vector.load %arg1[%c0, %c0_0] : memref<16x128xf32, #tpu.memory_space<vmem>>, vector<16x128xf32>
    %c0_1 = arith.constant 0 : index
    %c0_2 = arith.constant 0 : index
    %1 = vector.load %arg2[%c0_1, %c0_2] : memref<1x128xf32, #tpu.memory_space<vmem>>, vector<1x128xf32>
    %c0_3 = arith.constant 0 : index
    %c0_4 = arith.constant 0 : index
    %2 = vector.load %arg3[%c0_3, %c0_4] : memref<1x128xf32, #tpu.memory_space<vmem>>, vector<1x128xf32>
    %cst = arith.constant dense<0.000000e+00> : vector<16xf32>
    %3 = vector.multi_reduction <add>, %0, %cst [1] : vector<16x128xf32> to vector<16xf32>
    %4 = vector.shape_cast %3 : vector<16xf32> to vector<16x1xf32>
    %cst_5 = arith.constant 1.280000e+02 : f32
    %5 = vector.broadcast %cst_5 : f32 to vector<16x1xf32>
    %6 = arith.divf %4, %5 : vector<16x1xf32>
    %7 = vector.broadcast %6 : vector<16x1xf32> to vector<16x128xf32>
    %8 = arith.subf %0, %7 : vector<16x128xf32>
    %9 = arith.mulf %8, %8 : vector<16x128xf32>
    %cst_6 = arith.constant dense<0.000000e+00> : vector<16xf32>
    %10 = vector.multi_reduction <add>, %9, %cst_6 [1] : vector<16x128xf32> to vector<16xf32>
    %11 = vector.shape_cast %10 : vector<16xf32> to vector<16x1xf32>
    %cst_7 = arith.constant 1.280000e+02 : f32
    %12 = vector.broadcast %cst_7 : f32 to vector<16x1xf32>
    %13 = arith.divf %11, %12 : vector<16x1xf32>
    %14 = math.sqrt %13 : vector<16x1xf32>
    %cst_8 = arith.constant 9.99999997E-7 : f32
    %15 = vector.broadcast %cst_8 : f32 to vector<16x1xf32>
    %16 = arith.addf %14, %15 : vector<16x1xf32>
    %cst_9 = arith.constant 1.000000e+00 : f32
    %17 = vector.broadcast %cst_9 : f32 to vector<16x1xf32>
    %18 = arith.divf %17, %16 : vector<16x1xf32>
    %19 = vector.broadcast %6 : vector<16x1xf32> to vector<16x128xf32>
    %20 = arith.subf %0, %19 : vector<16x128xf32>
    %21 = vector.broadcast %18 : vector<16x1xf32> to vector<16x128xf32>
    %22 = arith.mulf %20, %21 : vector<16x128xf32>
    %23 = vector.broadcast %1 : vector<1x128xf32> to vector<16x128xf32>
    %24 = arith.mulf %23, %22 : vector<16x128xf32>
    %25 = vector.broadcast %2 : vector<1x128xf32> to vector<16x128xf32>
    %26 = arith.addf %24, %25 : vector<16x128xf32>
    %27 = arith.truncf %26 : vector<16x128xf32> to vector<16x128xbf16>
    %c0_10 = arith.constant 0 : index
    %c0_11 = arith.constant 0 : index
    %28 = vector.load %arg4[%c0_10, %c0_11] : memref<128x128xbf16, #tpu.memory_space<vmem>>, vector<128x128xbf16>
    %cst_12 = arith.constant dense<0.000000e+00> : vector<16x128xf32>
    %29 = tpu.matmul %27, %28, %cst_12 {dimension_numbers = #tpu.dot_dimension_numbers<[1], [0], [0], [1], [0, 0, 1, 1], [], []>} : vector<16x128xbf16>, vector<128x128xbf16>, vector<16x128xf32> -> vector<16x128xf32>
    %c0_13 = arith.constant 0 : index
    %c0_14 = arith.constant 0 : index
    %30 = vector.load %arg5[%c0_13, %c0_14] : memref<1x128xf32, #tpu.memory_space<vmem>>, vector<1x128xf32>
    %31 = vector.broadcast %30 : vector<1x128xf32> to vector<16x128xf32>
    %32 = arith.addf %29, %31 : vector<16x128xf32>
    %33 = arith.truncf %32 : vector<16x128xf32> to vector<16x128xbf16>
    %c0_15 = arith.constant 0 : index
    %c0_16 = arith.constant 0 : index
    %34 = vector.load %arg6[%c0_15, %c0_16] : memref<128x128xbf16, #tpu.memory_space<vmem>>, vector<128x128xbf16>
    %cst_17 = arith.constant dense<0.000000e+00> : vector<16x128xf32>
    %35 = tpu.matmul %27, %34, %cst_17 {dimension_numbers = #tpu.dot_dimension_numbers<[1], [0], [0], [1], [0, 0, 1, 1], [], []>} : vector<16x128xbf16>, vector<128x128xbf16>, vector<16x128xf32> -> vector<16x128xf32>
    %c0_18 = arith.constant 0 : index
    %c0_19 = arith.constant 0 : index
    %36 = vector.load %arg7[%c0_18, %c0_19] : memref<1x128xf32, #tpu.memory_space<vmem>>, vector<1x128xf32>
    %37 = vector.broadcast %36 : vector<1x128xf32> to vector<16x128xf32>
    %38 = arith.addf %35, %37 : vector<16x128xf32>
    %39 = arith.truncf %38 : vector<16x128xf32> to vector<16x128xbf16>
    %c0_20 = arith.constant 0 : index
    %c0_21 = arith.constant 0 : index
    %40 = vector.load %arg8[%c0_20, %c0_21] : memref<128x128xbf16, #tpu.memory_space<vmem>>, vector<128x128xbf16>
    %cst_22 = arith.constant dense<0.000000e+00> : vector<16x128xf32>
    %41 = tpu.matmul %27, %40, %cst_22 {dimension_numbers = #tpu.dot_dimension_numbers<[1], [0], [0], [1], [0, 0, 1, 1], [], []>} : vector<16x128xbf16>, vector<128x128xbf16>, vector<16x128xf32> -> vector<16x128xf32>
    %c0_23 = arith.constant 0 : index
    %c0_24 = arith.constant 0 : index
    %42 = vector.load %arg9[%c0_23, %c0_24] : memref<1x128xf32, #tpu.memory_space<vmem>>, vector<1x128xf32>
    %43 = vector.broadcast %42 : vector<1x128xf32> to vector<16x128xf32>
    %44 = arith.addf %41, %43 : vector<16x128xf32>
    %45 = arith.truncf %44 : vector<16x128xf32> to vector<16x128xbf16>
    %46 = vector.extract_strided_slice %33 {offsets = [0, 0], sizes = [16, 32], strides = [1, 1]} : vector<16x128xbf16> to vector<16x32xbf16>
    %c0_25 = arith.constant 0 : index
    %c0_26 = arith.constant 0 : index
    %c0_27 = arith.constant 0 : index
    %47 = vector.load %arg10[%c0_25, %c0_26, %c0_27] : memref<4x16x32xbf16, #tpu.memory_space<vmem>>, vector<1x16x32xbf16>
    %48 = vector.shape_cast %47 : vector<1x16x32xbf16> to vector<16x32xbf16>
    %49 = vector.shape_cast %46 : vector<16x32xbf16> to vector<1x16x32xbf16>
    tpu.vector_store %arg10[%c0_25, %c0_26, %c0_27], %49 {strides = array<i32>} : memref<4x16x32xbf16, #tpu.memory_space<vmem>>, vector<1x16x32xbf16>,
    %50 = vector.extract_strided_slice %33 {offsets = [0, 32], sizes = [16, 32], strides = [1, 1]} : vector<16x128xbf16> to vector<16x32xbf16>
    %c1 = arith.constant 1 : index
    %c0_28 = arith.constant 0 : index
    %c0_29 = arith.constant 0 : index
    %51 = vector.load %arg10[%c1, %c0_28, %c0_29] : memref<4x16x32xbf16, #tpu.memory_space<vmem>>, vector<1x16x32xbf16>
    %52 = vector.shape_cast %51 : vector<1x16x32xbf16> to vector<16x32xbf16>
    %53 = vector.shape_cast %50 : vector<16x32xbf16> to vector<1x16x32xbf16>
    tpu.vector_store %arg10[%c1, %c0_28, %c0_29], %53 {strides = array<i32>} : memref<4x16x32xbf16, #tpu.memory_space<vmem>>, vector<1x16x32xbf16>,
    %54 = vector.extract_strided_slice %33 {offsets = [0, 64], sizes = [16, 32], strides = [1, 1]} : vector<16x128xbf16> to vector<16x32xbf16>
    %c2 = arith.constant 2 : index
    %c0_30 = arith.constant 0 : index
    %c0_31 = arith.constant 0 : index
    %55 = vector.load %arg10[%c2, %c0_30, %c0_31] : memref<4x16x32xbf16, #tpu.memory_space<vmem>>, vector<1x16x32xbf16>
    %56 = vector.shape_cast %55 : vector<1x16x32xbf16> to vector<16x32xbf16>
    %57 = vector.shape_cast %54 : vector<16x32xbf16> to vector<1x16x32xbf16>
    tpu.vector_store %arg10[%c2, %c0_30, %c0_31], %57 {strides = array<i32>} : memref<4x16x32xbf16, #tpu.memory_space<vmem>>, vector<1x16x32xbf16>,
    %58 = vector.extract_strided_slice %33 {offsets = [0, 96], sizes = [16, 32], strides = [1, 1]} : vector<16x128xbf16> to vector<16x32xbf16>
    %c3 = arith.constant 3 : index
    %c0_32 = arith.constant 0 : index
    %c0_33 = arith.constant 0 : index
    %59 = vector.load %arg10[%c3, %c0_32, %c0_33] : memref<4x16x32xbf16, #tpu.memory_space<vmem>>, vector<1x16x32xbf16>
    %60 = vector.shape_cast %59 : vector<1x16x32xbf16> to vector<16x32xbf16>
    %61 = vector.shape_cast %58 : vector<16x32xbf16> to vector<1x16x32xbf16>
    tpu.vector_store %arg10[%c3, %c0_32, %c0_33], %61 {strides = array<i32>} : memref<4x16x32xbf16, #tpu.memory_space<vmem>>, vector<1x16x32xbf16>,
    %62 = vector.extract_strided_slice %39 {offsets = [0, 0], sizes = [16, 32], strides = [1, 1]} : vector<16x128xbf16> to vector<16x32xbf16>
    %c0_34 = arith.constant 0 : index
    %c0_35 = arith.constant 0 : index
    %c0_36 = arith.constant 0 : index
    %63 = vector.load %arg11[%c0_34, %c0_35, %c0_36] : memref<4x16x32xbf16, #tpu.memory_space<vmem>>, vector<1x16x32xbf16>
    %64 = vector.shape_cast %63 : vector<1x16x32xbf16> to vector<16x32xbf16>
    %65 = vector.shape_cast %62 : vector<16x32xbf16> to vector<1x16x32xbf16>
    tpu.vector_store %arg11[%c0_34, %c0_35, %c0_36], %65 {strides = array<i32>} : memref<4x16x32xbf16, #tpu.memory_space<vmem>>, vector<1x16x32xbf16>,
    %66 = vector.extract_strided_slice %39 {offsets = [0, 32], sizes = [16, 32], strides = [1, 1]} : vector<16x128xbf16> to vector<16x32xbf16>
    %c1_37 = arith.constant 1 : index
    %c0_38 = arith.constant 0 : index
    %c0_39 = arith.constant 0 : index
    %67 = vector.load %arg11[%c1_37, %c0_38, %c0_39] : memref<4x16x32xbf16, #tpu.memory_space<vmem>>, vector<1x16x32xbf16>
    %68 = vector.shape_cast %67 : vector<1x16x32xbf16> to vector<16x32xbf16>
    %69 = vector.shape_cast %66 : vector<16x32xbf16> to vector<1x16x32xbf16>
    tpu.vector_store %arg11[%c1_37, %c0_38, %c0_39], %69 {strides = array<i32>} : memref<4x16x32xbf16, #tpu.memory_space<vmem>>, vector<1x16x32xbf16>,
    %70 = vector.extract_strided_slice %39 {offsets = [0, 64], sizes = [16, 32], strides = [1, 1]} : vector<16x128xbf16> to vector<16x32xbf16>
    %c2_40 = arith.constant 2 : index
    %c0_41 = arith.constant 0 : index
    %c0_42 = arith.constant 0 : index
    %71 = vector.load %arg11[%c2_40, %c0_41, %c0_42] : memref<4x16x32xbf16, #tpu.memory_space<vmem>>, vector<1x16x32xbf16>
    %72 = vector.shape_cast %71 : vector<1x16x32xbf16> to vector<16x32xbf16>
    %73 = vector.shape_cast %70 : vector<16x32xbf16> to vector<1x16x32xbf16>
    tpu.vector_store %arg11[%c2_40, %c0_41, %c0_42], %73 {strides = array<i32>} : memref<4x16x32xbf16, #tpu.memory_space<vmem>>, vector<1x16x32xbf16>,
    %74 = vector.extract_strided_slice %39 {offsets = [0, 96], sizes = [16, 32], strides = [1, 1]} : vector<16x128xbf16> to vector<16x32xbf16>
    %c3_43 = arith.constant 3 : index
    %c0_44 = arith.constant 0 : index
    %c0_45 = arith.constant 0 : index
    %75 = vector.load %arg11[%c3_43, %c0_44, %c0_45] : memref<4x16x32xbf16, #tpu.memory_space<vmem>>, vector<1x16x32xbf16>
    %76 = vector.shape_cast %75 : vector<1x16x32xbf16> to vector<16x32xbf16>
    %77 = vector.shape_cast %74 : vector<16x32xbf16> to vector<1x16x32xbf16>
    tpu.vector_store %arg11[%c3_43, %c0_44, %c0_45], %77 {strides = array<i32>} : memref<4x16x32xbf16, #tpu.memory_space<vmem>>, vector<1x16x32xbf16>,
    %78 = vector.extract_strided_slice %45 {offsets = [0, 0], sizes = [16, 32], strides = [1, 1]} : vector<16x128xbf16> to vector<16x32xbf16>
    %c0_46 = arith.constant 0 : index
    %c0_47 = arith.constant 0 : index
    %c0_48 = arith.constant 0 : index
    %79 = vector.load %arg12[%c0_46, %c0_47, %c0_48] : memref<4x16x32xbf16, #tpu.memory_space<vmem>>, vector<1x16x32xbf16>
    %80 = vector.shape_cast %79 : vector<1x16x32xbf16> to vector<16x32xbf16>
    %81 = vector.shape_cast %78 : vector<16x32xbf16> to vector<1x16x32xbf16>
    tpu.vector_store %arg12[%c0_46, %c0_47, %c0_48], %81 {strides = array<i32>} : memref<4x16x32xbf16, #tpu.memory_space<vmem>>, vector<1x16x32xbf16>,
    %82 = vector.extract_strided_slice %45 {offsets = [0, 32], sizes = [16, 32], strides = [1, 1]} : vector<16x128xbf16> to vector<16x32xbf16>
    %c1_49 = arith.constant 1 : index
    %c0_50 = arith.constant 0 : index
    %c0_51 = arith.constant 0 : index
    %83 = vector.load %arg12[%c1_49, %c0_50, %c0_51] : memref<4x16x32xbf16, #tpu.memory_space<vmem>>, vector<1x16x32xbf16>
    %84 = vector.shape_cast %83 : vector<1x16x32xbf16> to vector<16x32xbf16>
    %85 = vector.shape_cast %82 : vector<16x32xbf16> to vector<1x16x32xbf16>
    tpu.vector_store %arg12[%c1_49, %c0_50, %c0_51], %85 {strides = array<i32>} : memref<4x16x32xbf16, #tpu.memory_space<vmem>>, vector<1x16x32xbf16>,
    %86 = vector.extract_strided_slice %45 {offsets = [0, 64], sizes = [16, 32], strides = [1, 1]} : vector<16x128xbf16> to vector<16x32xbf16>
    %c2_52 = arith.constant 2 : index
    %c0_53 = arith.constant 0 : index
    %c0_54 = arith.constant 0 : index
    %87 = vector.load %arg12[%c2_52, %c0_53, %c0_54] : memref<4x16x32xbf16, #tpu.memory_space<vmem>>, vector<1x16x32xbf16>
    %88 = vector.shape_cast %87 : vector<1x16x32xbf16> to vector<16x32xbf16>
    %89 = vector.shape_cast %86 : vector<16x32xbf16> to vector<1x16x32xbf16>
    tpu.vector_store %arg12[%c2_52, %c0_53, %c0_54], %89 {strides = array<i32>} : memref<4x16x32xbf16, #tpu.memory_space<vmem>>, vector<1x16x32xbf16>,
    %90 = vector.extract_strided_slice %45 {offsets = [0, 96], sizes = [16, 32], strides = [1, 1]} : vector<16x128xbf16> to vector<16x32xbf16>
    %c3_55 = arith.constant 3 : index
    %c0_56 = arith.constant 0 : index
    %c0_57 = arith.constant 0 : index
    %91 = vector.load %arg12[%c3_55, %c0_56, %c0_57] : memref<4x16x32xbf16, #tpu.memory_space<vmem>>, vector<1x16x32xbf16>
    %92 = vector.shape_cast %91 : vector<1x16x32xbf16> to vector<16x32xbf16>
    %93 = vector.shape_cast %90 : vector<16x32xbf16> to vector<1x16x32xbf16>
    tpu.vector_store %arg12[%c3_55, %c0_56, %c0_57], %93 {strides = array<i32>} : memref<4x16x32xbf16, #tpu.memory_space<vmem>>, vector<1x16x32xbf16>,
    return
  }
  func.func @transform_0(%arg0: i32) -> (i32, i32) {
    %c0_i32 = arith.constant 0 : i32
    %c0_i32_0 = arith.constant 0 : i32
    return %arg0, %c0_i32 : i32, i32
  }
  func.func @transform_1(%arg0: i32) -> (i32, i32) {
    %c0_i32 = arith.constant 0 : i32
    %c0_i32_0 = arith.constant 0 : i32
    %c0_i32_1 = arith.constant 0 : i32
    return %c0_i32, %c0_i32_0 : i32, i32
  }
  func.func @transform_2(%arg0: i32) -> (i32, i32) {
    %c0_i32 = arith.constant 0 : i32
    %c0_i32_0 = arith.constant 0 : i32
    %c0_i32_1 = arith.constant 0 : i32
    return %c0_i32, %c0_i32_0 : i32, i32
  }
  func.func @transform_3(%arg0: i32) -> (i32, i32) {
    %c0_i32 = arith.constant 0 : i32
    %c0_i32_0 = arith.constant 0 : i32
    %c0_i32_1 = arith.constant 0 : i32
    return %c0_i32, %c0_i32_0 : i32, i32
  }
  func.func @transform_4(%arg0: i32) -> (i32, i32) {
    %c0_i32 = arith.constant 0 : i32
    %c0_i32_0 = arith.constant 0 : i32
    %c0_i32_1 = arith.constant 0 : i32
    return %c0_i32, %c0_i32_0 : i32, i32
  }
  func.func @transform_5(%arg0: i32) -> (i32, i32) {
    %c0_i32 = arith.constant 0 : i32
    %c0_i32_0 = arith.constant 0 : i32
    %c0_i32_1 = arith.constant 0 : i32
    return %c0_i32, %c0_i32_0 : i32, i32
  }
  func.func @transform_6(%arg0: i32) -> (i32, i32) {
    %c0_i32 = arith.constant 0 : i32
    %c0_i32_0 = arith.constant 0 : i32
    %c0_i32_1 = arith.constant 0 : i32
    return %c0_i32, %c0_i32_0 : i32, i32
  }
  func.func @transform_7(%arg0: i32) -> (i32, i32) {
    %c0_i32 = arith.constant 0 : i32
    %c0_i32_0 = arith.constant 0 : i32
    %c0_i32_1 = arith.constant 0 : i32
    return %c0_i32, %c0_i32_0 : i32, i32
  }
  func.func @transform_8(%arg0: i32) -> (i32, i32) {
    %c0_i32 = arith.constant 0 : i32
    %c0_i32_0 = arith.constant 0 : i32
    %c0_i32_1 = arith.constant 0 : i32
    return %c0_i32, %c0_i32_0 : i32, i32
  }
  func.func @transform_9(%arg0: i32) -> (i32, i32, i32) {
    %c0_i32 = arith.constant 0 : i32
    %c0_i32_0 = arith.constant 0 : i32
    %c0_i32_1 = arith.constant 0 : i32
    return %c0_i32, %arg0, %c0_i32_0 : i32, i32, i32
  }
  func.func @transform_10(%arg0: i32) -> (i32, i32, i32) {
    %c0_i32 = arith.constant 0 : i32
    %c0_i32_0 = arith.constant 0 : i32
    %c0_i32_1 = arith.constant 0 : i32
    return %c0_i32, %arg0, %c0_i32_0 : i32, i32, i32
  }
  func.func @transform_11(%arg0: i32) -> (i32, i32, i32) {
    %c0_i32 = arith.constant 0 : i32
    %c0_i32_0 = arith.constant 0 : i32
    %c0_i32_1 = arith.constant 0 : i32
    return %c0_i32, %arg0, %c0_i32_0 : i32, i32, i32
  }
}

module attributes {stable_mosaic.version = 11 : i64} {
  func.func @kv_kernel(%arg0: i32, %arg1: memref<16x128xf32, #tpu.memory_space<vmem>>, %arg2: memref<128x128xbf16, #tpu.memory_space<vmem>>, %arg3: memref<1x128xf32, #tpu.memory_space<vmem>>, %arg4: memref<128x128xbf16, #tpu.memory_space<vmem>>, %arg5: memref<1x128xf32, #tpu.memory_space<vmem>>, %arg6: memref<4x16x32xbf16, #tpu.memory_space<vmem>>, %arg7: memref<4x16x32xbf16, #tpu.memory_space<vmem>>) attributes {dimension_semantics = [#tpu.dimension_semantics<parallel>], iteration_bounds = array<i64: 2>, scalar_prefetch = 0 : i64, scratch_operands = 0 : i64, tpu.core_type = #tpu.core_type<tc>, window_params = [{transform_indices = @transform_0, window_bounds = array<i64: 16, 128>}, {pipeline_mode = #tpu.pipeline_mode<synchronous>, transform_indices = @transform_1, window_bounds = array<i64: 128, 128>}, {pipeline_mode = #tpu.pipeline_mode<synchronous>, transform_indices = @transform_2, window_bounds = array<i64: 1, 128>}, {pipeline_mode = #tpu.pipeline_mode<synchronous>, transform_indices = @transform_3, window_bounds = array<i64: 128, 128>}, {pipeline_mode = #tpu.pipeline_mode<synchronous>, transform_indices = @transform_4, window_bounds = array<i64: 1, 128>}, {transform_indices = @transform_5, window_bounds = array<i64: 4, 16, 32>}, {transform_indices = @transform_6, window_bounds = array<i64: 4, 16, 32>}]} {
    %c0 = arith.constant 0 : index
    %c0_0 = arith.constant 0 : index
    %0 = vector.load %arg1[%c0, %c0_0] : memref<16x128xf32, #tpu.memory_space<vmem>>, vector<16x128xf32>
    %1 = arith.truncf %0 : vector<16x128xf32> to vector<16x128xbf16>
    %c0_1 = arith.constant 0 : index
    %c0_2 = arith.constant 0 : index
    %2 = vector.load %arg2[%c0_1, %c0_2] : memref<128x128xbf16, #tpu.memory_space<vmem>>, vector<128x128xbf16>
    %cst = arith.constant dense<0.000000e+00> : vector<16x128xf32>
    %3 = tpu.matmul %1, %2, %cst {dimension_numbers = #tpu.dot_dimension_numbers<[1], [0], [0], [1], [0, 0, 1, 1], [], []>} : vector<16x128xbf16>, vector<128x128xbf16>, vector<16x128xf32> -> vector<16x128xf32>
    %c0_3 = arith.constant 0 : index
    %c0_4 = arith.constant 0 : index
    %4 = vector.load %arg3[%c0_3, %c0_4] : memref<1x128xf32, #tpu.memory_space<vmem>>, vector<1x128xf32>
    %5 = vector.broadcast %4 : vector<1x128xf32> to vector<16x128xf32>
    %6 = arith.addf %3, %5 : vector<16x128xf32>
    %7 = arith.truncf %6 : vector<16x128xf32> to vector<16x128xbf16>
    %c0_5 = arith.constant 0 : index
    %c0_6 = arith.constant 0 : index
    %8 = vector.load %arg4[%c0_5, %c0_6] : memref<128x128xbf16, #tpu.memory_space<vmem>>, vector<128x128xbf16>
    %cst_7 = arith.constant dense<0.000000e+00> : vector<16x128xf32>
    %9 = tpu.matmul %1, %8, %cst_7 {dimension_numbers = #tpu.dot_dimension_numbers<[1], [0], [0], [1], [0, 0, 1, 1], [], []>} : vector<16x128xbf16>, vector<128x128xbf16>, vector<16x128xf32> -> vector<16x128xf32>
    %c0_8 = arith.constant 0 : index
    %c0_9 = arith.constant 0 : index
    %10 = vector.load %arg5[%c0_8, %c0_9] : memref<1x128xf32, #tpu.memory_space<vmem>>, vector<1x128xf32>
    %11 = vector.broadcast %10 : vector<1x128xf32> to vector<16x128xf32>
    %12 = arith.addf %9, %11 : vector<16x128xf32>
    %13 = arith.truncf %12 : vector<16x128xf32> to vector<16x128xbf16>
    %14 = vector.extract_strided_slice %7 {offsets = [0, 0], sizes = [16, 32], strides = [1, 1]} : vector<16x128xbf16> to vector<16x32xbf16>
    %c0_10 = arith.constant 0 : index
    %c0_11 = arith.constant 0 : index
    %c0_12 = arith.constant 0 : index
    %15 = vector.load %arg6[%c0_10, %c0_11, %c0_12] : memref<4x16x32xbf16, #tpu.memory_space<vmem>>, vector<1x16x32xbf16>
    %16 = vector.shape_cast %15 : vector<1x16x32xbf16> to vector<16x32xbf16>
    %17 = vector.shape_cast %14 : vector<16x32xbf16> to vector<1x16x32xbf16>
    tpu.vector_store %arg6[%c0_10, %c0_11, %c0_12], %17 {strides = array<i32>} : memref<4x16x32xbf16, #tpu.memory_space<vmem>>, vector<1x16x32xbf16>,
    %18 = vector.extract_strided_slice %7 {offsets = [0, 32], sizes = [16, 32], strides = [1, 1]} : vector<16x128xbf16> to vector<16x32xbf16>
    %c1 = arith.constant 1 : index
    %c0_13 = arith.constant 0 : index
    %c0_14 = arith.constant 0 : index
    %19 = vector.load %arg6[%c1, %c0_13, %c0_14] : memref<4x16x32xbf16, #tpu.memory_space<vmem>>, vector<1x16x32xbf16>
    %20 = vector.shape_cast %19 : vector<1x16x32xbf16> to vector<16x32xbf16>
    %21 = vector.shape_cast %18 : vector<16x32xbf16> to vector<1x16x32xbf16>
    tpu.vector_store %arg6[%c1, %c0_13, %c0_14], %21 {strides = array<i32>} : memref<4x16x32xbf16, #tpu.memory_space<vmem>>, vector<1x16x32xbf16>,
    %22 = vector.extract_strided_slice %7 {offsets = [0, 64], sizes = [16, 32], strides = [1, 1]} : vector<16x128xbf16> to vector<16x32xbf16>
    %c2 = arith.constant 2 : index
    %c0_15 = arith.constant 0 : index
    %c0_16 = arith.constant 0 : index
    %23 = vector.load %arg6[%c2, %c0_15, %c0_16] : memref<4x16x32xbf16, #tpu.memory_space<vmem>>, vector<1x16x32xbf16>
    %24 = vector.shape_cast %23 : vector<1x16x32xbf16> to vector<16x32xbf16>
    %25 = vector.shape_cast %22 : vector<16x32xbf16> to vector<1x16x32xbf16>
    tpu.vector_store %arg6[%c2, %c0_15, %c0_16], %25 {strides = array<i32>} : memref<4x16x32xbf16, #tpu.memory_space<vmem>>, vector<1x16x32xbf16>,
    %26 = vector.extract_strided_slice %7 {offsets = [0, 96], sizes = [16, 32], strides = [1, 1]} : vector<16x128xbf16> to vector<16x32xbf16>
    %c3 = arith.constant 3 : index
    %c0_17 = arith.constant 0 : index
    %c0_18 = arith.constant 0 : index
    %27 = vector.load %arg6[%c3, %c0_17, %c0_18] : memref<4x16x32xbf16, #tpu.memory_space<vmem>>, vector<1x16x32xbf16>
    %28 = vector.shape_cast %27 : vector<1x16x32xbf16> to vector<16x32xbf16>
    %29 = vector.shape_cast %26 : vector<16x32xbf16> to vector<1x16x32xbf16>
    tpu.vector_store %arg6[%c3, %c0_17, %c0_18], %29 {strides = array<i32>} : memref<4x16x32xbf16, #tpu.memory_space<vmem>>, vector<1x16x32xbf16>,
    %30 = vector.extract_strided_slice %13 {offsets = [0, 0], sizes = [16, 32], strides = [1, 1]} : vector<16x128xbf16> to vector<16x32xbf16>
    %c0_19 = arith.constant 0 : index
    %c0_20 = arith.constant 0 : index
    %c0_21 = arith.constant 0 : index
    %31 = vector.load %arg7[%c0_19, %c0_20, %c0_21] : memref<4x16x32xbf16, #tpu.memory_space<vmem>>, vector<1x16x32xbf16>
    %32 = vector.shape_cast %31 : vector<1x16x32xbf16> to vector<16x32xbf16>
    %33 = vector.shape_cast %30 : vector<16x32xbf16> to vector<1x16x32xbf16>
    tpu.vector_store %arg7[%c0_19, %c0_20, %c0_21], %33 {strides = array<i32>} : memref<4x16x32xbf16, #tpu.memory_space<vmem>>, vector<1x16x32xbf16>,
    %34 = vector.extract_strided_slice %13 {offsets = [0, 32], sizes = [16, 32], strides = [1, 1]} : vector<16x128xbf16> to vector<16x32xbf16>
    %c1_22 = arith.constant 1 : index
    %c0_23 = arith.constant 0 : index
    %c0_24 = arith.constant 0 : index
    %35 = vector.load %arg7[%c1_22, %c0_23, %c0_24] : memref<4x16x32xbf16, #tpu.memory_space<vmem>>, vector<1x16x32xbf16>
    %36 = vector.shape_cast %35 : vector<1x16x32xbf16> to vector<16x32xbf16>
    %37 = vector.shape_cast %34 : vector<16x32xbf16> to vector<1x16x32xbf16>
    tpu.vector_store %arg7[%c1_22, %c0_23, %c0_24], %37 {strides = array<i32>} : memref<4x16x32xbf16, #tpu.memory_space<vmem>>, vector<1x16x32xbf16>,
    %38 = vector.extract_strided_slice %13 {offsets = [0, 64], sizes = [16, 32], strides = [1, 1]} : vector<16x128xbf16> to vector<16x32xbf16>
    %c2_25 = arith.constant 2 : index
    %c0_26 = arith.constant 0 : index
    %c0_27 = arith.constant 0 : index
    %39 = vector.load %arg7[%c2_25, %c0_26, %c0_27] : memref<4x16x32xbf16, #tpu.memory_space<vmem>>, vector<1x16x32xbf16>
    %40 = vector.shape_cast %39 : vector<1x16x32xbf16> to vector<16x32xbf16>
    %41 = vector.shape_cast %38 : vector<16x32xbf16> to vector<1x16x32xbf16>
    tpu.vector_store %arg7[%c2_25, %c0_26, %c0_27], %41 {strides = array<i32>} : memref<4x16x32xbf16, #tpu.memory_space<vmem>>, vector<1x16x32xbf16>,
    %42 = vector.extract_strided_slice %13 {offsets = [0, 96], sizes = [16, 32], strides = [1, 1]} : vector<16x128xbf16> to vector<16x32xbf16>
    %c3_28 = arith.constant 3 : index
    %c0_29 = arith.constant 0 : index
    %c0_30 = arith.constant 0 : index
    %43 = vector.load %arg7[%c3_28, %c0_29, %c0_30] : memref<4x16x32xbf16, #tpu.memory_space<vmem>>, vector<1x16x32xbf16>
    %44 = vector.shape_cast %43 : vector<1x16x32xbf16> to vector<16x32xbf16>
    %45 = vector.shape_cast %42 : vector<16x32xbf16> to vector<1x16x32xbf16>
    tpu.vector_store %arg7[%c3_28, %c0_29, %c0_30], %45 {strides = array<i32>} : memref<4x16x32xbf16, #tpu.memory_space<vmem>>, vector<1x16x32xbf16>,
    return
  }
  func.func @transform_0(%arg0: i32) -> (i32, i32) {
    %c0_i32 = arith.constant 0 : i32
    %c0_i32_0 = arith.constant 0 : i32
    return %arg0, %c0_i32 : i32, i32
  }
  func.func @transform_1(%arg0: i32) -> (i32, i32) {
    %c0_i32 = arith.constant 0 : i32
    %c0_i32_0 = arith.constant 0 : i32
    %c0_i32_1 = arith.constant 0 : i32
    return %c0_i32, %c0_i32_0 : i32, i32
  }
  func.func @transform_2(%arg0: i32) -> (i32, i32) {
    %c0_i32 = arith.constant 0 : i32
    %c0_i32_0 = arith.constant 0 : i32
    %c0_i32_1 = arith.constant 0 : i32
    return %c0_i32, %c0_i32_0 : i32, i32
  }
  func.func @transform_3(%arg0: i32) -> (i32, i32) {
    %c0_i32 = arith.constant 0 : i32
    %c0_i32_0 = arith.constant 0 : i32
    %c0_i32_1 = arith.constant 0 : i32
    return %c0_i32, %c0_i32_0 : i32, i32
  }
  func.func @transform_4(%arg0: i32) -> (i32, i32) {
    %c0_i32 = arith.constant 0 : i32
    %c0_i32_0 = arith.constant 0 : i32
    %c0_i32_1 = arith.constant 0 : i32
    return %c0_i32, %c0_i32_0 : i32, i32
  }
  func.func @transform_5(%arg0: i32) -> (i32, i32, i32) {
    %c0_i32 = arith.constant 0 : i32
    %c0_i32_0 = arith.constant 0 : i32
    %c0_i32_1 = arith.constant 0 : i32
    return %c0_i32, %arg0, %c0_i32_0 : i32, i32, i32
  }
  func.func @transform_6(%arg0: i32) -> (i32, i32, i32) {
    %c0_i32 = arith.constant 0 : i32
    %c0_i32_0 = arith.constant 0 : i32
    %c0_i32_1 = arith.constant 0 : i32
    return %c0_i32, %arg0, %c0_i32_0 : i32, i32, i32
  }
}

module attributes {stable_mosaic.version = 11 : i64} {
  func.func @attention_bias_kernel(%arg0: i32, %arg1: i32, %arg2: memref<1x16x32xbf16, #tpu.memory_space<vmem>>, %arg3: memref<1x16x32xbf16, #tpu.memory_space<vmem>>, %arg4: memref<1x16x32xbf16, #tpu.memory_space<vmem>>, %arg5: memref<1x16x16xbf16, #tpu.memory_space<vmem>>, %arg6: memref<1x32x128xbf16, #tpu.memory_space<vmem>>, %arg7: memref<1x128xf32, #tpu.memory_space<vmem>>, %arg8: memref<1x16x128xf32, #tpu.memory_space<vmem>>, %arg9: memref<1x16x128xf32, #tpu.memory_space<vmem>>, %arg10: memref<16x128xf32, #tpu.memory_space<vmem>>) attributes {dimension_semantics = [#tpu.dimension_semantics<parallel>, #tpu.dimension_semantics<arbitrary>], iteration_bounds = array<i64: 2, 4>, scalar_prefetch = 0 : i64, scratch_operands = 1 : i64, tpu.core_type = #tpu.core_type<tc>, window_params = [{transform_indices = @transform_0, window_bounds = array<i64: 1, 16, 32>}, {transform_indices = @transform_1, window_bounds = array<i64: 1, 16, 32>}, {transform_indices = @transform_2, window_bounds = array<i64: 1, 16, 32>}, {transform_indices = @transform_3, window_bounds = array<i64: 1, 16, 16>}, {transform_indices = @transform_4, window_bounds = array<i64: 1, 32, 128>}, {pipeline_mode = #tpu.pipeline_mode<synchronous>, transform_indices = @transform_5, window_bounds = array<i64: 1, 128>}, {transform_indices = @transform_6, window_bounds = array<i64: 1, 16, 128>}, {transform_indices = @transform_7, window_bounds = array<i64: 1, 16, 128>}]} {
    %c0 = arith.constant 0 : index
    %c0_0 = arith.constant 0 : index
    %c0_1 = arith.constant 0 : index
    %0 = vector.load %arg2[%c0, %c0_0, %c0_1] : memref<1x16x32xbf16, #tpu.memory_space<vmem>>, vector<1x16x32xbf16>
    %1 = vector.shape_cast %0 : vector<1x16x32xbf16> to vector<16x32xbf16>
    %c0_2 = arith.constant 0 : index
    %c0_3 = arith.constant 0 : index
    %c0_4 = arith.constant 0 : index
    %2 = vector.load %arg3[%c0_2, %c0_3, %c0_4] : memref<1x16x32xbf16, #tpu.memory_space<vmem>>, vector<1x16x32xbf16>
    %3 = vector.shape_cast %2 : vector<1x16x32xbf16> to vector<16x32xbf16>
    %cst = arith.constant dense<0.000000e+00> : vector<16x16xf32>
    %4 = tpu.matmul %1, %3, %cst {dimension_numbers = #tpu.dot_dimension_numbers<[1], [1], [0], [0], [0, 0, 1, 0], [], []>} : vector<16x32xbf16>, vector<16x32xbf16>, vector<16x16xf32> -> vector<16x16xf32>
    %c0_5 = arith.constant 0 : index
    %c0_6 = arith.constant 0 : index
    %c0_7 = arith.constant 0 : index
    %5 = vector.load %arg5[%c0_5, %c0_6, %c0_7] : memref<1x16x16xbf16, #tpu.memory_space<vmem>>, vector<1x16x16xbf16>
    %6 = vector.shape_cast %5 : vector<1x16x16xbf16> to vector<16x16xbf16>
    %7 = arith.extf %6 : vector<16x16xbf16> to vector<16x16xf32>
    %8 = arith.addf %4, %7 : vector<16x16xf32>
    %cst_8 = arith.constant dense<0xFF800000> : vector<16xf32>
    %9 = vector.multi_reduction <maximumf>, %8, %cst_8 [1] : vector<16x16xf32> to vector<16xf32>
    %10 = vector.shape_cast %9 : vector<16xf32> to vector<16x1xf32>
    %11 = vector.broadcast %10 : vector<16x1xf32> to vector<16x16xf32>
    %12 = arith.subf %8, %11 : vector<16x16xf32>
    %13 = math.exp %12 : vector<16x16xf32>
    %cst_9 = arith.constant dense<0.000000e+00> : vector<16xf32>
    %14 = vector.multi_reduction <add>, %13, %cst_9 [1] : vector<16x16xf32> to vector<16xf32>
    %15 = vector.shape_cast %14 : vector<16xf32> to vector<16x1xf32>
    %16 = tpu.reciprocal %15 {approx = true} : vector<16x1xf32> -> vector<16x1xf32>
    %17 = vector.broadcast %16 : vector<16x1xf32> to vector<16x16xf32>
    %18 = arith.mulf %13, %17 : vector<16x16xf32>
    %19 = arith.truncf %18 : vector<16x16xf32> to vector<16x16xbf16>
    %c0_10 = arith.constant 0 : index
    %c0_11 = arith.constant 0 : index
    %c0_12 = arith.constant 0 : index
    %20 = vector.load %arg4[%c0_10, %c0_11, %c0_12] : memref<1x16x32xbf16, #tpu.memory_space<vmem>>, vector<1x16x32xbf16>
    %21 = vector.shape_cast %20 : vector<1x16x32xbf16> to vector<16x32xbf16>
    %cst_13 = arith.constant dense<0.000000e+00> : vector<16x32xf32>
    %22 = tpu.matmul %19, %21, %cst_13 {dimension_numbers = #tpu.dot_dimension_numbers<[1], [0], [0], [1], [0, 0, 1, 1], [], []>} : vector<16x16xbf16>, vector<16x32xbf16>, vector<16x32xf32> -> vector<16x32xf32>
    %23 = arith.truncf %22 : vector<16x32xf32> to vector<16x32xbf16>
    %c0_14 = arith.constant 0 : index
    %c0_15 = arith.constant 0 : index
    %c0_16 = arith.constant 0 : index
    %24 = vector.load %arg6[%c0_14, %c0_15, %c0_16] : memref<1x32x128xbf16, #tpu.memory_space<vmem>>, vector<1x32x128xbf16>
    %25 = vector.shape_cast %24 : vector<1x32x128xbf16> to vector<32x128xbf16>
    %cst_17 = arith.constant dense<0.000000e+00> : vector<16x128xf32>
    %26 = tpu.matmul %23, %25, %cst_17 {dimension_numbers = #tpu.dot_dimension_numbers<[1], [0], [0], [1], [0, 0, 1, 1], [], []>} : vector<16x32xbf16>, vector<32x128xbf16>, vector<16x128xf32> -> vector<16x128xf32>
    %c0_i32 = arith.constant 0 : i32
    %27 = arith.cmpi eq, %arg1, %c0_i32 : i32
    %28 = arith.extui %27 : i1 to i32
    %c0_i32_18 = arith.constant 0 : i32
    %29 = arith.cmpi ne, %28, %c0_i32_18 : i32
    scf.if %29 {
      %c0_24 = arith.constant 0 : index
      %c0_25 = arith.constant 0 : index
      %c0_26 = arith.constant 0 : index
      %36 = vector.load %arg8[%c0_24, %c0_25, %c0_26] : memref<1x16x128xf32, #tpu.memory_space<vmem>>, vector<1x16x128xf32>
      %37 = vector.shape_cast %36 : vector<1x16x128xf32> to vector<16x128xf32>
      %c0_27 = arith.constant 0 : index
      %c0_28 = arith.constant 0 : index
      %38 = vector.load %arg7[%c0_27, %c0_28] : memref<1x128xf32, #tpu.memory_space<vmem>>, vector<1x128xf32>
      %39 = vector.broadcast %38 : vector<1x128xf32> to vector<16x128xf32>
      %40 = arith.addf %37, %39 : vector<16x128xf32>
      %c0_29 = arith.constant 0 : index
      %c0_30 = arith.constant 0 : index
      %41 = vector.load %arg10[%c0_29, %c0_30] : memref<16x128xf32, #tpu.memory_space<vmem>>, vector<16x128xf32>
      tpu.vector_store %arg10[%c0_29, %c0_30], %40 {strides = array<i32>} : memref<16x128xf32, #tpu.memory_space<vmem>>, vector<16x128xf32>,
    } else {
    }
    %c0_19 = arith.constant 0 : index
    %c0_20 = arith.constant 0 : index
    %30 = vector.load %arg10[%c0_19, %c0_20] : memref<16x128xf32, #tpu.memory_space<vmem>>, vector<16x128xf32>
    %31 = arith.addf %30, %26 : vector<16x128xf32>
    %c0_21 = arith.constant 0 : index
    %c0_22 = arith.constant 0 : index
    %32 = vector.load %arg10[%c0_21, %c0_22] : memref<16x128xf32, #tpu.memory_space<vmem>>, vector<16x128xf32>
    tpu.vector_store %arg10[%c0_21, %c0_22], %31 {strides = array<i32>} : memref<16x128xf32, #tpu.memory_space<vmem>>, vector<16x128xf32>,
    %c3_i32 = arith.constant 3 : i32
    %33 = arith.cmpi eq, %arg1, %c3_i32 : i32
    %34 = arith.extui %33 : i1 to i32
    %c0_i32_23 = arith.constant 0 : i32
    %35 = arith.cmpi ne, %34, %c0_i32_23 : i32
    scf.if %35 {
      %c0_24 = arith.constant 0 : index
      %c0_25 = arith.constant 0 : index
      %36 = vector.load %arg10[%c0_24, %c0_25] : memref<16x128xf32, #tpu.memory_space<vmem>>, vector<16x128xf32>
      %c0_26 = arith.constant 0 : index
      %c0_27 = arith.constant 0 : index
      %c0_28 = arith.constant 0 : index
      %37 = vector.load %arg9[%c0_26, %c0_27, %c0_28] : memref<1x16x128xf32, #tpu.memory_space<vmem>>, vector<1x16x128xf32>
      %38 = vector.shape_cast %37 : vector<1x16x128xf32> to vector<16x128xf32>
      %39 = vector.shape_cast %36 : vector<16x128xf32> to vector<1x16x128xf32>
      tpu.vector_store %arg9[%c0_26, %c0_27, %c0_28], %39 {strides = array<i32>} : memref<1x16x128xf32, #tpu.memory_space<vmem>>, vector<1x16x128xf32>,
    } else {
    }
    return
  }
  func.func @transform_0(%arg0: i32, %arg1: i32) -> (i32, i32, i32) {
    %c0_i32 = arith.constant 0 : i32
    %c0_i32_0 = arith.constant 0 : i32
    return %arg1, %arg0, %c0_i32 : i32, i32, i32
  }
  func.func @transform_1(%arg0: i32, %arg1: i32) -> (i32, i32, i32) {
    %c0_i32 = arith.constant 0 : i32
    %c0_i32_0 = arith.constant 0 : i32
    return %arg1, %arg0, %c0_i32 : i32, i32, i32
  }
  func.func @transform_2(%arg0: i32, %arg1: i32) -> (i32, i32, i32) {
    %c0_i32 = arith.constant 0 : i32
    %c0_i32_0 = arith.constant 0 : i32
    return %arg1, %arg0, %c0_i32 : i32, i32, i32
  }
  func.func @transform_3(%arg0: i32, %arg1: i32) -> (i32, i32, i32) {
    %c0_i32 = arith.constant 0 : i32
    %c0_i32_0 = arith.constant 0 : i32
    %c0_i32_1 = arith.constant 0 : i32
    return %arg0, %c0_i32, %c0_i32_0 : i32, i32, i32
  }
  func.func @transform_4(%arg0: i32, %arg1: i32) -> (i32, i32, i32) {
    %c0_i32 = arith.constant 0 : i32
    %c0_i32_0 = arith.constant 0 : i32
    %c0_i32_1 = arith.constant 0 : i32
    return %arg1, %c0_i32, %c0_i32_0 : i32, i32, i32
  }
  func.func @transform_5(%arg0: i32, %arg1: i32) -> (i32, i32) {
    %c0_i32 = arith.constant 0 : i32
    %c0_i32_0 = arith.constant 0 : i32
    %c0_i32_1 = arith.constant 0 : i32
    return %c0_i32, %c0_i32_0 : i32, i32
  }
  func.func @transform_6(%arg0: i32, %arg1: i32) -> (i32, i32, i32) {
    %c0_i32 = arith.constant 0 : i32
    %c0_i32_0 = arith.constant 0 : i32
    %c0_i32_1 = arith.constant 0 : i32
    return %arg0, %c0_i32, %c0_i32_0 : i32, i32, i32
  }
  func.func @transform_7(%arg0: i32, %arg1: i32) -> (i32, i32, i32) {
    %c0_i32 = arith.constant 0 : i32
    %c0_i32_0 = arith.constant 0 : i32
    %c0_i32_1 = arith.constant 0 : i32
    return %arg0, %c0_i32, %c0_i32_0 : i32, i32, i32
  }
}

module attributes {stable_mosaic.version = 11 : i64} {
  func.func @ln_qkv_kernel(%arg0: i32, %arg1: memref<16x128xf32, #tpu.memory_space<vmem>>, %arg2: memref<1x128xf32, #tpu.memory_space<vmem>>, %arg3: memref<1x128xf32, #tpu.memory_space<vmem>>, %arg4: memref<128x128xbf16, #tpu.memory_space<vmem>>, %arg5: memref<1x128xf32, #tpu.memory_space<vmem>>, %arg6: memref<128x128xbf16, #tpu.memory_space<vmem>>, %arg7: memref<1x128xf32, #tpu.memory_space<vmem>>, %arg8: memref<128x128xbf16, #tpu.memory_space<vmem>>, %arg9: memref<1x128xf32, #tpu.memory_space<vmem>>, %arg10: memref<4x16x32xbf16, #tpu.memory_space<vmem>>, %arg11: memref<4x16x32xbf16, #tpu.memory_space<vmem>>, %arg12: memref<4x16x32xbf16, #tpu.memory_space<vmem>>) attributes {dimension_semantics = [#tpu.dimension_semantics<parallel>], iteration_bounds = array<i64: 2>, scalar_prefetch = 0 : i64, scratch_operands = 0 : i64, tpu.core_type = #tpu.core_type<tc>, window_params = [{transform_indices = @transform_0, window_bounds = array<i64: 16, 128>}, {pipeline_mode = #tpu.pipeline_mode<synchronous>, transform_indices = @transform_1, window_bounds = array<i64: 1, 128>}, {pipeline_mode = #tpu.pipeline_mode<synchronous>, transform_indices = @transform_2, window_bounds = array<i64: 1, 128>}, {pipeline_mode = #tpu.pipeline_mode<synchronous>, transform_indices = @transform_3, window_bounds = array<i64: 128, 128>}, {pipeline_mode = #tpu.pipeline_mode<synchronous>, transform_indices = @transform_4, window_bounds = array<i64: 1, 128>}, {pipeline_mode = #tpu.pipeline_mode<synchronous>, transform_indices = @transform_5, window_bounds = array<i64: 128, 128>}, {pipeline_mode = #tpu.pipeline_mode<synchronous>, transform_indices = @transform_6, window_bounds = array<i64: 1, 128>}, {pipeline_mode = #tpu.pipeline_mode<synchronous>, transform_indices = @transform_7, window_bounds = array<i64: 128, 128>}, {pipeline_mode = #tpu.pipeline_mode<synchronous>, transform_indices = @transform_8, window_bounds = array<i64: 1, 128>}, {transform_indices = @transform_9, window_bounds = array<i64: 4, 16, 32>}, {transform_indices = @transform_10, window_bounds = array<i64: 4, 16, 32>}, {transform_indices = @transform_11, window_bounds = array<i64: 4, 16, 32>}]} {
    %c0 = arith.constant 0 : index
    %c0_0 = arith.constant 0 : index
    %0 = vector.load %arg1[%c0, %c0_0] : memref<16x128xf32, #tpu.memory_space<vmem>>, vector<16x128xf32>
    %c0_1 = arith.constant 0 : index
    %c0_2 = arith.constant 0 : index
    %1 = vector.load %arg2[%c0_1, %c0_2] : memref<1x128xf32, #tpu.memory_space<vmem>>, vector<1x128xf32>
    %c0_3 = arith.constant 0 : index
    %c0_4 = arith.constant 0 : index
    %2 = vector.load %arg3[%c0_3, %c0_4] : memref<1x128xf32, #tpu.memory_space<vmem>>, vector<1x128xf32>
    %cst = arith.constant dense<0.000000e+00> : vector<16xf32>
    %3 = vector.multi_reduction <add>, %0, %cst [1] : vector<16x128xf32> to vector<16xf32>
    %4 = vector.shape_cast %3 : vector<16xf32> to vector<16x1xf32>
    %cst_5 = arith.constant 1.280000e+02 : f32
    %5 = vector.broadcast %cst_5 : f32 to vector<16x1xf32>
    %6 = arith.divf %4, %5 : vector<16x1xf32>
    %7 = vector.broadcast %6 : vector<16x1xf32> to vector<16x128xf32>
    %8 = arith.subf %0, %7 : vector<16x128xf32>
    %9 = arith.mulf %8, %8 : vector<16x128xf32>
    %cst_6 = arith.constant dense<0.000000e+00> : vector<16xf32>
    %10 = vector.multi_reduction <add>, %9, %cst_6 [1] : vector<16x128xf32> to vector<16xf32>
    %11 = vector.shape_cast %10 : vector<16xf32> to vector<16x1xf32>
    %cst_7 = arith.constant 1.280000e+02 : f32
    %12 = vector.broadcast %cst_7 : f32 to vector<16x1xf32>
    %13 = arith.divf %11, %12 : vector<16x1xf32>
    %14 = math.sqrt %13 : vector<16x1xf32>
    %cst_8 = arith.constant 9.99999997E-7 : f32
    %15 = vector.broadcast %cst_8 : f32 to vector<16x1xf32>
    %16 = arith.addf %14, %15 : vector<16x1xf32>
    %cst_9 = arith.constant 1.000000e+00 : f32
    %17 = vector.broadcast %cst_9 : f32 to vector<16x1xf32>
    %18 = arith.divf %17, %16 : vector<16x1xf32>
    %19 = vector.broadcast %6 : vector<16x1xf32> to vector<16x128xf32>
    %20 = arith.subf %0, %19 : vector<16x128xf32>
    %21 = vector.broadcast %18 : vector<16x1xf32> to vector<16x128xf32>
    %22 = arith.mulf %20, %21 : vector<16x128xf32>
    %23 = vector.broadcast %1 : vector<1x128xf32> to vector<16x128xf32>
    %24 = arith.mulf %23, %22 : vector<16x128xf32>
    %25 = vector.broadcast %2 : vector<1x128xf32> to vector<16x128xf32>
    %26 = arith.addf %24, %25 : vector<16x128xf32>
    %27 = arith.truncf %26 : vector<16x128xf32> to vector<16x128xbf16>
    %c0_10 = arith.constant 0 : index
    %c0_11 = arith.constant 0 : index
    %28 = vector.load %arg4[%c0_10, %c0_11] : memref<128x128xbf16, #tpu.memory_space<vmem>>, vector<128x128xbf16>
    %cst_12 = arith.constant dense<0.000000e+00> : vector<16x128xf32>
    %29 = tpu.matmul %27, %28, %cst_12 {dimension_numbers = #tpu.dot_dimension_numbers<[1], [0], [0], [1], [0, 0, 1, 1], [], []>} : vector<16x128xbf16>, vector<128x128xbf16>, vector<16x128xf32> -> vector<16x128xf32>
    %c0_13 = arith.constant 0 : index
    %c0_14 = arith.constant 0 : index
    %30 = vector.load %arg5[%c0_13, %c0_14] : memref<1x128xf32, #tpu.memory_space<vmem>>, vector<1x128xf32>
    %31 = vector.broadcast %30 : vector<1x128xf32> to vector<16x128xf32>
    %32 = arith.addf %29, %31 : vector<16x128xf32>
    %33 = arith.truncf %32 : vector<16x128xf32> to vector<16x128xbf16>
    %c0_15 = arith.constant 0 : index
    %c0_16 = arith.constant 0 : index
    %34 = vector.load %arg6[%c0_15, %c0_16] : memref<128x128xbf16, #tpu.memory_space<vmem>>, vector<128x128xbf16>
    %cst_17 = arith.constant dense<0.000000e+00> : vector<16x128xf32>
    %35 = tpu.matmul %27, %34, %cst_17 {dimension_numbers = #tpu.dot_dimension_numbers<[1], [0], [0], [1], [0, 0, 1, 1], [], []>} : vector<16x128xbf16>, vector<128x128xbf16>, vector<16x128xf32> -> vector<16x128xf32>
    %c0_18 = arith.constant 0 : index
    %c0_19 = arith.constant 0 : index
    %36 = vector.load %arg7[%c0_18, %c0_19] : memref<1x128xf32, #tpu.memory_space<vmem>>, vector<1x128xf32>
    %37 = vector.broadcast %36 : vector<1x128xf32> to vector<16x128xf32>
    %38 = arith.addf %35, %37 : vector<16x128xf32>
    %39 = arith.truncf %38 : vector<16x128xf32> to vector<16x128xbf16>
    %c0_20 = arith.constant 0 : index
    %c0_21 = arith.constant 0 : index
    %40 = vector.load %arg8[%c0_20, %c0_21] : memref<128x128xbf16, #tpu.memory_space<vmem>>, vector<128x128xbf16>
    %cst_22 = arith.constant dense<0.000000e+00> : vector<16x128xf32>
    %41 = tpu.matmul %27, %40, %cst_22 {dimension_numbers = #tpu.dot_dimension_numbers<[1], [0], [0], [1], [0, 0, 1, 1], [], []>} : vector<16x128xbf16>, vector<128x128xbf16>, vector<16x128xf32> -> vector<16x128xf32>
    %c0_23 = arith.constant 0 : index
    %c0_24 = arith.constant 0 : index
    %42 = vector.load %arg9[%c0_23, %c0_24] : memref<1x128xf32, #tpu.memory_space<vmem>>, vector<1x128xf32>
    %43 = vector.broadcast %42 : vector<1x128xf32> to vector<16x128xf32>
    %44 = arith.addf %41, %43 : vector<16x128xf32>
    %45 = arith.truncf %44 : vector<16x128xf32> to vector<16x128xbf16>
    %46 = vector.extract_strided_slice %33 {offsets = [0, 0], sizes = [16, 32], strides = [1, 1]} : vector<16x128xbf16> to vector<16x32xbf16>
    %c0_25 = arith.constant 0 : index
    %c0_26 = arith.constant 0 : index
    %c0_27 = arith.constant 0 : index
    %47 = vector.load %arg10[%c0_25, %c0_26, %c0_27] : memref<4x16x32xbf16, #tpu.memory_space<vmem>>, vector<1x16x32xbf16>
    %48 = vector.shape_cast %47 : vector<1x16x32xbf16> to vector<16x32xbf16>
    %49 = vector.shape_cast %46 : vector<16x32xbf16> to vector<1x16x32xbf16>
    tpu.vector_store %arg10[%c0_25, %c0_26, %c0_27], %49 {strides = array<i32>} : memref<4x16x32xbf16, #tpu.memory_space<vmem>>, vector<1x16x32xbf16>,
    %50 = vector.extract_strided_slice %33 {offsets = [0, 32], sizes = [16, 32], strides = [1, 1]} : vector<16x128xbf16> to vector<16x32xbf16>
    %c1 = arith.constant 1 : index
    %c0_28 = arith.constant 0 : index
    %c0_29 = arith.constant 0 : index
    %51 = vector.load %arg10[%c1, %c0_28, %c0_29] : memref<4x16x32xbf16, #tpu.memory_space<vmem>>, vector<1x16x32xbf16>
    %52 = vector.shape_cast %51 : vector<1x16x32xbf16> to vector<16x32xbf16>
    %53 = vector.shape_cast %50 : vector<16x32xbf16> to vector<1x16x32xbf16>
    tpu.vector_store %arg10[%c1, %c0_28, %c0_29], %53 {strides = array<i32>} : memref<4x16x32xbf16, #tpu.memory_space<vmem>>, vector<1x16x32xbf16>,
    %54 = vector.extract_strided_slice %33 {offsets = [0, 64], sizes = [16, 32], strides = [1, 1]} : vector<16x128xbf16> to vector<16x32xbf16>
    %c2 = arith.constant 2 : index
    %c0_30 = arith.constant 0 : index
    %c0_31 = arith.constant 0 : index
    %55 = vector.load %arg10[%c2, %c0_30, %c0_31] : memref<4x16x32xbf16, #tpu.memory_space<vmem>>, vector<1x16x32xbf16>
    %56 = vector.shape_cast %55 : vector<1x16x32xbf16> to vector<16x32xbf16>
    %57 = vector.shape_cast %54 : vector<16x32xbf16> to vector<1x16x32xbf16>
    tpu.vector_store %arg10[%c2, %c0_30, %c0_31], %57 {strides = array<i32>} : memref<4x16x32xbf16, #tpu.memory_space<vmem>>, vector<1x16x32xbf16>,
    %58 = vector.extract_strided_slice %33 {offsets = [0, 96], sizes = [16, 32], strides = [1, 1]} : vector<16x128xbf16> to vector<16x32xbf16>
    %c3 = arith.constant 3 : index
    %c0_32 = arith.constant 0 : index
    %c0_33 = arith.constant 0 : index
    %59 = vector.load %arg10[%c3, %c0_32, %c0_33] : memref<4x16x32xbf16, #tpu.memory_space<vmem>>, vector<1x16x32xbf16>
    %60 = vector.shape_cast %59 : vector<1x16x32xbf16> to vector<16x32xbf16>
    %61 = vector.shape_cast %58 : vector<16x32xbf16> to vector<1x16x32xbf16>
    tpu.vector_store %arg10[%c3, %c0_32, %c0_33], %61 {strides = array<i32>} : memref<4x16x32xbf16, #tpu.memory_space<vmem>>, vector<1x16x32xbf16>,
    %62 = vector.extract_strided_slice %39 {offsets = [0, 0], sizes = [16, 32], strides = [1, 1]} : vector<16x128xbf16> to vector<16x32xbf16>
    %c0_34 = arith.constant 0 : index
    %c0_35 = arith.constant 0 : index
    %c0_36 = arith.constant 0 : index
    %63 = vector.load %arg11[%c0_34, %c0_35, %c0_36] : memref<4x16x32xbf16, #tpu.memory_space<vmem>>, vector<1x16x32xbf16>
    %64 = vector.shape_cast %63 : vector<1x16x32xbf16> to vector<16x32xbf16>
    %65 = vector.shape_cast %62 : vector<16x32xbf16> to vector<1x16x32xbf16>
    tpu.vector_store %arg11[%c0_34, %c0_35, %c0_36], %65 {strides = array<i32>} : memref<4x16x32xbf16, #tpu.memory_space<vmem>>, vector<1x16x32xbf16>,
    %66 = vector.extract_strided_slice %39 {offsets = [0, 32], sizes = [16, 32], strides = [1, 1]} : vector<16x128xbf16> to vector<16x32xbf16>
    %c1_37 = arith.constant 1 : index
    %c0_38 = arith.constant 0 : index
    %c0_39 = arith.constant 0 : index
    %67 = vector.load %arg11[%c1_37, %c0_38, %c0_39] : memref<4x16x32xbf16, #tpu.memory_space<vmem>>, vector<1x16x32xbf16>
    %68 = vector.shape_cast %67 : vector<1x16x32xbf16> to vector<16x32xbf16>
    %69 = vector.shape_cast %66 : vector<16x32xbf16> to vector<1x16x32xbf16>
    tpu.vector_store %arg11[%c1_37, %c0_38, %c0_39], %69 {strides = array<i32>} : memref<4x16x32xbf16, #tpu.memory_space<vmem>>, vector<1x16x32xbf16>,
    %70 = vector.extract_strided_slice %39 {offsets = [0, 64], sizes = [16, 32], strides = [1, 1]} : vector<16x128xbf16> to vector<16x32xbf16>
    %c2_40 = arith.constant 2 : index
    %c0_41 = arith.constant 0 : index
    %c0_42 = arith.constant 0 : index
    %71 = vector.load %arg11[%c2_40, %c0_41, %c0_42] : memref<4x16x32xbf16, #tpu.memory_space<vmem>>, vector<1x16x32xbf16>
    %72 = vector.shape_cast %71 : vector<1x16x32xbf16> to vector<16x32xbf16>
    %73 = vector.shape_cast %70 : vector<16x32xbf16> to vector<1x16x32xbf16>
    tpu.vector_store %arg11[%c2_40, %c0_41, %c0_42], %73 {strides = array<i32>} : memref<4x16x32xbf16, #tpu.memory_space<vmem>>, vector<1x16x32xbf16>,
    %74 = vector.extract_strided_slice %39 {offsets = [0, 96], sizes = [16, 32], strides = [1, 1]} : vector<16x128xbf16> to vector<16x32xbf16>
    %c3_43 = arith.constant 3 : index
    %c0_44 = arith.constant 0 : index
    %c0_45 = arith.constant 0 : index
    %75 = vector.load %arg11[%c3_43, %c0_44, %c0_45] : memref<4x16x32xbf16, #tpu.memory_space<vmem>>, vector<1x16x32xbf16>
    %76 = vector.shape_cast %75 : vector<1x16x32xbf16> to vector<16x32xbf16>
    %77 = vector.shape_cast %74 : vector<16x32xbf16> to vector<1x16x32xbf16>
    tpu.vector_store %arg11[%c3_43, %c0_44, %c0_45], %77 {strides = array<i32>} : memref<4x16x32xbf16, #tpu.memory_space<vmem>>, vector<1x16x32xbf16>,
    %78 = vector.extract_strided_slice %45 {offsets = [0, 0], sizes = [16, 32], strides = [1, 1]} : vector<16x128xbf16> to vector<16x32xbf16>
    %c0_46 = arith.constant 0 : index
    %c0_47 = arith.constant 0 : index
    %c0_48 = arith.constant 0 : index
    %79 = vector.load %arg12[%c0_46, %c0_47, %c0_48] : memref<4x16x32xbf16, #tpu.memory_space<vmem>>, vector<1x16x32xbf16>
    %80 = vector.shape_cast %79 : vector<1x16x32xbf16> to vector<16x32xbf16>
    %81 = vector.shape_cast %78 : vector<16x32xbf16> to vector<1x16x32xbf16>
    tpu.vector_store %arg12[%c0_46, %c0_47, %c0_48], %81 {strides = array<i32>} : memref<4x16x32xbf16, #tpu.memory_space<vmem>>, vector<1x16x32xbf16>,
    %82 = vector.extract_strided_slice %45 {offsets = [0, 32], sizes = [16, 32], strides = [1, 1]} : vector<16x128xbf16> to vector<16x32xbf16>
    %c1_49 = arith.constant 1 : index
    %c0_50 = arith.constant 0 : index
    %c0_51 = arith.constant 0 : index
    %83 = vector.load %arg12[%c1_49, %c0_50, %c0_51] : memref<4x16x32xbf16, #tpu.memory_space<vmem>>, vector<1x16x32xbf16>
    %84 = vector.shape_cast %83 : vector<1x16x32xbf16> to vector<16x32xbf16>
    %85 = vector.shape_cast %82 : vector<16x32xbf16> to vector<1x16x32xbf16>
    tpu.vector_store %arg12[%c1_49, %c0_50, %c0_51], %85 {strides = array<i32>} : memref<4x16x32xbf16, #tpu.memory_space<vmem>>, vector<1x16x32xbf16>,
    %86 = vector.extract_strided_slice %45 {offsets = [0, 64], sizes = [16, 32], strides = [1, 1]} : vector<16x128xbf16> to vector<16x32xbf16>
    %c2_52 = arith.constant 2 : index
    %c0_53 = arith.constant 0 : index
    %c0_54 = arith.constant 0 : index
    %87 = vector.load %arg12[%c2_52, %c0_53, %c0_54] : memref<4x16x32xbf16, #tpu.memory_space<vmem>>, vector<1x16x32xbf16>
    %88 = vector.shape_cast %87 : vector<1x16x32xbf16> to vector<16x32xbf16>
    %89 = vector.shape_cast %86 : vector<16x32xbf16> to vector<1x16x32xbf16>
    tpu.vector_store %arg12[%c2_52, %c0_53, %c0_54], %89 {strides = array<i32>} : memref<4x16x32xbf16, #tpu.memory_space<vmem>>, vector<1x16x32xbf16>,
    %90 = vector.extract_strided_slice %45 {offsets = [0, 96], sizes = [16, 32], strides = [1, 1]} : vector<16x128xbf16> to vector<16x32xbf16>
    %c3_55 = arith.constant 3 : index
    %c0_56 = arith.constant 0 : index
    %c0_57 = arith.constant 0 : index
    %91 = vector.load %arg12[%c3_55, %c0_56, %c0_57] : memref<4x16x32xbf16, #tpu.memory_space<vmem>>, vector<1x16x32xbf16>
    %92 = vector.shape_cast %91 : vector<1x16x32xbf16> to vector<16x32xbf16>
    %93 = vector.shape_cast %90 : vector<16x32xbf16> to vector<1x16x32xbf16>
    tpu.vector_store %arg12[%c3_55, %c0_56, %c0_57], %93 {strides = array<i32>} : memref<4x16x32xbf16, #tpu.memory_space<vmem>>, vector<1x16x32xbf16>,
    return
  }
  func.func @transform_0(%arg0: i32) -> (i32, i32) {
    %c0_i32 = arith.constant 0 : i32
    %c0_i32_0 = arith.constant 0 : i32
    return %arg0, %c0_i32 : i32, i32
  }
  func.func @transform_1(%arg0: i32) -> (i32, i32) {
    %c0_i32 = arith.constant 0 : i32
    %c0_i32_0 = arith.constant 0 : i32
    %c0_i32_1 = arith.constant 0 : i32
    return %c0_i32, %c0_i32_0 : i32, i32
  }
  func.func @transform_2(%arg0: i32) -> (i32, i32) {
    %c0_i32 = arith.constant 0 : i32
    %c0_i32_0 = arith.constant 0 : i32
    %c0_i32_1 = arith.constant 0 : i32
    return %c0_i32, %c0_i32_0 : i32, i32
  }
  func.func @transform_3(%arg0: i32) -> (i32, i32) {
    %c0_i32 = arith.constant 0 : i32
    %c0_i32_0 = arith.constant 0 : i32
    %c0_i32_1 = arith.constant 0 : i32
    return %c0_i32, %c0_i32_0 : i32, i32
  }
  func.func @transform_4(%arg0: i32) -> (i32, i32) {
    %c0_i32 = arith.constant 0 : i32
    %c0_i32_0 = arith.constant 0 : i32
    %c0_i32_1 = arith.constant 0 : i32
    return %c0_i32, %c0_i32_0 : i32, i32
  }
  func.func @transform_5(%arg0: i32) -> (i32, i32) {
    %c0_i32 = arith.constant 0 : i32
    %c0_i32_0 = arith.constant 0 : i32
    %c0_i32_1 = arith.constant 0 : i32
    return %c0_i32, %c0_i32_0 : i32, i32
  }
  func.func @transform_6(%arg0: i32) -> (i32, i32) {
    %c0_i32 = arith.constant 0 : i32
    %c0_i32_0 = arith.constant 0 : i32
    %c0_i32_1 = arith.constant 0 : i32
    return %c0_i32, %c0_i32_0 : i32, i32
  }
  func.func @transform_7(%arg0: i32) -> (i32, i32) {
    %c0_i32 = arith.constant 0 : i32
    %c0_i32_0 = arith.constant 0 : i32
    %c0_i32_1 = arith.constant 0 : i32
    return %c0_i32, %c0_i32_0 : i32, i32
  }
  func.func @transform_8(%arg0: i32) -> (i32, i32) {
    %c0_i32 = arith.constant 0 : i32
    %c0_i32_0 = arith.constant 0 : i32
    %c0_i32_1 = arith.constant 0 : i32
    return %c0_i32, %c0_i32_0 : i32, i32
  }
  func.func @transform_9(%arg0: i32) -> (i32, i32, i32) {
    %c0_i32 = arith.constant 0 : i32
    %c0_i32_0 = arith.constant 0 : i32
    %c0_i32_1 = arith.constant 0 : i32
    return %c0_i32, %arg0, %c0_i32_0 : i32, i32, i32
  }
  func.func @transform_10(%arg0: i32) -> (i32, i32, i32) {
    %c0_i32 = arith.constant 0 : i32
    %c0_i32_0 = arith.constant 0 : i32
    %c0_i32_1 = arith.constant 0 : i32
    return %c0_i32, %arg0, %c0_i32_0 : i32, i32, i32
  }
  func.func @transform_11(%arg0: i32) -> (i32, i32, i32) {
    %c0_i32 = arith.constant 0 : i32
    %c0_i32_0 = arith.constant 0 : i32
    %c0_i32_1 = arith.constant 0 : i32
    return %c0_i32, %arg0, %c0_i32_0 : i32, i32, i32
  }
}

module attributes {stable_mosaic.version = 11 : i64} {
  func.func @layernorm_kernel(%arg0: i32, %arg1: memref<16x128xf32, #tpu.memory_space<vmem>>, %arg2: memref<1x128xf32, #tpu.memory_space<vmem>>, %arg3: memref<1x128xf32, #tpu.memory_space<vmem>>, %arg4: memref<16x128xf32, #tpu.memory_space<vmem>>) attributes {dimension_semantics = [#tpu.dimension_semantics<parallel>], iteration_bounds = array<i64: 2>, scalar_prefetch = 0 : i64, scratch_operands = 0 : i64, tpu.core_type = #tpu.core_type<tc>, window_params = [{transform_indices = @transform_0, window_bounds = array<i64: 16, 128>}, {pipeline_mode = #tpu.pipeline_mode<synchronous>, transform_indices = @transform_1, window_bounds = array<i64: 1, 128>}, {pipeline_mode = #tpu.pipeline_mode<synchronous>, transform_indices = @transform_2, window_bounds = array<i64: 1, 128>}, {transform_indices = @transform_3, window_bounds = array<i64: 16, 128>}]} {
    %c0 = arith.constant 0 : index
    %c0_0 = arith.constant 0 : index
    %0 = vector.load %arg1[%c0, %c0_0] : memref<16x128xf32, #tpu.memory_space<vmem>>, vector<16x128xf32>
    %c0_1 = arith.constant 0 : index
    %c0_2 = arith.constant 0 : index
    %1 = vector.load %arg2[%c0_1, %c0_2] : memref<1x128xf32, #tpu.memory_space<vmem>>, vector<1x128xf32>
    %c0_3 = arith.constant 0 : index
    %c0_4 = arith.constant 0 : index
    %2 = vector.load %arg3[%c0_3, %c0_4] : memref<1x128xf32, #tpu.memory_space<vmem>>, vector<1x128xf32>
    %cst = arith.constant dense<0.000000e+00> : vector<16xf32>
    %3 = vector.multi_reduction <add>, %0, %cst [1] : vector<16x128xf32> to vector<16xf32>
    %4 = vector.shape_cast %3 : vector<16xf32> to vector<16x1xf32>
    %cst_5 = arith.constant 1.280000e+02 : f32
    %5 = vector.broadcast %cst_5 : f32 to vector<16x1xf32>
    %6 = arith.divf %4, %5 : vector<16x1xf32>
    %7 = vector.broadcast %6 : vector<16x1xf32> to vector<16x128xf32>
    %8 = arith.subf %0, %7 : vector<16x128xf32>
    %9 = arith.mulf %8, %8 : vector<16x128xf32>
    %cst_6 = arith.constant dense<0.000000e+00> : vector<16xf32>
    %10 = vector.multi_reduction <add>, %9, %cst_6 [1] : vector<16x128xf32> to vector<16xf32>
    %11 = vector.shape_cast %10 : vector<16xf32> to vector<16x1xf32>
    %cst_7 = arith.constant 1.280000e+02 : f32
    %12 = vector.broadcast %cst_7 : f32 to vector<16x1xf32>
    %13 = arith.divf %11, %12 : vector<16x1xf32>
    %14 = math.sqrt %13 : vector<16x1xf32>
    %cst_8 = arith.constant 9.99999997E-7 : f32
    %15 = vector.broadcast %cst_8 : f32 to vector<16x1xf32>
    %16 = arith.addf %14, %15 : vector<16x1xf32>
    %cst_9 = arith.constant 1.000000e+00 : f32
    %17 = vector.broadcast %cst_9 : f32 to vector<16x1xf32>
    %18 = arith.divf %17, %16 : vector<16x1xf32>
    %19 = vector.broadcast %6 : vector<16x1xf32> to vector<16x128xf32>
    %20 = arith.subf %0, %19 : vector<16x128xf32>
    %21 = vector.broadcast %18 : vector<16x1xf32> to vector<16x128xf32>
    %22 = arith.mulf %20, %21 : vector<16x128xf32>
    %23 = vector.broadcast %1 : vector<1x128xf32> to vector<16x128xf32>
    %24 = arith.mulf %23, %22 : vector<16x128xf32>
    %25 = vector.broadcast %2 : vector<1x128xf32> to vector<16x128xf32>
    %26 = arith.addf %24, %25 : vector<16x128xf32>
    %c0_10 = arith.constant 0 : index
    %c0_11 = arith.constant 0 : index
    %27 = vector.load %arg4[%c0_10, %c0_11] : memref<16x128xf32, #tpu.memory_space<vmem>>, vector<16x128xf32>
    tpu.vector_store %arg4[%c0_10, %c0_11], %26 {strides = array<i32>} : memref<16x128xf32, #tpu.memory_space<vmem>>, vector<16x128xf32>,
    return
  }
  func.func @transform_0(%arg0: i32) -> (i32, i32) {
    %c0_i32 = arith.constant 0 : i32
    %c0_i32_0 = arith.constant 0 : i32
    return %arg0, %c0_i32 : i32, i32
  }
  func.func @transform_1(%arg0: i32) -> (i32, i32) {
    %c0_i32 = arith.constant 0 : i32
    %c0_i32_0 = arith.constant 0 : i32
    %c0_i32_1 = arith.constant 0 : i32
    return %c0_i32, %c0_i32_0 : i32, i32
  }
  func.func @transform_2(%arg0: i32) -> (i32, i32) {
    %c0_i32 = arith.constant 0 : i32
    %c0_i32_0 = arith.constant 0 : i32
    %c0_i32_1 = arith.constant 0 : i32
    return %c0_i32, %c0_i32_0 : i32, i32
  }
  func.func @transform_3(%arg0: i32) -> (i32, i32) {
    %c0_i32 = arith.constant 0 : i32
    %c0_i32_0 = arith.constant 0 : i32
    return %arg0, %c0_i32 : i32, i32
  }
}

module attributes {stable_mosaic.version = 11 : i64} {
  func.func @ln_ff_kernel(%arg0: i32, %arg1: i32, %arg2: memref<16x128xf32, #tpu.memory_space<vmem>>, %arg3: memref<1x128xf32, #tpu.memory_space<vmem>>, %arg4: memref<1x128xf32, #tpu.memory_space<vmem>>, %arg5: memref<128x256xbf16, #tpu.memory_space<vmem>>, %arg6: memref<1x256xf32, #tpu.memory_space<vmem>>, %arg7: memref<256x128xbf16, #tpu.memory_space<vmem>>, %arg8: memref<1x128xf32, #tpu.memory_space<vmem>>, %arg9: memref<16x128xf32, #tpu.memory_space<vmem>>, %arg10: memref<16x128xbf16, #tpu.memory_space<vmem>>, %arg11: memref<16x128xf32, #tpu.memory_space<vmem>>) attributes {dimension_semantics = [#tpu.dimension_semantics<parallel>, #tpu.dimension_semantics<arbitrary>], iteration_bounds = array<i64: 2, 1>, scalar_prefetch = 0 : i64, scratch_operands = 2 : i64, tpu.core_type = #tpu.core_type<tc>, window_params = [{transform_indices = @transform_0, window_bounds = array<i64: 16, 128>}, {pipeline_mode = #tpu.pipeline_mode<synchronous>, transform_indices = @transform_1, window_bounds = array<i64: 1, 128>}, {pipeline_mode = #tpu.pipeline_mode<synchronous>, transform_indices = @transform_2, window_bounds = array<i64: 1, 128>}, {transform_indices = @transform_3, window_bounds = array<i64: 128, 256>}, {transform_indices = @transform_4, window_bounds = array<i64: 1, 256>}, {transform_indices = @transform_5, window_bounds = array<i64: 256, 128>}, {pipeline_mode = #tpu.pipeline_mode<synchronous>, transform_indices = @transform_6, window_bounds = array<i64: 1, 128>}, {transform_indices = @transform_7, window_bounds = array<i64: 16, 128>}]} {
    %c0_i32 = arith.constant 0 : i32
    %0 = arith.cmpi eq, %arg1, %c0_i32 : i32
    %1 = arith.extui %0 : i1 to i32
    %c0_i32_0 = arith.constant 0 : i32
    %2 = arith.cmpi ne, %1, %c0_i32_0 : i32
    scf.if %2 {
      %c0_16 = arith.constant 0 : index
      %c0_17 = arith.constant 0 : index
      %20 = vector.load %arg2[%c0_16, %c0_17] : memref<16x128xf32, #tpu.memory_space<vmem>>, vector<16x128xf32>
      %c0_18 = arith.constant 0 : index
      %c0_19 = arith.constant 0 : index
      %21 = vector.load %arg3[%c0_18, %c0_19] : memref<1x128xf32, #tpu.memory_space<vmem>>, vector<1x128xf32>
      %c0_20 = arith.constant 0 : index
      %c0_21 = arith.constant 0 : index
      %22 = vector.load %arg4[%c0_20, %c0_21] : memref<1x128xf32, #tpu.memory_space<vmem>>, vector<1x128xf32>
      %cst_22 = arith.constant dense<0.000000e+00> : vector<16xf32>
      %23 = vector.multi_reduction <add>, %20, %cst_22 [1] : vector<16x128xf32> to vector<16xf32>
      %24 = vector.shape_cast %23 : vector<16xf32> to vector<16x1xf32>
      %cst_23 = arith.constant 1.280000e+02 : f32
      %25 = vector.broadcast %cst_23 : f32 to vector<16x1xf32>
      %26 = arith.divf %24, %25 : vector<16x1xf32>
      %27 = vector.broadcast %26 : vector<16x1xf32> to vector<16x128xf32>
      %28 = arith.subf %20, %27 : vector<16x128xf32>
      %29 = arith.mulf %28, %28 : vector<16x128xf32>
      %cst_24 = arith.constant dense<0.000000e+00> : vector<16xf32>
      %30 = vector.multi_reduction <add>, %29, %cst_24 [1] : vector<16x128xf32> to vector<16xf32>
      %31 = vector.shape_cast %30 : vector<16xf32> to vector<16x1xf32>
      %cst_25 = arith.constant 1.280000e+02 : f32
      %32 = vector.broadcast %cst_25 : f32 to vector<16x1xf32>
      %33 = arith.divf %31, %32 : vector<16x1xf32>
      %34 = math.sqrt %33 : vector<16x1xf32>
      %cst_26 = arith.constant 9.99999997E-7 : f32
      %35 = vector.broadcast %cst_26 : f32 to vector<16x1xf32>
      %36 = arith.addf %34, %35 : vector<16x1xf32>
      %cst_27 = arith.constant 1.000000e+00 : f32
      %37 = vector.broadcast %cst_27 : f32 to vector<16x1xf32>
      %38 = arith.divf %37, %36 : vector<16x1xf32>
      %39 = vector.broadcast %26 : vector<16x1xf32> to vector<16x128xf32>
      %40 = arith.subf %20, %39 : vector<16x128xf32>
      %41 = vector.broadcast %38 : vector<16x1xf32> to vector<16x128xf32>
      %42 = arith.mulf %40, %41 : vector<16x128xf32>
      %43 = vector.broadcast %21 : vector<1x128xf32> to vector<16x128xf32>
      %44 = arith.mulf %43, %42 : vector<16x128xf32>
      %45 = vector.broadcast %22 : vector<1x128xf32> to vector<16x128xf32>
      %46 = arith.addf %44, %45 : vector<16x128xf32>
      %47 = arith.truncf %46 : vector<16x128xf32> to vector<16x128xbf16>
      %c0_28 = arith.constant 0 : index
      %c0_29 = arith.constant 0 : index
      %48 = vector.load %arg10[%c0_28, %c0_29] : memref<16x128xbf16, #tpu.memory_space<vmem>>, vector<16x128xbf16>
      tpu.vector_store %arg10[%c0_28, %c0_29], %47 {strides = array<i32>} : memref<16x128xbf16, #tpu.memory_space<vmem>>, vector<16x128xbf16>,
      %c0_30 = arith.constant 0 : index
      %c0_31 = arith.constant 0 : index
      %49 = vector.load %arg8[%c0_30, %c0_31] : memref<1x128xf32, #tpu.memory_space<vmem>>, vector<1x128xf32>
      %50 = vector.broadcast %49 : vector<1x128xf32> to vector<16x128xf32>
      %51 = arith.addf %20, %50 : vector<16x128xf32>
      %c0_32 = arith.constant 0 : index
      %c0_33 = arith.constant 0 : index
      %52 = vector.load %arg11[%c0_32, %c0_33] : memref<16x128xf32, #tpu.memory_space<vmem>>, vector<16x128xf32>
      tpu.vector_store %arg11[%c0_32, %c0_33], %51 {strides = array<i32>} : memref<16x128xf32, #tpu.memory_space<vmem>>, vector<16x128xf32>,
    } else {
    }
    %c0 = arith.constant 0 : index
    %c0_1 = arith.constant 0 : index
    %3 = vector.load %arg10[%c0, %c0_1] : memref<16x128xbf16, #tpu.memory_space<vmem>>, vector<16x128xbf16>
    %c0_2 = arith.constant 0 : index
    %c0_3 = arith.constant 0 : index
    %4 = vector.load %arg5[%c0_2, %c0_3] : memref<128x256xbf16, #tpu.memory_space<vmem>>, vector<128x256xbf16>
    %cst = arith.constant dense<0.000000e+00> : vector<16x256xf32>
    %5 = tpu.matmul %3, %4, %cst {dimension_numbers = #tpu.dot_dimension_numbers<[1], [0], [0], [1], [0, 0, 1, 1], [], []>} : vector<16x128xbf16>, vector<128x256xbf16>, vector<16x256xf32> -> vector<16x256xf32>
    %c0_4 = arith.constant 0 : index
    %c0_5 = arith.constant 0 : index
    %6 = vector.load %arg6[%c0_4, %c0_5] : memref<1x256xf32, #tpu.memory_space<vmem>>, vector<1x256xf32>
    %7 = vector.broadcast %6 : vector<1x256xf32> to vector<16x256xf32>
    %8 = arith.addf %5, %7 : vector<16x256xf32>
    %cst_6 = arith.constant 0.000000e+00 : f32
    %9 = vector.broadcast %cst_6 : f32 to vector<16x256xf32>
    %10 = arith.maximumf %8, %9 : vector<16x256xf32>
    %11 = arith.truncf %10 : vector<16x256xf32> to vector<16x256xbf16>
    %c0_7 = arith.constant 0 : index
    %c0_8 = arith.constant 0 : index
    %12 = vector.load %arg11[%c0_7, %c0_8] : memref<16x128xf32, #tpu.memory_space<vmem>>, vector<16x128xf32>
    %c0_9 = arith.constant 0 : index
    %c0_10 = arith.constant 0 : index
    %13 = vector.load %arg7[%c0_9, %c0_10] : memref<256x128xbf16, #tpu.memory_space<vmem>>, vector<256x128xbf16>
    %cst_11 = arith.constant dense<0.000000e+00> : vector<16x128xf32>
    %14 = tpu.matmul %11, %13, %cst_11 {dimension_numbers = #tpu.dot_dimension_numbers<[1], [0], [0], [1], [0, 0, 1, 1], [], []>} : vector<16x256xbf16>, vector<256x128xbf16>, vector<16x128xf32> -> vector<16x128xf32>
    %15 = arith.addf %12, %14 : vector<16x128xf32>
    %c0_12 = arith.constant 0 : index
    %c0_13 = arith.constant 0 : index
    %16 = vector.load %arg11[%c0_12, %c0_13] : memref<16x128xf32, #tpu.memory_space<vmem>>, vector<16x128xf32>
    tpu.vector_store %arg11[%c0_12, %c0_13], %15 {strides = array<i32>} : memref<16x128xf32, #tpu.memory_space<vmem>>, vector<16x128xf32>,
    %c0_i32_14 = arith.constant 0 : i32
    %17 = arith.cmpi eq, %arg1, %c0_i32_14 : i32
    %18 = arith.extui %17 : i1 to i32
    %c0_i32_15 = arith.constant 0 : i32
    %19 = arith.cmpi ne, %18, %c0_i32_15 : i32
    scf.if %19 {
      %c0_16 = arith.constant 0 : index
      %c0_17 = arith.constant 0 : index
      %20 = vector.load %arg11[%c0_16, %c0_17] : memref<16x128xf32, #tpu.memory_space<vmem>>, vector<16x128xf32>
      %c0_18 = arith.constant 0 : index
      %c0_19 = arith.constant 0 : index
      %21 = vector.load %arg9[%c0_18, %c0_19] : memref<16x128xf32, #tpu.memory_space<vmem>>, vector<16x128xf32>
      tpu.vector_store %arg9[%c0_18, %c0_19], %20 {strides = array<i32>} : memref<16x128xf32, #tpu.memory_space<vmem>>, vector<16x128xf32>,
    } else {
    }
    return
  }
  func.func @transform_0(%arg0: i32, %arg1: i32) -> (i32, i32) {
    %c0_i32 = arith.constant 0 : i32
    %c0_i32_0 = arith.constant 0 : i32
    return %arg0, %c0_i32 : i32, i32
  }
  func.func @transform_1(%arg0: i32, %arg1: i32) -> (i32, i32) {
    %c0_i32 = arith.constant 0 : i32
    %c0_i32_0 = arith.constant 0 : i32
    %c0_i32_1 = arith.constant 0 : i32
    return %c0_i32, %c0_i32_0 : i32, i32
  }
  func.func @transform_2(%arg0: i32, %arg1: i32) -> (i32, i32) {
    %c0_i32 = arith.constant 0 : i32
    %c0_i32_0 = arith.constant 0 : i32
    %c0_i32_1 = arith.constant 0 : i32
    return %c0_i32, %c0_i32_0 : i32, i32
  }
  func.func @transform_3(%arg0: i32, %arg1: i32) -> (i32, i32) {
    %c0_i32 = arith.constant 0 : i32
    %c0_i32_0 = arith.constant 0 : i32
    return %c0_i32, %arg1 : i32, i32
  }
  func.func @transform_4(%arg0: i32, %arg1: i32) -> (i32, i32) {
    %c0_i32 = arith.constant 0 : i32
    %c0_i32_0 = arith.constant 0 : i32
    return %c0_i32, %arg1 : i32, i32
  }
  func.func @transform_5(%arg0: i32, %arg1: i32) -> (i32, i32) {
    %c0_i32 = arith.constant 0 : i32
    %c0_i32_0 = arith.constant 0 : i32
    return %arg1, %c0_i32 : i32, i32
  }
  func.func @transform_6(%arg0: i32, %arg1: i32) -> (i32, i32) {
    %c0_i32 = arith.constant 0 : i32
    %c0_i32_0 = arith.constant 0 : i32
    %c0_i32_1 = arith.constant 0 : i32
    return %c0_i32, %c0_i32_0 : i32, i32
  }
  func.func @transform_7(%arg0: i32, %arg1: i32) -> (i32, i32) {
    %c0_i32 = arith.constant 0 : i32
    %c0_i32_0 = arith.constant 0 : i32
    return %arg0, %c0_i32 : i32, i32
  }
}

</mosaic_0001>

<bundles_post_ra>
// kernel: decoder_forward.15
= control target key start
LH: loop header
LB: loop body
LE: loop exit
PB: predicated region body
PF: predicated region fallthrough
CT: control target
= control target key end

     0   :  { %s730_s18 = smov 0   ;;  %s732_s19 = smov 0   ;;  %s835_s0 = inlined_call_operand.vmem [shape: f32[32,128], index: 0, kind: input, shape index: {}]   ;;  %s836_s1 = inlined_call_operand.vmem [shape: f32[1,128], index: 1, kind: input, shape index: {}]   ;;  %s837_s2 = inlined_call_operand.vmem [shape: f32[1,128], index: 2, kind: input, shape index: {}]   ;;  %s838_s3 = inlined_call_operand.vmem [shape: bf16[128,128], index: 3, kind: input, shape index: {}]   ;;  %s839_s4 = inlined_call_operand.vmem [shape: f32[1,128], index: 4, kind: input, shape index: {}]   ;;  %s840_s5 = inlined_call_operand.vmem [shape: bf16[4,32,32], index: 5, kind: output, shape index: {}]  }
   0x1   :  { %s734_s20 = smov 0  }
   0x2 LB: > { %s743_s21 = sadd.s32 4294967295, %s693_s20   ;;  %s745_s22 = sadd.s32 1, %s693_s20   ;;  %s693_s20 = sphi %s734_s20, %s844_s20   ;;  %s689_s19 = sphi %s732_s19, %s843_s19   ;;  %s685_s18 = sphi %s730_s18, %s842_s18  }
   0x3   : > { %s129_s23 = ssub.s32 %s693_s20, %s745_s22  ;;  %s132_s24 = sadd.s32 1, %s689_s19 }
   0x4   : > { %p130_p0 = scmp.eq.s32.totalorder %s129_s23, 0  ;;  %p142_p1 = scmp.ne.s32.totalorder %s689_s19, %s685_s18 }
   0x5   : > { %p143_p2 = scmp.eq.s32.totalorder %s743_s21, 1  ;;  %p566_p3 = scmp.ge.s32.totalorder %s693_s20, 1 }
   0x6   : > { %s753_s25 = scalar_select %p130_p0, %s689_s19, %s132_s24  }
   0x7   : > { %p755_p4 = por %p143_p2, %p142_p1  ;;  %p188_p5 = scmp.lt.s32.totalorder %s693_s20, 3 }
   0x9   : > { %p189_p6 = pnand %p566_p3, %p188_p5 }
   0xa   : > { %s568_s27 = sshll.u32 (!%p189_p6), %s743_s21, 1  ;;  %s212_s8 = sand.u32 (!%p189_p6), 1, %s685_s18  }
   0xb   : > { %192 = sbr.rel (%p189_p6) target bundleno = 683 (0x2ab), region = 40  ;;  %p216_p7 = scmp.lt.s32.totalorder (!%p189_p6), %s568_s27, 3 }
   0xc   : > { %s567_s9 = sshll.u32 (!%p189_p6), %s212_s8, 5  ;;  %s697_s18 = smov (!%p189_p6), 64  }
   0xd   : > { %s797_s12 = scalar_lea.vmem (!%p189_p6), [#allocation2], %s567_s9  ;;  %s698_s13 = smov (!%p189_p6), 96  }
   0xe   : > { %s699_s14 = smov (!%p189_p6), 32  }
  0x10   : > { %s846_s27 = smov (!%p216_p7, %s568_s27), 3  ;;  %v655_v10 = vld [vmem:[%s838_s3 + $0x38] sm:$0xff]   ;;  %v695_v11 = vmov 0.0   ;;  %v656_v12 = vld [vmem:[%s838_s3 + $0x30] sm:$0xff]   ;;  %v657_v13 = vld [vmem:[%s838_s3 + $0x28] sm:$0xff]   ;;  %vm696_vm0 = vmmov 0  }
  0x11   : > { %s569_s28 = sshll.u32 %s846_s27, 3  ;;  %606 = vmatprep.subr.bf16.mxu0 %v695_v11  ;;  %v658_v14 = vld [vmem:[%s838_s3 + $0x20] sm:$0xff]   ;;  %622 = vmatprep.mubr.msk.bf16.mxu0 %vm696_vm0, %v695_v11  ;;  %v659_v15 = vld [vmem:[%s838_s3 + $0x18] sm:$0xff]   ;;  %v660_v16 = vld [vmem:[%s838_s3 + $0x10] sm:$0xff]   ;;  %vm403_vm5 = vcmask 257024   ;;  %s596_s15 = sshll.u32 (%p755_p4), %s743_s21, 3 }
  0x12   : > { %s219_s6 = scalar_lea.vmem %s835_s0, %s569_s28  ;;  %607 = vmatpush3.bf16.msra.mxu0 %v655_v10  ;;  %v661_v17 = vld [vmem:[%s838_s3 + $0x8] sm:$0xff]   ;;  %v662_v18 = vld [vmem:[%s838_s3] sm:$0xff]   ;;  %s442_s20 = scalar_lea.vmem (%p755_p4), %s840_s5, %s596_s15 }
  0x13   : > { %v223_v0 = vld [vmem:[%s219_s6] sm:$0xff]  ;;  %v224_v1 = vld [vmem:[%s219_s6 + $0x8] sm:$0xff]  ;;  %608 = vmatprep.subr.bf16.mxu0 %v695_v11 }
  0x14   : > { %227 = vadd.xlane.f32.xlu0 %v223_v0  ;;  %v570_v37 = vld [vmem:[%s836_s1] ss:$0 sm:$0xff] }
  0x15   : > { %v571_v41 = vld [vmem:[%s837_s2] ss:$0 sm:$0xff] }
  0x16   : > { %609 = vmatpush3.bf16.msra.mxu0 %v656_v12  ;;  %v572_v46 = vld [vmem:[%s839_s4] ss:$0 sm:$0xff] }
  0x17   : > { %610 = vmatprep.subr.bf16.mxu0 %v695_v11 }
  0x18   : > { %229 = vadd.xlane.f32.xlu0 %v224_v1 }
  0x1a   : > { %611 = vmatpush3.bf16.msra.mxu0 %v657_v13 }
  0x1b   : > { %612 = vmatprep.subr.bf16.mxu0 %v695_v11 }
  0x1e   : > { %613 = vmatpush3.bf16.msra.mxu0 %v658_v14 }
  0x1f   : > { %614 = vmatprep.subr.bf16.mxu0 %v695_v11 }
  0x22   : > { %615 = vmatpush3.bf16.msra.mxu0 %v659_v15 }
  0x23   : > { %616 = vmatprep.subr.bf16.mxu0 %v695_v11 }
  0x26   : > { %617 = vmatpush3.bf16.msra.mxu0 %v660_v16 }
  0x27   : > { %618 = vmatprep.subr.bf16.mxu0 %v695_v11 }
  0x2a   : > { %619 = vmatpush3.bf16.msra.mxu0 %v661_v17 }
  0x2b   : > { %620 = vmatprep.subr.bf16.mxu0 %v695_v11 }
  0x2e   : > { %621 = vmatpush3.bf16.msra.mxu0 %v662_v18 }
  0x9d   : > { %v228_v2 = vpop.xlane.xlu0 %227 }
  0x9e   : > { %v232_v3 = vmul.f32 0.0078125, %v228_v2 }
  0xa0   : > { %v234_v4 = vsub.f32 %v223_v0, %v232_v3 }
  0xa1   : > { %v230_v5 = vpop.xlane.xlu0 %229 }
  0xa2   : > { %v233_v6 = vmul.f32 0.0078125, %v230_v5  ;;  %v236_v7 = vmul.f32 %v234_v4, %v234_v4 }
  0xa4   : > { %v235_v8 = vsub.f32 %v224_v1, %v233_v6  ;;  %238 = vadd.xlane.f32.xlu1 %v236_v7 }
  0xa6   : > { %v237_v9 = vmul.f32 %v235_v8, %v235_v8 }
  0xa8   : > { %240 = vadd.xlane.f32.xlu1 %v237_v9 }
 0x12d   : > { %v239_v19 = vpop.xlane.xlu1 %238 }
 0x12e   : > { %v242_v20 = vmul.f32 0.0078125, %v239_v19 }
 0x130   : > { %663 = vrsqrt.f32 %v242_v20  ;;  %vm246_vm1 = vcmp.eq.f32.partialorder %v242_v20, inf  ;;  %v249_v25 = vand.u32 2147483648, %v242_v20  ;;  %vm248_vm2 = vcmp.eq.f32.partialorder %v242_v20, 0.0 }
 0x131   : > { %v241_v21 = vpop.xlane.xlu1 %240 }
 0x132   : > { %v243_v22 = vmul.f32 0.0078125, %v241_v21 }
 0x134   : > { %665 = vrsqrt.f32 %v243_v22  ;;  %vm253_vm3 = vcmp.eq.f32.partialorder %v243_v22, inf  ;;  %v256_v31 = vand.u32 2147483648, %v243_v22  ;;  %vm255_vm4 = vcmp.eq.f32.partialorder %v243_v22, 0.0 }
 0x13d   : > { %v664_v23 = vpop.eup %663 }
 0x13e   : > { %v245_v24 = vmul.f32 %v664_v23, %v242_v20 }
 0x140   : > { %v247_v26 = vsel %vm246_vm1, %v242_v20, %v245_v24 }
 0x141   : > { %v666_v27 = vpop.eup %665  ;;  %v250_v28 = vsel %vm248_vm2, %v249_v25, %v247_v26 }
 0x142   : > { %v258_v29 = vadd.f32 1e-06, %v250_v28  ;;  %v252_v30 = vmul.f32 %v666_v27, %v243_v22 }
 0x144   : > { %667 = vrcp.f32 %v258_v29  ;;  %v254_v32 = vsel %vm253_vm3, %v243_v22, %v252_v30 }
 0x145   : > { %v257_v33 = vsel %vm255_vm4, %v256_v31, %v254_v32 }
 0x146   : > { %v259_v34 = vadd.f32 1e-06, %v257_v33 }
 0x148   : > { %669 = vrcp.f32 %v259_v34 }
 0x151   : > { %v668_v35 = vpop.eup %667 }
 0x152   : > { %v264_v36 = vmul.f32 %v668_v35, %v234_v4 }
 0x154   : > { %v272_v40 = vmul.f32 %v570_v37, %v264_v36 }
 0x155   : > { %v670_v38 = vpop.eup %669 }
 0x156   : > { %v265_v39 = vmul.f32 %v670_v38, %v235_v8  ;;  %v280_v43 = vadd.f32 %v571_v41, %v272_v40 }
 0x158   : > { %v273_v42 = vmul.f32 %v570_v37, %v265_v39 }
 0x15a   : > { %v281_v44 = vadd.f32 %v571_v41, %v273_v42 }
 0x15c   : > { %v282_v45 = vpack.c.bf16 %v281_v44, %v280_v43 }
 0x15e   : > { %623 = vmatmul.mubr.bf16.vlgmr.msra.gmra.mxu0 %v282_v45 }
 0x21e   : > { %v388_v47 = vpop.f32.mrf.mxu0 }
 0x21f   : > { %v389_v48 = vadd.f32 %v572_v46, %v388_v47 }
 0x220   : > { %v624_v49 = vpop.f32.mrf.mxu0 }
 0x221   : > { %v594_v50 = vpack.c.bf16 %v389_v48, %v389_v48 }
 0x222   : > { %v391_v51 = vpop.f32.mrf.mxu0 }
 0x223   : > { %404 = vst.msk [vmem:[%s797_s12] sm:$0xf] %vm403_vm5, %v594_v50  ;;  %v392_v52 = vadd.f32 %v572_v46, %v391_v51  ;;  %415 = vrot.lane.b32.xlu1 %v594_v50, %s697_s18  ;;  %406 = vrot.lane.b32.xlu0 %v594_v50, %s698_s13 }
 0x224   : > { %v625_v53 = vpop.f32.mrf.mxu0 }
 0x225   : > { %v595_v54 = vpack.c.bf16 %v392_v52, %v392_v52 }
 0x227   : > { %405 = vst.msk [vmem:[%s797_s12 + $0x4] sm:$0xf] %vm403_vm5, %v595_v54  ;;  %424 = vrot.lane.b32.xlu0 %v594_v50, %s699_s14  ;;  %408 = vrot.lane.b32.xlu1 %v595_v54, %s698_s13 }
 0x22b   : > { %417 = vrot.lane.b32.xlu1 %v595_v54, %s697_s18 }
 0x22e   : > { %v459_v61 = vld [vmem:[%s797_s12] sm:$0xff] (%p755_p4)  }
 0x22f   : > { %426 = vrot.lane.b32.xlu1 %v595_v54, %s699_s14  ;;  %460 = vst [vmem:[%s442_s20] sm:$0xff] (%p755_p4), %v459_v61  }
 0x295   : > { %v416_v55 = vpop.permute.xlu1 %415  ;;  %v407_v56 = vpop.permute.xlu0 %406 }
 0x296   : > { %585 = vst.msk [vmem:[%s797_s12 + $0x10] sm:$0xf] %vm403_vm5, %v416_v55  ;;  %583 = vst.msk [vmem:[%s797_s12 + $0x8] sm:$0xf] %vm403_vm5, %v407_v56 }
 0x299   : > { %v425_v57 = vpop.permute.xlu0 %424  ;;  %v409_v58 = vpop.permute.xlu1 %408 }
 0x29a   : > { %587 = vst.msk [vmem:[%s797_s12 + $0x18] sm:$0xf] %vm403_vm5, %v425_v57  ;;  %584 = vst.msk [vmem:[%s797_s12 + $0xc] sm:$0xf] %vm403_vm5, %v409_v58 }
 0x29d   : > { %v418_v59 = vpop.permute.xlu1 %417 }
 0x29e   : > { %586 = vst.msk [vmem:[%s797_s12 + $0x14] sm:$0xf] %vm403_vm5, %v418_v59  ;;  %439 = sbr.rel (!%p755_p4) target bundleno = 683 (0x2ab), region = 44 }
 0x2a1   : > { %v427_v60 = vpop.permute.xlu1 %426  ;;  %v463_v62 = vld [vmem:[%s797_s12 + $0x8] sm:$0xff] (%p755_p4)  }
 0x2a2   : > { %588 = vst.msk [vmem:[%s797_s12 + $0x1c] sm:$0xf] %vm403_vm5, %v427_v60  ;;  %464 = vst [vmem:[%s442_s20 + $0x10] sm:$0xff] (%p755_p4), %v463_v62  }
 0x2a5   : > { %v467_v63 = vld [vmem:[%s797_s12 + $0x10] sm:$0xff]  }
 0x2a6   : > { %468 = vst [vmem:[%s442_s20 + $0x20] sm:$0xff] %v467_v63  }
 0x2a9   : > { %v471_v0 = vld [vmem:[%s797_s12 + $0x18] sm:$0xff]  }
 0x2aa   : > { %472 = vst [vmem:[%s442_s20 + $0x30] sm:$0xff] %v471_v0  }
 0x2ab PF: > { %p12_p8 = scmp.ge.s32.totalorder %s745_s22, 4   ;;  %s842_s18 = smov %s689_s19 }
 0x2ac   : > { %s843_s19 = smov %s753_s25  ;;  %s844_s20 = smov %s745_s22 }
 0x2ad   :  { %14 = sbr.rel (!%p12_p8) target bundleno = 2 (0x2), region = 114 }

// kernel: decoder_forward.16
= control target key start
LH: loop header
LB: loop body
LE: loop exit
PB: predicated region body
PF: predicated region fallthrough
CT: control target
= control target key end

     0   :  { %s1020_s21 = smov 0   ;;  %s1022_s22 = smov 0   ;;  %s1174_s0 = inlined_call_operand.vmem [shape: f32[32,128], index: 0, kind: input, shape index: {}]   ;;  %s1175_s1 = inlined_call_operand.vmem [shape: bf16[128,128], index: 1, kind: input, shape index: {}]   ;;  %s1176_s2 = inlined_call_operand.vmem [shape: f32[1,128], index: 2, kind: input, shape index: {}]   ;;  %s1177_s3 = inlined_call_operand.vmem [shape: bf16[128,128], index: 3, kind: input, shape index: {}]   ;;  %s1178_s4 = inlined_call_operand.vmem [shape: f32[1,128], index: 4, kind: input, shape index: {}]   ;;  %s1179_s5 = inlined_call_operand.vmem [shape: bf16[4,32,32], index: 5, kind: output, shape index: {0}]   ;;  %s1180_s6 = inlined_call_operand.vmem [shape: bf16[4,32,32], index: 6, kind: output, shape index: {1}]  }
   0x1   :  { %s1024_s23 = smov 0  }
   0x2 LB: > { %s1033_s24 = sadd.s32 4294967295, %s978_s23   ;;  %s1035_s25 = sadd.s32 1, %s978_s23   ;;  %s978_s23 = sphi %s1024_s23, %s1184_s23   ;;  %s974_s22 = sphi %s1022_s22, %s1183_s22   ;;  %s970_s21 = sphi %s1020_s21, %s1182_s21  }
   0x3   : > { %s131_s26 = ssub.s32 %s978_s23, %s1035_s25  ;;  %s134_s27 = sadd.s32 1, %s974_s22 }
   0x4   : > { %p132_p0 = scmp.eq.s32.totalorder %s131_s26, 0  ;;  %p144_p1 = scmp.ne.s32.totalorder %s974_s22, %s970_s21 }
   0x5   : > { %p145_p2 = scmp.eq.s32.totalorder %s1033_s24, 1  ;;  %p800_p3 = scmp.ge.s32.totalorder %s978_s23, 1 }
   0x6   : > { %s1043_s28 = scalar_select %p132_p0, %s974_s22, %s134_s27  }
   0x7   : > { %p1045_p4 = por %p145_p2, %p144_p1  ;;  %p216_p5 = scmp.lt.s32.totalorder %s978_s23, 3 }
   0x9   : > { %p217_p6 = pnand %p800_p3, %p216_p5 }
   0xa   : > { %s803_s18 = sshll.u32 (!%p217_p6), %s1033_s24, 1  ;;  %s240_s7 = sand.u32 (!%p217_p6), 1, %s970_s21  }
   0xb   : > { %220 = sbr.rel (%p217_p6) target bundleno = 394 (0x18a), region = 40  ;;  %p250_p7 = scmp.lt.s32.totalorder (!%p217_p6), %s803_s18, 3 }
   0xc   : > { %s801_s8 = sshll.u32 (!%p217_p6), %s240_s7, 5  ;;  %s983_s14 = smov (!%p217_p6), 96  }
   0xd   : > { %s1108_s21 = scalar_lea.vmem (!%p217_p6), [#allocation2], %s801_s8  ;;  %s1112_s15 = scalar_lea.vmem (!%p217_p6), [#allocation3], %s801_s8 }
   0xe   : > { %s984_s16 = smov (!%p217_p6), 32  }
  0x10   : > { %v940_v0 = vld [vmem:[%s1175_s1 + $0x38] sm:$0xff]   ;;  %v980_v1 = vmov 0.0   ;;  %v942_v3 = vld [vmem:[%s1175_s1 + $0x30] sm:$0xff]   ;;  %vm981_vm0 = vmmov 0   ;;  %v944_v5 = vld [vmem:[%s1175_s1 + $0x28] sm:$0xff]   ;;  %s1186_s18 = smov (!%p250_p7, %s803_s18), 3 }
  0x11   : > { %871 = vmatprep.subr.bf16.mxu0 %v980_v1  ;;  %891 = vmatprep.subr.bf16.mxu1 %v980_v1  ;;  %v941_v2 = vld [vmem:[%s1177_s3 + $0x38] sm:$0xff]   ;;  %v943_v4 = vld [vmem:[%s1177_s3 + $0x30] sm:$0xff]   ;;  %v945_v6 = vld [vmem:[%s1177_s3 + $0x28] sm:$0xff]   ;;  %s804_s13 = sshll.u32 %s1186_s18, 3  ;;  %vm494_vm1 = vcmask 257024   ;;  %s851_s17 = sshll.u32 (%p1045_p4), %s1033_s24, 3 }
  0x12   : > { %872 = vmatpush3.bf16.msra.mxu0 %v940_v0  ;;  %887 = vmatprep.mubr.msk.bf16.mxu0 %vm981_vm0, %v980_v1  ;;  %v946_v7 = vld [vmem:[%s1175_s1 + $0x20] sm:$0xff]   ;;  %v948_v9 = vld [vmem:[%s1175_s1 + $0x18] sm:$0xff]   ;;  %v950_v11 = vld [vmem:[%s1175_s1 + $0x10] sm:$0xff]   ;;  %s253_s23 = scalar_lea.vmem %s1174_s0, %s804_s13  ;;  %s982_s13 = smov 64  }
  0x13   : > { %892 = vmatpush3.bf16.msra.mxu1 %v941_v2  ;;  %873 = vmatprep.subr.bf16.mxu0 %v980_v1  ;;  %v947_v8 = vld [vmem:[%s1177_s3 + $0x20] sm:$0xff]   ;;  %v949_v10 = vld [vmem:[%s1177_s3 + $0x18] sm:$0xff]   ;;  %v951_v12 = vld [vmem:[%s1177_s3 + $0x10] sm:$0xff]  }
  0x14   : > { %893 = vmatprep.subr.bf16.mxu1 %v980_v1  ;;  %907 = vmatprep.mubr.msk.bf16.mxu1 %vm981_vm0, %v980_v1  ;;  %v952_v13 = vld [vmem:[%s1175_s1 + $0x8] sm:$0xff]   ;;  %v954_v15 = vld [vmem:[%s1175_s1] sm:$0xff]  }
  0x15   : > { %v953_v14 = vld [vmem:[%s1177_s3 + $0x8] sm:$0xff]   ;;  %v258_v16 = vld [vmem:[%s253_s23] sm:$0xff] }
  0x16   : > { %874 = vmatpush3.bf16.msra.mxu0 %v942_v3  ;;  %v259_v17 = vld [vmem:[%s253_s23 + $0x8] sm:$0xff]  ;;  %v955_v18 = vld [vmem:[%s1177_s3] sm:$0xff]   ;;  %s573_s23 = scalar_lea.vmem (%p1045_p4), %s1179_s5, %s851_s17 }
  0x17   : > { %894 = vmatpush3.bf16.msra.mxu1 %v943_v4  ;;  %875 = vmatprep.subr.bf16.mxu0 %v980_v1  ;;  %v260_v19 = vpack.c.bf16 %v259_v17, %v258_v16  ;;  %v805_v20 = vld [vmem:[%s1176_s2] ss:$0 sm:$0xff] }
  0x18   : > { %895 = vmatprep.subr.bf16.mxu1 %v980_v1  ;;  %v814_v21 = vld [vmem:[%s1178_s4] ss:$0 sm:$0xff] }
  0x1a   : > { %876 = vmatpush3.bf16.msra.mxu0 %v944_v5 }
  0x1b   : > { %896 = vmatpush3.bf16.msra.mxu1 %v945_v6  ;;  %877 = vmatprep.subr.bf16.mxu0 %v980_v1 }
  0x1c   : > { %897 = vmatprep.subr.bf16.mxu1 %v980_v1 }
  0x1e   : > { %878 = vmatpush3.bf16.msra.mxu0 %v946_v7 }
  0x1f   : > { %898 = vmatpush3.bf16.msra.mxu1 %v947_v8  ;;  %879 = vmatprep.subr.bf16.mxu0 %v980_v1 }
  0x20   : > { %899 = vmatprep.subr.bf16.mxu1 %v980_v1 }
  0x22   : > { %880 = vmatpush3.bf16.msra.mxu0 %v948_v9 }
  0x23   : > { %900 = vmatpush3.bf16.msra.mxu1 %v949_v10  ;;  %881 = vmatprep.subr.bf16.mxu0 %v980_v1 }
  0x24   : > { %901 = vmatprep.subr.bf16.mxu1 %v980_v1 }
  0x26   : > { %882 = vmatpush3.bf16.msra.mxu0 %v950_v11 }
  0x27   : > { %902 = vmatpush3.bf16.msra.mxu1 %v951_v12  ;;  %883 = vmatprep.subr.bf16.mxu0 %v980_v1 }
  0x28   : > { %903 = vmatprep.subr.bf16.mxu1 %v980_v1 }
  0x2a   : > { %884 = vmatpush3.bf16.msra.mxu0 %v952_v13 }
  0x2b   : > { %904 = vmatpush3.bf16.msra.mxu1 %v953_v14  ;;  %885 = vmatprep.subr.bf16.mxu0 %v980_v1 }
  0x2c   : > { %905 = vmatprep.subr.bf16.mxu1 %v980_v1 }
  0x2e   : > { %886 = vmatpush3.bf16.msra.mxu0 %v954_v15 }
  0x2f   : > { %906 = vmatpush3.bf16.msra.mxu1 %v955_v18 }
  0x31   : > { %888 = vmatmul.mubr.bf16.vlgmr.msra.gmra.mxu0 %v260_v19 }
  0x32   : > { %908 = vmatmul.mubr.bf16.vlgmr.msra.gmra.mxu1 %v260_v19 }
  0xf1   : > { %v366_v22 = vpop.f32.mrf.mxu0 }
  0xf2   : > { %v367_v23 = vadd.f32 %v805_v20, %v366_v22  ;;  %v479_v24 = vpop.f32.mrf.mxu1 }
  0xf3   : > { %v889_v25 = vpop.f32.mrf.mxu0  ;;  %v480_v26 = vadd.f32 %v814_v21, %v479_v24 }
  0xf4   : > { %v847_v27 = vpack.c.bf16 %v367_v23, %v367_v23  ;;  %v909_v28 = vpop.f32.mrf.mxu1 }
  0xf5   : > { %v849_v29 = vpack.c.bf16 %v480_v26, %v480_v26  ;;  %v369_v30 = vpop.f32.mrf.mxu0 }
  0xf6   : > { %495 = vst.msk [vmem:[%s1108_s21] sm:$0xf] %vm494_vm1, %v847_v27  ;;  %v370_v31 = vadd.f32 %v805_v20, %v369_v30  ;;  %506 = vrot.lane.b32.xlu1 %v847_v27, %s982_s13  ;;  %497 = vrot.lane.b32.xlu0 %v847_v27, %s983_s14  ;;  %v482_v32 = vpop.f32.mrf.mxu1 }
  0xf7   : > { %531 = vst.msk [vmem:[%s1112_s15] sm:$0xf] %vm494_vm1, %v849_v29  ;;  %v890_v33 = vpop.f32.mrf.mxu0  ;;  %v483_v34 = vadd.f32 %v814_v21, %v482_v32 }
  0xf8   : > { %v848_v35 = vpack.c.bf16 %v370_v31, %v370_v31  ;;  %v910_v36 = vpop.f32.mrf.mxu1 }
  0xf9   : > { %v850_v37 = vpack.c.bf16 %v483_v34, %v483_v34 }
  0xfa   : > { %496 = vst.msk [vmem:[%s1108_s21 + $0x4] sm:$0xf] %vm494_vm1, %v848_v35  ;;  %515 = vrot.lane.b32.xlu0 %v847_v27, %s984_s16  ;;  %508 = vrot.lane.b32.xlu1 %v848_v35, %s982_s13 }
  0xfb   : > { %532 = vst.msk [vmem:[%s1112_s15 + $0x4] sm:$0xf] %vm494_vm1, %v850_v37 }
  0xfe   : > { %533 = vrot.lane.b32.xlu0 %v849_v29, %s983_s14  ;;  %517 = vrot.lane.b32.xlu1 %v848_v35, %s984_s16 }
 0x101   : > { %v590_v50 = vld [vmem:[%s1108_s21] sm:$0xff] (%p1045_p4)  }
 0x102   : > { %542 = vrot.lane.b32.xlu0 %v849_v29, %s982_s13  ;;  %535 = vrot.lane.b32.xlu1 %v850_v37, %s983_s14  ;;  %591 = vst [vmem:[%s573_s23] sm:$0xff] (%p1045_p4), %v590_v50  }
 0x106   : > { %544 = vrot.lane.b32.xlu1 %v850_v37, %s982_s13  ;;  %499 = vrot.lane.b32.xlu0 %v848_v35, %s983_s14 }
 0x10a   : > { %553 = vrot.lane.b32.xlu1 %v850_v37, %s984_s16  ;;  %551 = vrot.lane.b32.xlu0 %v849_v29, %s984_s16 }
 0x168   : > { %v507_v38 = vpop.permute.xlu1 %506  ;;  %v498_v39 = vpop.permute.xlu0 %497 }
 0x169   : > { %827 = vst.msk [vmem:[%s1108_s21 + $0x10] sm:$0xf] %vm494_vm1, %v507_v38  ;;  %825 = vst.msk [vmem:[%s1108_s21 + $0x8] sm:$0xf] %vm494_vm1, %v498_v39 }
 0x16c   : > { %v516_v40 = vpop.permute.xlu0 %515  ;;  %v509_v41 = vpop.permute.xlu1 %508 }
 0x16d   : > { %829 = vst.msk [vmem:[%s1108_s21 + $0x18] sm:$0xf] %vm494_vm1, %v516_v40  ;;  %828 = vst.msk [vmem:[%s1108_s21 + $0x14] sm:$0xf] %vm494_vm1, %v509_v41 }
 0x170   : > { %v534_v42 = vpop.permute.xlu0 %533  ;;  %v518_v43 = vpop.permute.xlu1 %517 }
 0x171   : > { %833 = vst.msk [vmem:[%s1112_s15 + $0x8] sm:$0xf] %vm494_vm1, %v534_v42  ;;  %830 = vst.msk [vmem:[%s1108_s21 + $0x1c] sm:$0xf] %vm494_vm1, %v518_v43 }
 0x174   : > { %v543_v44 = vpop.permute.xlu0 %542  ;;  %v536_v45 = vpop.permute.xlu1 %535  ;;  %v598_v52 = vld [vmem:[%s1108_s21 + $0x10] sm:$0xff] (%p1045_p4)  }
 0x175   : > { %835 = vst.msk [vmem:[%s1112_s15 + $0x10] sm:$0xf] %vm494_vm1, %v543_v44  ;;  %834 = vst.msk [vmem:[%s1112_s15 + $0xc] sm:$0xf] %vm494_vm1, %v536_v45 }
 0x176   : > { %599 = vst [vmem:[%s573_s23 + $0x20] sm:$0xff] (%p1045_p4), %v598_v52  }
 0x178   : > { %v545_v46 = vpop.permute.xlu1 %544  ;;  %v500_v47 = vpop.permute.xlu0 %499  ;;  %v602_v53 = vld [vmem:[%s1108_s21 + $0x18] sm:$0xff] (%p1045_p4)  }
 0x179   : > { %836 = vst.msk [vmem:[%s1112_s15 + $0x14] sm:$0xf] %vm494_vm1, %v545_v46  ;;  %826 = vst.msk [vmem:[%s1108_s21 + $0xc] sm:$0xf] %vm494_vm1, %v500_v47  ;;  %570 = sbr.rel (!%p1045_p4) target bundleno = 386 (0x182), region = 44 }
 0x17a   : > { %603 = vst [vmem:[%s573_s23 + $0x30] sm:$0xff] (%p1045_p4), %v602_v53  }
 0x17c   : > { %v554_v48 = vpop.permute.xlu1 %553  ;;  %v552_v49 = vpop.permute.xlu0 %551 }
 0x17d   : > { %838 = vst.msk [vmem:[%s1112_s15 + $0x1c] sm:$0xf] %vm494_vm1, %v554_v48  ;;  %837 = vst.msk [vmem:[%s1112_s15 + $0x18] sm:$0xf] %vm494_vm1, %v552_v49 }
 0x180   : > { %v594_v51 = vld [vmem:[%s1108_s21 + $0x8] sm:$0xff]  }
 0x181   : > { %595 = vst [vmem:[%s573_s23 + $0x10] sm:$0xff] %v594_v51  }
 0x182 PF: > { %645 = sbr.rel (!%p1045_p4) target bundleno = 394 (0x18a), region = 85  ;;  %s852_s26 = sshll.u32 (%p1045_p4), %s1033_s24, 3  ;;  %v665_v54 = vld [vmem:[%s1112_s15] sm:$0xff] (%p1045_p4)   ;;  %v669_v55 = vld [vmem:[%s1112_s15 + $0x8] sm:$0xff] (%p1045_p4)  }
 0x183   : > { %s648_s30 = scalar_lea.vmem (%p1045_p4), %s1180_s6, %s852_s26 }
 0x184   : > { %v673_v56 = vld [vmem:[%s1112_s15 + $0x10] sm:$0xff] (%p1045_p4)   ;;  %666 = vst [vmem:[%s648_s30] sm:$0xff] (%p1045_p4), %v665_v54   ;;  %670 = vst [vmem:[%s648_s30 + $0x10] sm:$0xff] (%p1045_p4), %v669_v55  }
 0x185   : > { %674 = vst [vmem:[%s648_s30 + $0x20] sm:$0xff] (%p1045_p4), %v673_v56  }
 0x188   : > { %v677_v57 = vld [vmem:[%s1112_s15 + $0x18] sm:$0xff]  }
 0x189   : > { %678 = vst [vmem:[%s648_s30 + $0x30] sm:$0xff] %v677_v57  }
 0x18a PF: > { %p14_p8 = scmp.ge.s32.totalorder %s1035_s25, 4   ;;  %s1182_s21 = smov %s974_s22 }
 0x18b   : > { %s1183_s22 = smov %s1043_s28  ;;  %s1184_s23 = smov %s1035_s25 }
 0x18c   :  { %16 = sbr.rel (!%p14_p8) target bundleno = 2 (0x2), region = 170 }

// kernel: decoder_forward.14
= control target key start
LH: loop header
LB: loop body
LE: loop exit
PB: predicated region body
PF: predicated region fallthrough
CT: control target
= control target key end

     0   :  { %s959_s21 = smov 0   ;;  %s961_s22 = smov 0   ;;  %s1071_s0 = inlined_call_operand.vmem [shape: bf16[4,32,32], index: 0, kind: input, shape index: {}]   ;;  %s1072_s1 = inlined_call_operand.vmem [shape: bf16[4,32,32], index: 1, kind: input, shape index: {}]   ;;  %s1073_s2 = inlined_call_operand.vmem [shape: bf16[4,32,32], index: 2, kind: input, shape index: {}]   ;;  %s1074_s3 = inlined_call_operand.vmem [shape: bf16[4,32,128], index: 3, kind: input, shape index: {}]   ;;  %s1075_s4 = inlined_call_operand.vmem [shape: f32[1,128], index: 4, kind: input, shape index: {}]   ;;  %s1076_s5 = inlined_call_operand.vmem [shape: f32[2,16,128], index: 5, kind: input, shape index: {}]   ;;  %s1077_s6 = inlined_call_operand.vmem [shape: f32[2,16,128], index: 6, kind: output, shape index: {}]  }
   0x1   :  { %s963_s23 = smov 0   ;;  %s965_s24 = smov 0  }
   0x2   :  { %s967_s25 = smov 0  }
   0x3 LB: > { %s25_s26 = sadd.s32 1, %s912_s23  ;;  %s28_s27 = sadd.s32 1, %s916_s24  ;;  %s920_s25 = sphi %s967_s25, %s16_s25   ;;  %s916_s24 = sphi %s965_s24, %s1081_s24   ;;  %s912_s23 = sphi %s963_s23, %s1080_s23   ;;  %s908_s22 = sphi %s961_s22, %s1079_s22   ;;  %s904_s21 = sphi %s959_s21, %s1078_s21  }
   0x4   : > { %p26_p0 = scmp.ge.s32.totalorder %s25_s26, 4  ;;  %p768_p1 = scmp.ge.s32.totalorder %s920_s25, 1 }
   0x5   : > { %p285_p2 = scmp.lt.s32.totalorder %s920_s25, 9 }
   0x6   : > { %s1083_s26 = smov (%p26_p0, %s25_s26), 0  ;;  %s1085_s27 = smov (!%p26_p0, %s28_s27), %s916_s24 }
   0x7   : > { %p286_p3 = pnand %p768_p1, %p285_p2  ;;  %p30_p4 = scmp.ge.s32.totalorder %s1085_s27, 2 }
   0x8   : > { %p382_p5 = scmp.lt.s32.totalorder (!%p286_p3), %s908_s22, 1  ;;  %s769_s28 = sshll.u32 (!%p286_p3), %s908_s22, 1 }
   0x9   : > { %s1087_s27 = smov (%p30_p4, %s1085_s27), 0  ;;  %289 = sbr.rel (%p286_p3) target bundleno = 964 (0x3c4), region = 44 }
   0xa   : > { %p348_p6 = scmp.lt.s32.totalorder (!%p286_p3), %s904_s21, 3  ;;  %p350_p7 = scmp.lt.s32.totalorder (!%p286_p3), %s769_s28, 3 }
   0xb   : > { %p792_p8 = scmp.ne.s32.totalorder (!%p286_p3), %s904_s21, 0 }
   0xe   : > { %v922_v0 = vmov 0.0   ;;  %vm923_vm0 = vmmov 0   ;;  %s1089_s22 = smov (!%p382_p5, %s908_s22), 1  ;;  %s1091_s28 = smov (!%p350_p7, %s769_s28), 3  ;;  %vm407_vm1 = vcmask 261120   ;;  %v455_v4 = vlaneseq }
   0xf   : > { %807 = vmatprep.subr.bf16.mxu0 %v922_v0  ;;  %809 = vmatprep.mubr.msk.bf16.mxu0 %vm923_vm0, %v922_v0  ;;  %s349_s29 = scalar_select %p348_p6, %s904_s21, 3  ;;  %vm464_vm3 = vcmask 130048  }
  0x10   : > { %813 = vmatprep.subr.bf16.mxu1 %v922_v0  ;;  %815 = vmatprep.mubr.msk.bf16.mxu1 %vm923_vm0, %v922_v0  ;;  %s798_s30 = sshll.u32 %s1089_s22, 4  ;;  %v456_v5 = vshrl.u32 %v455_v4, 7  ;;  %v459_v6 = vand.u32 127, %v455_v4 }
  0x11   : > { %s1007_s9 = scalar_lea.vmem %s1076_s5, %s798_s30  ;;  %s1012_s12 = scalar_lea.vmem %s1077_s6, %s798_s30 }
  0x12   : > { %s770_s13 = sshll.u32 %s349_s29, 2  ;;  %s797_s14 = sshll.u32 %s349_s29, 4  ;;  %vm460_vm2 = vcmp.ge.s32.totalorder %v456_v5, %v459_v6  ;;  %v457_v7 = vadd.s32 8, %v456_v5 }
  0x13   : > { %s353_s15 = sadd.s32 %s770_s13, %s1091_s28  ;;  %s1017_s18 = scalar_lea.vmem %s1074_s3, %s797_s14 }
  0x14   : > { %s1019_s19 = sshll.u32 %s353_s15, 2  ;;  %vm461_vm4 = vcmp.ge.s32.totalorder %v457_v7, %v459_v6  ;;  %v872_v33 = vld [vmem:[%s1017_s18 + $0x8] sm:$0xff]   ;;  %v873_v35 = vld [vmem:[%s1017_s18] sm:$0xff]  }
  0x15   : > { %s365_s7 = scalar_lea.vmem %s1072_s1, %s1019_s19  ;;  %s355_s10 = scalar_lea.vmem %s1071_s0, %s1019_s19 }
  0x16   : > { %v869_v1 = vld [vmem:[%s365_s7] sm:$0xff]   ;;  %s375_s11 = scalar_lea.vmem %s1073_s2, %s1019_s19 }
  0x17   : > { %v412_v2 = vsel %vm407_vm1, %v869_v1, 0  ;;  %v870_v3 = vld [vmem:[%s355_s10] sm:$0xff]  }
  0x18   : > { %808 = vmatpush3.bf16.xpose.msra.mxu0 %v412_v2  ;;  %v871_v26 = vld [vmem:[%s375_s11] sm:$0xff]  }
  0x19   : > { %814 = vmatpush3.bf16.msra.mxu1 %v871_v26 }
  0x1a   : > { %819 = vmatprep.subr.bf16.mxu1 %v922_v0 }
  0x1f   : > { %810 = vmatmul.mubr.msk.bf16.vlgmr.msra.gmra.mxu0 %vm407_vm1, %v870_v3 }
  0xdf   : > { %v448_v8 = vpop.f32.mrf.mxu0 }
  0xe0   : > { %v462_v9 = vsel %vm460_vm2, %v448_v8, -1e+09 }
  0xe1   : > { %v811_v10 = vpop.f32.mrf.mxu0  ;;  %v465_v11 = vsel %vm464_vm3, %v462_v9, -inf }
  0xe2   : > { %466 = vmax.xlane.f32.xlu0 %v465_v11 }
  0xe3   : > { %v451_v12 = vpop.f32.mrf.mxu0 }
  0xe4   : > { %v463_v13 = vsel %vm461_vm4, %v451_v12, -1e+09 }
  0xe5   : > { %v812_v14 = vpop.f32.mrf.mxu0  ;;  %v468_v15 = vsel %vm464_vm3, %v463_v13, -inf }
  0xe6   : > { %469 = vmax.xlane.f32.xlu0 %v468_v15 }
 0x16b   : > { %v467_v16 = vpop.xlane.xlu0 %466 }
 0x16c   : > { %v471_v17 = vsub.f32 %v462_v9, %v467_v16 }
 0x16e   : > { %v473_v18 = vmul.f32 1.442695, %v471_v17 }
 0x16f   : > { %v470_v19 = vpop.xlane.xlu0 %469 }
 0x170   : > { %874 = vpow2.f32 %v473_v18  ;;  %v472_v20 = vsub.f32 %v463_v13, %v470_v19 }
 0x172   : > { %v475_v21 = vmul.f32 1.442695, %v472_v20 }
 0x174   : > { %876 = vpow2.f32 %v475_v21 }
 0x17d   : > { %v875_v22 = vpop.eup %874 }
 0x17e   : > { %v477_v23 = vsel %vm464_vm3, %v875_v22, 0.0 }
 0x17f   : > { %478 = vadd.xlane.f32.xlu1 %v477_v23 }
 0x181   : > { %v877_v24 = vpop.eup %876 }
 0x182   : > { %v480_v25 = vsel %vm464_vm3, %v877_v24, 0.0 }
 0x183   : > { %481 = vadd.xlane.f32.xlu1 %v480_v25 }
 0x208   : > { %v479_v27 = vpop.xlane.xlu1 %478 }
 0x209   : > { %878 = vrcp.f32 %v479_v27 }
 0x20c   : > { %v482_v28 = vpop.xlane.xlu1 %481 }
 0x20d   : > { %880 = vrcp.f32 %v482_v28 }
 0x216   : > { %v879_v29 = vpop.eup %878 }
 0x217   : > { %v485_v31 = vmul.f32 %v879_v29, %v875_v22 }
 0x21a   : > { %v881_v30 = vpop.eup %880 }
 0x21b   : > { %v486_v32 = vmul.f32 %v881_v30, %v877_v24 }
 0x21d   : > { %v487_v34 = vpack.c.bf16 %v486_v32, %v485_v31 }
 0x21f   : > { %816 = vmatmul.mubr.msk.bf16.vlgmr.msra.gmra.mxu1 %vm464_vm3, %v487_v34 }
 0x220   : > { %820 = vmatpush3.bf16.msra.mxu1 %v872_v33  ;;  %823 = vmatprep.mubr.msk.bf16.mxu1 %vm923_vm0, %v922_v0 }
 0x221   : > { %821 = vmatprep.subr.bf16.mxu1 %v922_v0 }
 0x224   : > { %822 = vmatpush3.bf16.msra.mxu1 %v873_v35 }
 0x2df   : > { %v533_v36 = vpop.f32.mrf.mxu1 }
 0x2e1   : > { %v817_v37 = vpop.f32.mrf.mxu1 }
 0x2e3   : > { %v536_v38 = vpop.f32.mrf.mxu1 }
 0x2e4   : > { %v540_v39 = vpack.c.bf16 %v536_v38, %v533_v36 }
 0x2e5   : > { %v818_v40 = vpop.f32.mrf.mxu1 }
 0x2e6   : > { %824 = vmatmul.mubr.msk.bf16.vlgmr.msra.gmra.mxu1 %vm407_vm1, %v540_v39 }
 0x3a6   : > { %v594_v41 = vpop.f32.mrf.mxu1 }
 0x3a8   : > { %v825_v42 = vpop.f32.mrf.mxu1  ;;  %604 = sbr.rel (%p792_p8) target bundleno = 946 (0x3b2), region = 48 }
 0x3aa   : > { %v597_v43 = vpop.f32.mrf.mxu1 }
 0x3ac   : > { %v826_v44 = vpop.f32.mrf.mxu1 }
 0x3ad   : > { %v605_v45 = vld [vmem:[%s1007_s9] sm:$0xff]  ;;  %v606_v47 = vld [vmem:[%s1007_s9 + $0x8] sm:$0xff] }
 0x3ae   : > { %v793_v46 = vld [vmem:[%s1075_s4] ss:$0 sm:$0xff] }
 0x3af   : > { %v614_v48 = vadd.f32 %v793_v46, %v605_v45  ;;  %v615_v49 = vadd.f32 %v793_v46, %v606_v47 }
 0x3b1   : > { %616 = vst [vmem:[#allocation2] sm:$0xff] %v614_v48  ;;  %617 = vst [vmem:[#allocation2 + $0x8] sm:$0xff] %v615_v49 }
 0x3b2 PF: > { %p794_p9 = scmp.ne.s32.totalorder %s904_s21, 3 }
 0x3b7   : > { %627 = sbr.rel (%p794_p9) target bundleno = 964 (0x3c4), region = 52 }
 0x3b8   : > { %v618_v50 = vld [vmem:[#allocation2] sm:$0xff]  ;;  %v619_v51 = vld [vmem:[#allocation2 + $0x8] sm:$0xff] }
 0x3b9   : > { %v620_v52 = vadd.f32 %v618_v50, %v594_v41  ;;  %v621_v53 = vadd.f32 %v619_v51, %v597_v43 }
 0x3bb   : > { %622 = vst [vmem:[#allocation2] sm:$0xff] %v620_v52  ;;  %623 = vst [vmem:[#allocation2 + $0x8] sm:$0xff] %v621_v53 }
 0x3c2   : > { %v628_v54 = vld [vmem:[#allocation2] sm:$0xff]  ;;  %v629_v55 = vld [vmem:[#allocation2 + $0x8] sm:$0xff] }
 0x3c3   : > { %630 = vst [vmem:[%s1012_s12] sm:$0xff] %v628_v54  ;;  %631 = vst [vmem:[%s1012_s12 + $0x8] sm:$0xff] %v629_v55 }
 0x3c4 PF: > { %s16_s25 = sadd.s32 1, %s920_s25   ;;  %s1078_s21 = smov %s912_s23 }
 0x3c5   : > { %p13_p10 = scmp.ge.s32.totalorder %s16_s25, 10   ;;  %s1079_s22 = smov %s916_s24 }
 0x3c6   : > { %s1080_s23 = smov %s1083_s26  ;;  %s1081_s24 = smov %s1087_s27 }
 0x3c7   :  { %15 = sbr.rel (!%p13_p10) target bundleno = 3 (0x3), region = 94 }

// kernel: decoder_forward.13
= control target key start
LH: loop header
LB: loop body
LE: loop exit
PB: predicated region body
PF: predicated region fallthrough
CT: control target
= control target key end

     0   :  { %17 = vsyncpa [#allocation3], 0  ;;  %s2025_s0 = inlined_call_operand.vmem [shape: f32[32,128], index: 0, kind: input, shape index: {}]   ;;  %s2026_s1 = inlined_call_operand.vmem [shape: f32[1,128], index: 1, kind: input, shape index: {}]   ;;  %s2027_s2 = inlined_call_operand.vmem [shape: f32[1,128], index: 2, kind: input, shape index: {}]   ;;  %s2028_s3 = inlined_call_operand.hbm [shape: bf16[128,128], index: 3, kind: input, shape index: {}]   ;;  %s2029_s4 = inlined_call_operand.vmem [shape: f32[1,128], index: 4, kind: input, shape index: {}]   ;;  %s2030_s5 = inlined_call_operand.hbm [shape: bf16[128,128], index: 5, kind: input, shape index: {}]   ;;  %s2031_s6 = inlined_call_operand.vmem [shape: f32[1,128], index: 6, kind: input, shape index: {}]   ;;  %s2032_s7 = inlined_call_operand.hbm [shape: bf16[128,128], index: 7, kind: input, shape index: {}]   ;;  %s2033_s8 = inlined_call_operand.vmem [shape: f32[1,128], index: 8, kind: input, shape index: {}]   ;;  %s2034_s9 = inlined_call_operand.vmem [shape: bf16[4,32,32], index: 9, kind: output, shape index: {0}]   ;;  %s2035_s10 = inlined_call_operand.vmem [shape: bf16[4,32,32], index: 10, kind: output, shape index: {1}]   ;;  %s2036_s11 = inlined_call_operand.vmem [shape: bf16[4,32,32], index: 11, kind: output, shape index: {2}]  }
   0x1   :  { %18 = vsyncpa [#allocation5], 0  ;;  %s1776_s17 = smov 0   ;;  %s1778_s18 = smov 0  }
   0x2   :  { %s1780_s19 = smov 0  }
   0x3 LB: > { %s1789_s20 = sadd.s32 4294967295, %s1704_s19   ;;  %s1791_s21 = sadd.s32 1, %s1704_s19   ;;  %s1704_s19 = sphi %s1780_s19, %s2050_s19   ;;  %s1700_s18 = sphi %s1778_s18, %s2049_s18   ;;  %s1696_s17 = sphi %s1776_s17, %s2048_s17  }
   0x4   : > { %s222_s22 = ssub.s32 %s1704_s19, %s1791_s21  ;;  %s225_s23 = sadd.s32 1, %s1700_s18 }
   0x5   : > { %p223_p0 = scmp.eq.s32.totalorder %s222_s22, 0  ;;  %p235_p1 = scmp.ne.s32.totalorder %s1700_s18, %s1696_s17 }
   0x6   : > { %p236_p2 = scmp.eq.s32.totalorder %s1789_s20, 1  ;;  %p1328_p3 = scmp.ge.s32.totalorder %s1704_s19, 1 }
   0x7   : > { %s1799_s24 = scalar_select %p223_p0, %s1700_s18, %s225_s23  }
   0x8   : > { %p1801_p4 = por %p236_p2, %p235_p1  ;;  %p301_p5 = scmp.lt.s32.totalorder %s1704_s19, 3 }
   0x9   : > { %p2037_p6 = scmp.eq.s32.totalorder %s1789_s20, 0  ;;  %s1706_s27 = smov [#allocation4]  }
   0xa   : > { %s2038_s25 = scalar_select %p1801_p4, 1, 0 }
   0xb   : > { %p1806_p7 = pnand %p1328_p3, %p301_p5  ;;  %s335_s28 = sshll.u32 %s1706_s27, 4  ;;  %s336_s28 = int_to_ptr.vmem [resolvable:$true] %s335_s28 }
   0xc   : > { %s1707_s30 = smov [#allocation2]   ;;  %s1708_s13 = smov [#allocation6]  }
   0xd   : > { %p1514_p8 = pneg %p1806_p7  ;;  %s319_s12 = sshll.u32 %s1707_s30, 4  ;;  %s320_s12 = int_to_ptr.vmem [resolvable:$true] %s319_s12 }
   0xe   : > { %s351_s14 = sshll.u32 %s1708_s13, 4  ;;  %s1607_s15 = scalar_lea.vmem %s336_s28, 1024  ;;  %s352_s14 = int_to_ptr.vmem [resolvable:$true] %s351_s14 }
   0xf   : > { %p1814_p9 = pnand %p2037_p6, %p1514_p8  ;;  %p1608_p11 = scmp.ne.s32.totalorder %s336_s28, %s1607_s15 }
  0x10   : > { %p1615_p0 = scmp.lt.s32.totalorder %s336_s28, %s336_s28  ;;  %p1616_p1 = scmp.lt.s32.totalorder %s1607_s15, %s1607_s15 }
  0x11   : > { %p1598_p10 = pneg %p1814_p9 }
  0x12   : > { %p1617_p2 = por %p1616_p1, %p1615_p0 }
  0x13   : > { %p1610_p12 = pnand %p1608_p11, %p1598_p10 }
  0x15   : > { %p1611_p13 = pneg %p1610_p12 }
  0x17   : > { %p1618_p3 = pnand %p1617_p2, %p1611_p13 }
  0x19   : > { %1621 = shalt.err (!%p1618_p3)
}
  0x1a   : > { %s1709_s16 = smov 64   ;;  %s1710_s19 = smov 4  }
  0x1b   : > { %1520 = dma.hbm_to_vmem [thread:$0]  (!%p1814_p9), %s2030_s5, 1024, %s336_s28, [#allocation5], %s1709_s16, %s1709_s16, %s1710_s19  }
  0x1c   : > { %s1633_s27 = scalar_lea.vmem %s320_s12, 1024  ;;  %p1641_p12 = scmp.lt.s32.totalorder %s320_s12, %s320_s12 }
  0x1d   : > { %p1634_p5 = scmp.ne.s32.totalorder %s320_s12, %s1633_s27  ;;  %p1642_p6 = scmp.lt.s32.totalorder %s1633_s27, %s1633_s27 }
  0x1f   : > { %p1636_p8 = pnand %p1634_p5, %p1598_p10  ;;  %p1643_p0 = por %p1642_p6, %p1641_p12 }
  0x21   : > { %p1637_p11 = pneg %p1636_p8 }
  0x23   : > { %p1644_p13 = pnand %p1643_p0, %p1637_p11 }
  0x25   : > { %1647 = shalt.err (!%p1644_p13)
}
  0x26   : > { %1517 = dma.hbm_to_vmem [thread:$0]  (!%p1814_p9), %s2028_s3, 1024, %s320_s12, [#allocation3], %s1709_s16, %s1709_s16, %s1710_s19  }
  0x27   : > { %s1659_s28 = scalar_lea.vmem %s352_s14, 1024  ;;  %p1667_p5 = scmp.lt.s32.totalorder %s352_s14, %s352_s14 }
  0x28   : > { %p1660_p1 = scmp.ne.s32.totalorder %s352_s14, %s1659_s28  ;;  %p1668_p8 = scmp.lt.s32.totalorder %s1659_s28, %s1659_s28 }
  0x2a   : > { %p1662_p2 = pnand %p1660_p1, %p1598_p10  ;;  %p1669_p4 = por %p1668_p8, %p1667_p5 }
  0x2c   : > { %p1663_p3 = pneg %p1662_p2 }
  0x2e   : > { %p1670_p6 = pnand %p1669_p4, %p1663_p3 }
  0x30   : > { %1673 = shalt.err (!%p1670_p6)
}
  0x31   : > { %1523 = dma.hbm_to_vmem [thread:$0]  (!%p1814_p9), %s2032_s7, 1024, %s352_s14, [#allocation5], %s1709_s16, %s1709_s16, %s1710_s19  }
  0x32   : > { %379 = sbr.rel (%p1806_p7) target bundleno = 768 (0x300), region = 56  ;;  %p2041_p11 = scmp.eq.s32.totalorder (!%p1806_p7), %s1789_s20, 0 }
  0x37   : > { %1687 = dma.done.wait (%p2041_p11), [#allocation3], 1024   ;;  %p2042_p10 = pmov %p2041_p11 }
  0x39   : > { %1689 = vsyncadd (%p2042_p10), [#allocation3], 4294966272  ;;  %p2043_p12 = pmov %p2042_p10 }
  0x3a   : > { %p2044_p4 = pmov %p2042_p10 }
  0x3b   : > { %1691 = dma.done.wait (%p2043_p12), [#allocation5], 2048  }
  0x3c   : > { %1693 = vsyncadd (%p2044_p4), [#allocation5], 4294965248  ;;  %s1340_s29 = sshll.u32 %s1789_s20, 1  ;;  %v1564_v10 = vld [vmem:[#allocation2 + $0x38] sm:$0xff]   ;;  %v1711_v11 = vmov 0.0   ;;  %v1566_v13 = vld [vmem:[#allocation2 + $0x30] sm:$0xff]  }
  0x3d   : > { %p435_p0 = scmp.lt.s32.totalorder %s1340_s29, 3  ;;  %1442 = vmatprep.subr.bf16.mxu0 %v1711_v11  ;;  %1462 = vmatprep.subr.bf16.mxu1 %v1711_v11  ;;  %v1565_v12 = vld [vmem:[#allocation4 + $0x38] sm:$0xff]   ;;  %v1567_v14 = vld [vmem:[#allocation4 + $0x30] sm:$0xff]   ;;  %v1568_v15 = vld [vmem:[#allocation2 + $0x28] sm:$0xff]   ;;  %vm1712_vm0 = vmmov 0   ;;  %s419_s13 = sand.u32 1, %s1696_s17  }
  0x3e   : > { %1443 = vmatpush3.bf16.msra.mxu0 %v1564_v10  ;;  %1463 = vmatpush3.bf16.msra.mxu1 %v1565_v12  ;;  %v1569_v16 = vld [vmem:[#allocation4 + $0x28] sm:$0xff]   ;;  %v1570_v17 = vld [vmem:[#allocation2 + $0x20] sm:$0xff]   ;;  %v1572_v19 = vld [vmem:[#allocation2 + $0x18] sm:$0xff]   ;;  %s1905_s28 = sshll.u32 %s419_s13, 5  ;;  %vm850_vm5 = vcmask 257024   ;;  %s1713_s26 = smov 64  }
  0x3f   : > { %s2052_s29 = smov (!%p435_p0, %s1340_s29), 3  ;;  %1444 = vmatprep.subr.bf16.mxu0 %v1711_v11  ;;  %1464 = vmatprep.subr.bf16.mxu1 %v1711_v11  ;;  %v1571_v18 = vld [vmem:[#allocation4 + $0x20] sm:$0xff]   ;;  %v1573_v20 = vld [vmem:[#allocation4 + $0x18] sm:$0xff]   ;;  %v1574_v21 = vld [vmem:[#allocation2 + $0x10] sm:$0xff]   ;;  %s1914_s17 = scalar_lea.vmem [#allocation7], %s1905_s28 }
  0x40   : > { %s1341_s12 = sshll.u32 %s2052_s29, 3  ;;  %1458 = vmatprep.mubr.msk.bf16.mxu0 %vm1712_vm0, %v1711_v11  ;;  %1478 = vmatprep.mubr.msk.bf16.mxu1 %vm1712_vm0, %v1711_v11  ;;  %v1575_v22 = vld [vmem:[#allocation4 + $0x10] sm:$0xff]   ;;  %v1576_v23 = vld [vmem:[#allocation2 + $0x8] sm:$0xff]   ;;  %v1578_v25 = vld [vmem:[#allocation2] sm:$0xff]   ;;  %s1919_s14 = scalar_lea.vmem [#allocation8], %s1905_s28 }
  0x41   : > { %s438_s16 = scalar_lea.vmem %s2025_s0, %s1341_s12  ;;  %v1577_v24 = vld [vmem:[#allocation4 + $0x8] sm:$0xff]   ;;  %v1579_v26 = vld [vmem:[#allocation4] sm:$0xff]   ;;  %v1580_v53 = vld [vmem:[#allocation6 + $0x38] sm:$0xff]   ;;  %s1715_s19 = smov 32  }
  0x42   : > { %v444_v0 = vld [vmem:[%s438_s16] sm:$0xff]  ;;  %v445_v1 = vld [vmem:[%s438_s16 + $0x8] sm:$0xff]  ;;  %1445 = vmatpush3.bf16.msra.mxu0 %v1566_v13  ;;  %1465 = vmatpush3.bf16.msra.mxu1 %v1567_v14  ;;  %v1581_v55 = vld [vmem:[#allocation6 + $0x30] sm:$0xff]   ;;  %s1714_s16 = smov 96   ;;  %s1939_s30 = scalar_lea.vmem [#allocation9], %s1905_s28 }
  0x43   : > { %448 = vadd.xlane.f32.xlu0 %v444_v0  ;;  %1446 = vmatprep.subr.bf16.mxu0 %v1711_v11  ;;  %v1342_v45 = vld [vmem:[%s2026_s1] ss:$0 sm:$0xff]  ;;  %v1582_v56 = vld [vmem:[#allocation6 + $0x28] sm:$0xff]   ;;  %v1584_v58 = vld [vmem:[#allocation6 + $0x18] sm:$0xff]   ;;  %p2045_p7 = scmp.ne.s32.totalorder %s2038_s25, 0 }
  0x44   : > { %1466 = vmatprep.subr.bf16.mxu1 %v1711_v11  ;;  %v1343_v49 = vld [vmem:[%s2027_s2] ss:$0 sm:$0xff]  ;;  %v1585_v59 = vld [vmem:[#allocation6 + $0x10] sm:$0xff]   ;;  %v1586_v60 = vld [vmem:[#allocation6 + $0x8] sm:$0xff]   ;;  %s1412_s13 = sshll.u32 (%p2045_p7), %s1789_s20, 3 }
  0x45   : > { %v1583_v57 = vld [vmem:[#allocation6 + $0x20] sm:$0xff]   ;;  %s969_s22 = scalar_lea.vmem (%p2045_p7), %s2034_s9, %s1412_s13 }
  0x46   : > { %1447 = vmatpush3.bf16.msra.mxu0 %v1568_v15  ;;  %1467 = vmatpush3.bf16.msra.mxu1 %v1569_v16  ;;  %v1587_v61 = vld [vmem:[#allocation6] sm:$0xff]  }
  0x47   : > { %450 = vadd.xlane.f32.xlu0 %v445_v1  ;;  %1448 = vmatprep.subr.bf16.mxu0 %v1711_v11  ;;  %v1344_v62 = vld [vmem:[%s2029_s4] ss:$0 sm:$0xff] }
  0x48   : > { %1468 = vmatprep.subr.bf16.mxu1 %v1711_v11  ;;  %v1353_v63 = vld [vmem:[%s2031_s6] ss:$0 sm:$0xff] }
  0x49   : > { %v1362_v16 = vld [vmem:[%s2033_s8] ss:$0 sm:$0xff] }
  0x4a   : > { %1449 = vmatpush3.bf16.msra.mxu0 %v1570_v17  ;;  %1469 = vmatpush3.bf16.msra.mxu1 %v1571_v18 }
  0x4b   : > { %1450 = vmatprep.subr.bf16.mxu0 %v1711_v11  ;;  %1470 = vmatprep.subr.bf16.mxu1 %v1711_v11 }
  0x4e   : > { %1451 = vmatpush3.bf16.msra.mxu0 %v1572_v19  ;;  %1471 = vmatpush3.bf16.msra.mxu1 %v1573_v20 }
  0x4f   : > { %1452 = vmatprep.subr.bf16.mxu0 %v1711_v11  ;;  %1472 = vmatprep.subr.bf16.mxu1 %v1711_v11 }
  0x52   : > { %1453 = vmatpush3.bf16.msra.mxu0 %v1574_v21  ;;  %1473 = vmatpush3.bf16.msra.mxu1 %v1575_v22 }
  0x53   : > { %1454 = vmatprep.subr.bf16.mxu0 %v1711_v11  ;;  %1474 = vmatprep.subr.bf16.mxu1 %v1711_v11 }
  0x56   : > { %1455 = vmatpush3.bf16.msra.mxu0 %v1576_v23  ;;  %1475 = vmatpush3.bf16.msra.mxu1 %v1577_v24 }
  0x57   : > { %1456 = vmatprep.subr.bf16.mxu0 %v1711_v11  ;;  %1476 = vmatprep.subr.bf16.mxu1 %v1711_v11 }
  0x5a   : > { %1457 = vmatpush3.bf16.msra.mxu0 %v1578_v25  ;;  %1477 = vmatpush3.bf16.msra.mxu1 %v1579_v26 }
  0x5b   : > { %1482 = vmatprep.subr.bf16.mxu0 %v1711_v11 }
  0xcc   : > { %v449_v2 = vpop.xlane.xlu0 %448 }
  0xcd   : > { %v453_v3 = vmul.f32 0.0078125, %v449_v2 }
  0xcf   : > { %v1858_v4 = vsub.f32 %v444_v0, %v453_v3 }
  0xd0   : > { %v451_v5 = vpop.xlane.xlu0 %450 }
  0xd1   : > { %v454_v6 = vmul.f32 0.0078125, %v451_v5  ;;  %v457_v7 = vmul.f32 %v1858_v4, %v1858_v4 }
  0xd3   : > { %v1862_v8 = vsub.f32 %v445_v1, %v454_v6  ;;  %459 = vadd.xlane.f32.xlu1 %v457_v7 }
  0xd5   : > { %v458_v9 = vmul.f32 %v1862_v8, %v1862_v8 }
  0xd7   : > { %461 = vadd.xlane.f32.xlu1 %v458_v9 }
 0x15c   : > { %v460_v27 = vpop.xlane.xlu1 %459 }
 0x15d   : > { %v463_v28 = vmul.f32 0.0078125, %v460_v27 }
 0x15f   : > { %1588 = vrsqrt.f32 %v463_v28  ;;  %vm467_vm1 = vcmp.eq.f32.partialorder %v463_v28, inf  ;;  %v470_v33 = vand.u32 2147483648, %v463_v28  ;;  %vm469_vm2 = vcmp.eq.f32.partialorder %v463_v28, 0.0 }
 0x160   : > { %v462_v29 = vpop.xlane.xlu1 %461 }
 0x161   : > { %v464_v30 = vmul.f32 0.0078125, %v462_v29 }
 0x163   : > { %1590 = vrsqrt.f32 %v464_v30  ;;  %vm474_vm3 = vcmp.eq.f32.partialorder %v464_v30, inf  ;;  %v477_v39 = vand.u32 2147483648, %v464_v30  ;;  %vm476_vm4 = vcmp.eq.f32.partialorder %v464_v30, 0.0 }
 0x16c   : > { %v1589_v31 = vpop.eup %1588 }
 0x16d   : > { %v466_v32 = vmul.f32 %v1589_v31, %v463_v28 }
 0x16f   : > { %v468_v34 = vsel %vm467_vm1, %v463_v28, %v466_v32 }
 0x170   : > { %v1591_v35 = vpop.eup %1590  ;;  %v471_v36 = vsel %vm469_vm2, %v470_v33, %v468_v34 }
 0x171   : > { %v479_v37 = vadd.f32 1e-06, %v471_v36  ;;  %v473_v38 = vmul.f32 %v1591_v35, %v464_v30 }
 0x173   : > { %1592 = vrcp.f32 %v479_v37  ;;  %v475_v40 = vsel %vm474_vm3, %v464_v30, %v473_v38 }
 0x174   : > { %v478_v41 = vsel %vm476_vm4, %v477_v39, %v475_v40 }
 0x175   : > { %v480_v42 = vadd.f32 1e-06, %v478_v41 }
 0x177   : > { %1594 = vrcp.f32 %v480_v42 }
 0x180   : > { %v1593_v43 = vpop.eup %1592 }
 0x181   : > { %v485_v44 = vmul.f32 %v1593_v43, %v1858_v4 }
 0x183   : > { %v493_v48 = vmul.f32 %v1342_v45, %v485_v44 }
 0x184   : > { %v1595_v46 = vpop.eup %1594 }
 0x185   : > { %v486_v47 = vmul.f32 %v1595_v46, %v1862_v8  ;;  %v501_v51 = vadd.f32 %v1343_v49, %v493_v48 }
 0x187   : > { %v494_v50 = vmul.f32 %v1342_v45, %v486_v47 }
 0x189   : > { %v502_v52 = vadd.f32 %v1343_v49, %v494_v50 }
 0x18b   : > { %v503_v54 = vpack.c.bf16 %v502_v52, %v501_v51 }
 0x18d   : > { %1459 = vmatmul.mubr.bf16.vlgmr.msra.gmra.mxu0 %v503_v54  ;;  %1479 = vmatmul.mubr.bf16.vlgmr.msra.gmra.mxu1 %v503_v54 }
 0x18e   : > { %1483 = vmatpush3.bf16.msra.mxu0 %v1580_v53  ;;  %1498 = vmatprep.mubr.msk.bf16.mxu0 %vm1712_vm0, %v1711_v11 }
 0x18f   : > { %1484 = vmatprep.subr.bf16.mxu0 %v1711_v11 }
 0x192   : > { %1485 = vmatpush3.bf16.msra.mxu0 %v1581_v55 }
 0x193   : > { %1486 = vmatprep.subr.bf16.mxu0 %v1711_v11 }
 0x196   : > { %1487 = vmatpush3.bf16.msra.mxu0 %v1582_v56 }
 0x197   : > { %1488 = vmatprep.subr.bf16.mxu0 %v1711_v11 }
 0x19a   : > { %1489 = vmatpush3.bf16.msra.mxu0 %v1583_v57 }
 0x19b   : > { %1490 = vmatprep.subr.bf16.mxu0 %v1711_v11 }
 0x19e   : > { %1491 = vmatpush3.bf16.msra.mxu0 %v1584_v58 }
 0x19f   : > { %1492 = vmatprep.subr.bf16.mxu0 %v1711_v11 }
 0x1a2   : > { %1493 = vmatpush3.bf16.msra.mxu0 %v1585_v59 }
 0x1a3   : > { %1494 = vmatprep.subr.bf16.mxu0 %v1711_v11 }
 0x1a6   : > { %1495 = vmatpush3.bf16.msra.mxu0 %v1586_v60 }
 0x1a7   : > { %1496 = vmatprep.subr.bf16.mxu0 %v1711_v11 }
 0x1aa   : > { %1497 = vmatpush3.bf16.msra.mxu0 %v1587_v61 }
 0x1ad   : > { %1499 = vmatmul.mubr.bf16.vlgmr.msra.gmra.mxu0 %v503_v54 }
 0x24d   : > { %v609_v0 = vpop.f32.mrf.mxu0  ;;  %v722_v1 = vpop.f32.mrf.mxu1 }
 0x24e   : > { %v610_v2 = vadd.f32 %v1344_v62, %v609_v0  ;;  %v723_v3 = vadd.f32 %v1353_v63, %v722_v1 }
 0x24f   : > { %v1460_v4 = vpop.f32.mrf.mxu0  ;;  %v1480_v5 = vpop.f32.mrf.mxu1 }
 0x250   : > { %v1406_v6 = vpack.c.bf16 %v610_v2, %v610_v2  ;;  %v1408_v7 = vpack.c.bf16 %v723_v3, %v723_v3 }
 0x251   : > { %v612_v8 = vpop.f32.mrf.mxu0  ;;  %v725_v9 = vpop.f32.mrf.mxu1 }
 0x252   : > { %851 = vst.msk [vmem:[%s1914_s17] sm:$0xf] %vm850_vm5, %v1406_v6  ;;  %887 = vst.msk [vmem:[%s1919_s14] sm:$0xf] %vm850_vm5, %v1408_v7  ;;  %v613_v10 = vadd.f32 %v1344_v62, %v612_v8  ;;  %v726_v11 = vadd.f32 %v1353_v63, %v725_v9  ;;  %862 = vrot.lane.b32.xlu1 %v1406_v6, %s1713_s26  ;;  %853 = vrot.lane.b32.xlu0 %v1406_v6, %s1714_s16 }
 0x253   : > { %v1461_v12 = vpop.f32.mrf.mxu0  ;;  %v1481_v13 = vpop.f32.mrf.mxu1 }
 0x254   : > { %v1407_v14 = vpack.c.bf16 %v613_v10, %v613_v10  ;;  %v1409_v15 = vpack.c.bf16 %v726_v11, %v726_v11 }
 0x256   : > { %852 = vst.msk [vmem:[%s1914_s17 + $0x4] sm:$0xf] %vm850_vm5, %v1407_v14  ;;  %888 = vst.msk [vmem:[%s1919_s14 + $0x4] sm:$0xf] %vm850_vm5, %v1409_v15  ;;  %871 = vrot.lane.b32.xlu0 %v1406_v6, %s1715_s19  ;;  %855 = vrot.lane.b32.xlu1 %v1407_v14, %s1714_s16 }
 0x25a   : > { %889 = vrot.lane.b32.xlu0 %v1408_v7, %s1714_s16  ;;  %864 = vrot.lane.b32.xlu1 %v1407_v14, %s1713_s26 }
 0x25d   : > { %v986_v43 = vld [vmem:[%s1914_s17] sm:$0xff] (%p2045_p7)  }
 0x25e   : > { %898 = vrot.lane.b32.xlu0 %v1408_v7, %s1713_s26  ;;  %873 = vrot.lane.b32.xlu1 %v1407_v14, %s1715_s19  ;;  %987 = vst [vmem:[%s969_s22] sm:$0xff] (%p2045_p7), %v986_v43  }
 0x262   : > { %907 = vrot.lane.b32.xlu0 %v1408_v7, %s1715_s19  ;;  %891 = vrot.lane.b32.xlu1 %v1409_v15, %s1714_s16 }
 0x266   : > { %900 = vrot.lane.b32.xlu1 %v1409_v15, %s1713_s26 }
 0x26a   : > { %909 = vrot.lane.b32.xlu1 %v1409_v15, %s1715_s19 }
 0x26d   : > { %v835_v17 = vpop.f32.mrf.mxu0 }
 0x26e   : > { %v836_v18 = vadd.f32 %v1362_v16, %v835_v17 }
 0x26f   : > { %v1500_v19 = vpop.f32.mrf.mxu0 }
 0x270   : > { %v1410_v20 = vpack.c.bf16 %v836_v18, %v836_v18 }
 0x271   : > { %v838_v21 = vpop.f32.mrf.mxu0 }
 0x272   : > { %923 = vst.msk [vmem:[%s1939_s30] sm:$0xf] %vm850_vm5, %v1410_v20  ;;  %v839_v22 = vadd.f32 %v1362_v16, %v838_v21  ;;  %925 = vrot.lane.b32.xlu0 %v1410_v20, %s1714_s16 }
 0x273   : > { %v1501_v23 = vpop.f32.mrf.mxu0 }
 0x274   : > { %v1411_v24 = vpack.c.bf16 %v839_v22, %v839_v22 }
 0x276   : > { %924 = vst.msk [vmem:[%s1939_s30 + $0x4] sm:$0xf] %vm850_vm5, %v1411_v24  ;;  %934 = vrot.lane.b32.xlu0 %v1410_v20, %s1713_s26  ;;  %927 = vrot.lane.b32.xlu1 %v1411_v24, %s1714_s16 }
 0x27a   : > { %943 = vrot.lane.b32.xlu0 %v1410_v20, %s1715_s19  ;;  %936 = vrot.lane.b32.xlu1 %v1411_v24, %s1713_s26 }
 0x27e   : > { %945 = vrot.lane.b32.xlu1 %v1411_v24, %s1715_s19 }
 0x2c4   : > { %v863_v25 = vpop.permute.xlu1 %862  ;;  %v854_v26 = vpop.permute.xlu0 %853 }
 0x2c5   : > { %1375 = vst.msk [vmem:[%s1914_s17 + $0x10] sm:$0xf] %vm850_vm5, %v863_v25  ;;  %1373 = vst.msk [vmem:[%s1914_s17 + $0x8] sm:$0xf] %vm850_vm5, %v854_v26 }
 0x2c8   : > { %v872_v27 = vpop.permute.xlu0 %871  ;;  %v856_v28 = vpop.permute.xlu1 %855 }
 0x2c9   : > { %1377 = vst.msk [vmem:[%s1914_s17 + $0x18] sm:$0xf] %vm850_vm5, %v872_v27  ;;  %1374 = vst.msk [vmem:[%s1914_s17 + $0xc] sm:$0xf] %vm850_vm5, %v856_v28 }
 0x2cc   : > { %v890_v29 = vpop.permute.xlu0 %889  ;;  %v865_v30 = vpop.permute.xlu1 %864 }
 0x2cd   : > { %1381 = vst.msk [vmem:[%s1919_s14 + $0x8] sm:$0xf] %vm850_vm5, %v890_v29  ;;  %1376 = vst.msk [vmem:[%s1914_s17 + $0x14] sm:$0xf] %vm850_vm5, %v865_v30 }
 0x2d0   : > { %v899_v31 = vpop.permute.xlu0 %898  ;;  %v874_v32 = vpop.permute.xlu1 %873  ;;  %v990_v44 = vld [vmem:[%s1914_s17 + $0x8] sm:$0xff] (%p2045_p7)  }
 0x2d1   : > { %1383 = vst.msk [vmem:[%s1919_s14 + $0x10] sm:$0xf] %vm850_vm5, %v899_v31  ;;  %1378 = vst.msk [vmem:[%s1914_s17 + $0x1c] sm:$0xf] %vm850_vm5, %v874_v32 }
 0x2d2   : > { %991 = vst [vmem:[%s969_s22 + $0x10] sm:$0xff] (%p2045_p7), %v990_v44  }
 0x2d4   : > { %v908_v33 = vpop.permute.xlu0 %907  ;;  %v892_v34 = vpop.permute.xlu1 %891  ;;  %v994_v45 = vld [vmem:[%s1914_s17 + $0x10] sm:$0xff] (%p2045_p7)  }
 0x2d5   : > { %1385 = vst.msk [vmem:[%s1919_s14 + $0x18] sm:$0xf] %vm850_vm5, %v908_v33  ;;  %1382 = vst.msk [vmem:[%s1919_s14 + $0xc] sm:$0xf] %vm850_vm5, %v892_v34 }
 0x2d6   : > { %995 = vst [vmem:[%s969_s22 + $0x20] sm:$0xff] (%p2045_p7), %v994_v45  }
 0x2d8   : > { %v901_v35 = vpop.permute.xlu1 %900  ;;  %v998_v46 = vld [vmem:[%s1914_s17 + $0x18] sm:$0xff] (%p2045_p7)  }
 0x2d9   : > { %1384 = vst.msk [vmem:[%s1919_s14 + $0x14] sm:$0xf] %vm850_vm5, %v901_v35  ;;  %999 = vst [vmem:[%s969_s22 + $0x30] sm:$0xff] (%p2045_p7), %v998_v46  }
 0x2dc   : > { %v910_v36 = vpop.permute.xlu1 %909 }
 0x2dd   : > { %1386 = vst.msk [vmem:[%s1919_s14 + $0x1c] sm:$0xf] %vm850_vm5, %v910_v36 }
 0x2e4   : > { %v926_v37 = vpop.permute.xlu0 %925 }
 0x2e5   : > { %1389 = vst.msk [vmem:[%s1939_s30 + $0x8] sm:$0xf] %vm850_vm5, %v926_v37 }
 0x2e8   : > { %v935_v38 = vpop.permute.xlu0 %934  ;;  %v928_v39 = vpop.permute.xlu1 %927 }
 0x2e9   : > { %1391 = vst.msk [vmem:[%s1939_s30 + $0x10] sm:$0xf] %vm850_vm5, %v935_v38  ;;  %1390 = vst.msk [vmem:[%s1939_s30 + $0xc] sm:$0xf] %vm850_vm5, %v928_v39 }
 0x2ec   : > { %v944_v40 = vpop.permute.xlu0 %943  ;;  %v937_v41 = vpop.permute.xlu1 %936 }
 0x2ed   : > { %1393 = vst.msk [vmem:[%s1939_s30 + $0x18] sm:$0xf] %vm850_vm5, %v944_v40  ;;  %1392 = vst.msk [vmem:[%s1939_s30 + $0x14] sm:$0xf] %vm850_vm5, %v937_v41  ;;  %966 = sbr.rel (!%p2045_p7) target bundleno = 754 (0x2f2), region = 72 }
 0x2f0   : > { %v946_v42 = vpop.permute.xlu1 %945 }
 0x2f1   : > { %1394 = vst.msk [vmem:[%s1939_s30 + $0x1c] sm:$0xf] %vm850_vm5, %v946_v42 }
 0x2f2 PF: > { %p2046_p9 = scmp.ne.s32.totalorder %s2038_s25, 0 }
 0x2f3   : > { %s1413_s29 = sshll.u32 (%p2046_p9), %s1789_s20, 3  ;;  %v1061_v47 = vld [vmem:[%s1919_s14] sm:$0xff] (%p2046_p9)   ;;  %v1065_v48 = vld [vmem:[%s1919_s14 + $0x8] sm:$0xff] (%p2046_p9)   ;;  %v1069_v49 = vld [vmem:[%s1919_s14 + $0x10] sm:$0xff] (%p2046_p9)  }
 0x2f4   : > { %1041 = sbr.rel (!%p2046_p9) target bundleno = 761 (0x2f9), region = 113  ;;  %s1044_s17 = scalar_lea.vmem (%p2046_p9), %s2035_s10, %s1413_s29  ;;  %v1073_v50 = vld [vmem:[%s1919_s14 + $0x18] sm:$0xff] (%p2046_p9)  }
 0x2f5   : > { %1062 = vst [vmem:[%s1044_s17] sm:$0xff] (%p2046_p9), %v1061_v47   ;;  %1066 = vst [vmem:[%s1044_s17 + $0x10] sm:$0xff] (%p2046_p9), %v1065_v48  }
 0x2f6   : > { %1070 = vst [vmem:[%s1044_s17 + $0x20] sm:$0xff] (%p2046_p9), %v1069_v49   ;;  %1074 = vst [vmem:[%s1044_s17 + $0x30] sm:$0xff] (%p2046_p9), %v1073_v50  }
 0x2f9 PF: > { %p2047_p13 = scmp.ne.s32.totalorder %s2038_s25, 0 }
 0x2fa   : > { %s1414_s16 = sshll.u32 (%p2047_p13), %s1789_s20, 3  ;;  %v1136_v51 = vld [vmem:[%s1939_s30] sm:$0xff] (%p2047_p13)   ;;  %v1140_v52 = vld [vmem:[%s1939_s30 + $0x8] sm:$0xff] (%p2047_p13)   ;;  %v1144_v53 = vld [vmem:[%s1939_s30 + $0x10] sm:$0xff] (%p2047_p13)  }
 0x2fb   : > { %1116 = sbr.rel (!%p2047_p13) target bundleno = 768 (0x300), region = 154  ;;  %s1119_s14 = scalar_lea.vmem (%p2047_p13), %s2036_s11, %s1414_s16  ;;  %v1148_v54 = vld [vmem:[%s1939_s30 + $0x18] sm:$0xff] (%p2047_p13)  }
 0x2fc   : > { %1137 = vst [vmem:[%s1119_s14] sm:$0xff] (%p2047_p13), %v1136_v51   ;;  %1141 = vst [vmem:[%s1119_s14 + $0x10] sm:$0xff] (%p2047_p13), %v1140_v52  }
 0x2fd   : > { %1145 = vst [vmem:[%s1119_s14 + $0x20] sm:$0xff] (%p2047_p13), %v1144_v53   ;;  %1149 = vst [vmem:[%s1119_s14 + $0x30] sm:$0xff] (%p2047_p13), %v1148_v54  }
 0x300 PF: > { %p21_p1 = scmp.ge.s32.totalorder %s1791_s21, 4   ;;  %s2048_s17 = smov %s1700_s18 }
 0x301   : > { %s2049_s18 = smov %s1799_s24  ;;  %s2050_s19 = smov %s1791_s21 }
 0x302   :  { %23 = sbr.rel (!%p21_p1) target bundleno = 3 (0x3), region = 255 }
 0x307   :  { %1215 = vsyncpa [#allocation3], 1 }
 0x308   :  { %1217 = vsyncpa [#allocation3 + $0x1], 1 }
 0x309   :  { %1218 = vsyncpa [#allocation5], 1 }

// kernel: decoder_forward.25
= control target key start
LH: loop header
LB: loop body
LE: loop exit
PB: predicated region body
PF: predicated region fallthrough
CT: control target
= control target key end

     0   :  { %8 = vsyncpa [#allocation3], 0  ;;  %s565_s0 = inlined_call_operand.vmem [shape: f32[32,128], index: 0, kind: input, shape index: {}]   ;;  %s566_s1 = inlined_call_operand.vmem [shape: f32[1,128], index: 1, kind: input, shape index: {}]   ;;  %s567_s2 = inlined_call_operand.vmem [shape: f32[1,128], index: 2, kind: input, shape index: {}]   ;;  %s568_s3 = inlined_call_operand.hbm [shape: f32[32,128], index: 3, kind: output, shape index: {}]  }
   0x1   :  { %10 = vsyncpa [#allocation3 + $0x1], 0  ;;  %s458_s12 = smov 0   ;;  %s460_s13 = smov 0  }
   0x2   :  { %s462_s14 = smov 0   ;;  %s464_s15 = smov 0  }
   0x3 LB: > { %s479_s16 = sadd.s32 4294967295, %s433_s15   ;;  %s309_s17 = sadd.s32 4294967294, %s433_s15   ;;  %s433_s15 = sphi %s464_s15, %s574_s15   ;;  %s429_s14 = sphi %s462_s14, %s573_s14   ;;  %s425_s13 = sphi %s460_s13, %s572_s13   ;;  %s421_s12 = sphi %s458_s12, %s571_s12  }
   0x4   : > { %s483_s18 = sadd.s32 1, %s433_s15   ;;  %s91_s19 = sadd.s32 1, %s429_s14 }
   0x5   : > { %s88_s20 = ssub.s32 %s433_s15, %s483_s18  ;;  %p101_p0 = scmp.ne.s32.totalorder %s429_s14, %s425_s13 }
   0x6   : > { %p89_p1 = scmp.eq.s32.totalorder %s88_s20, 0  ;;  %p102_p2 = scmp.eq.s32.totalorder %s479_s16, 1 }
   0x7   : > { %p107_p3 = scmp.ne.s32.totalorder %s425_s13, %s421_s12  ;;  %p108_p4 = scmp.eq.s32.totalorder %s309_s17, 1 }
   0x8   : > { %s494_s21 = scalar_select %p89_p1, %s429_s14, %s91_s19  }
   0x9   : > { %p496_p5 = por %p102_p2, %p101_p0  ;;  %p500_p6 = por %p108_p4, %p107_p3 }
   0xa   : > { %p312_p7 = scmp.ge.s32.totalorder %s433_s15, 1  ;;  %p141_p8 = scmp.lt.s32.totalorder %s433_s15, 3 }
   0xc   : > { %p142_p9 = pnand %p312_p7, %p141_p8 }
   0xd   : > { %s314_s24 = sshll.u32 (!%p142_p9), %s479_s16, 1  ;;  %s162_s29 = sand.u32 (!%p142_p9), 1, %s425_s13  }
   0xe   : > { %145 = sbr.rel (%p142_p9) target bundleno = 365 (0x16d), region = 32  ;;  %p166_p10 = scmp.lt.s32.totalorder (!%p142_p9), %s314_s24, 3 }
   0xf   : > { %s313_s5 = sshll.u32 (!%p142_p9), %s162_s29, 4  ;;  %s323_s8 = sshll.u32 (!%p142_p9), %s479_s16, 8 }
  0x10   : > { %s164_s9 = scalar_lea.vmem (!%p142_p9), [#allocation2], %s313_s5  ;;  %s521_s19 = scalar_lea.hbm (!%p142_p9), %s568_s3, %s323_s8 }
  0x11   : > { %s247_s10 = sshll.u32 (!%p142_p9), %s164_s9, 4  ;;  %s525_s20 = scalar_lea.sflag (!%p142_p9), [#allocation3], %s162_s29  ;;  %s523_s10 = int_to_ptr.vmem [resolvable:$true] %s247_s10 }
  0x12   : > { %s435_s16 = smov (!%p142_p9), [#allocation2]  }
  0x13   : > { %s576_s24 = smov (!%p166_p10, %s314_s24), 3  ;;  %v316_v27 = vld [vmem:[%s566_s1] ss:$0 sm:$0xff] }
  0x14   : > { %s315_s25 = sshll.u32 %s576_s24, 3  ;;  %v317_v29 = vld [vmem:[%s567_s2] ss:$0 sm:$0xff]  ;;  %s373_s24 = scalar_lea.vmem %s523_s10, 256 }
  0x15   : > { %s169_s28 = scalar_lea.vmem %s565_s0, %s315_s25  ;;  %p374_p11 = scmp.ne.s32.totalorder %s523_s10, %s373_s24 }
  0x16   : > { %v172_v0 = vld [vmem:[%s169_s28] sm:$0xff]  ;;  %v173_v1 = vld [vmem:[%s169_s28 + $0x8] sm:$0xff]  ;;  %s377_s25 = sshll.u32 %s435_s16, 4  ;;  %s378_s25 = int_to_ptr.vmem [resolvable:$false] %s377_s25 }
  0x17   : > { %176 = vadd.xlane.f32.xlu0 %v172_v0  ;;  %p375_p12 = pnand %p374_p11, %p496_p5  ;;  %s379_s26 = scalar_lea.vmem %s378_s25, 512 }
  0x18   : > { %p380_p0 = scmp.lt.s32.totalorder %s523_s10, %s378_s25  ;;  %p381_p1 = scmp.lt.s32.totalorder %s379_s26, %s373_s24 }
  0x19   : > { %p376_p13 = pneg %p375_p12 }
  0x1a   : > { %p382_p2 = por %p381_p1, %p380_p0 }
  0x1b   : > { %178 = vadd.xlane.f32.xlu0 %v173_v1 }
  0x1c   : > { %p383_p3 = pnand %p382_p2, %p376_p13 }
  0xa0   : > { %v177_v2 = vpop.xlane.xlu0 %176 }
  0xa1   : > { %v181_v3 = vmul.f32 0.0078125, %v177_v2 }
  0xa3   : > { %v183_v4 = vsub.f32 %v172_v0, %v181_v3 }
  0xa4   : > { %v179_v5 = vpop.xlane.xlu0 %178 }
  0xa5   : > { %v182_v6 = vmul.f32 0.0078125, %v179_v5  ;;  %v185_v7 = vmul.f32 %v183_v4, %v183_v4 }
  0xa7   : > { %v184_v8 = vsub.f32 %v173_v1, %v182_v6  ;;  %187 = vadd.xlane.f32.xlu1 %v185_v7 }
  0xa9   : > { %v186_v9 = vmul.f32 %v184_v8, %v184_v8 }
  0xab   : > { %189 = vadd.xlane.f32.xlu1 %v186_v9 }
 0x130   : > { %v188_v10 = vpop.xlane.xlu1 %187 }
 0x131   : > { %v191_v11 = vmul.f32 0.0078125, %v188_v10 }
 0x133   : > { %365 = vrsqrt.f32 %v191_v11  ;;  %vm195_vm0 = vcmp.eq.f32.partialorder %v191_v11, inf  ;;  %v198_v16 = vand.u32 2147483648, %v191_v11  ;;  %vm197_vm1 = vcmp.eq.f32.partialorder %v191_v11, 0.0 }
 0x134   : > { %v190_v12 = vpop.xlane.xlu1 %189 }
 0x135   : > { %v192_v13 = vmul.f32 0.0078125, %v190_v12 }
 0x137   : > { %367 = vrsqrt.f32 %v192_v13  ;;  %vm202_vm2 = vcmp.eq.f32.partialorder %v192_v13, inf  ;;  %v205_v22 = vand.u32 2147483648, %v192_v13  ;;  %vm204_vm3 = vcmp.eq.f32.partialorder %v192_v13, 0.0 }
 0x140   : > { %v366_v14 = vpop.eup %365 }
 0x141   : > { %v194_v15 = vmul.f32 %v366_v14, %v191_v11 }
 0x143   : > { %v196_v17 = vsel %vm195_vm0, %v191_v11, %v194_v15 }
 0x144   : > { %v368_v18 = vpop.eup %367  ;;  %v199_v19 = vsel %vm197_vm1, %v198_v16, %v196_v17 }
 0x145   : > { %v207_v20 = vadd.f32 1e-06, %v199_v19  ;;  %v201_v21 = vmul.f32 %v368_v18, %v192_v13 }
 0x147   : > { %369 = vrcp.f32 %v207_v20  ;;  %v203_v23 = vsel %vm202_vm2, %v192_v13, %v201_v21 }
 0x148   : > { %v206_v24 = vsel %vm204_vm3, %v205_v22, %v203_v23 }
 0x149   : > { %v208_v25 = vadd.f32 1e-06, %v206_v24 }
 0x14b   : > { %371 = vrcp.f32 %v208_v25 }
 0x154   : > { %v370_v26 = vpop.eup %369 }
 0x155   : > { %v213_v28 = vmul.f32 %v370_v26, %v183_v4 }
 0x157   : > { %v221_v30 = vmul.f32 %v316_v27, %v213_v28 }
 0x158   : > { %v372_v31 = vpop.eup %371 }
 0x159   : > { %v214_v32 = vmul.f32 %v372_v31, %v184_v8  ;;  %v229_v33 = vadd.f32 %v317_v29, %v221_v30 }
 0x15b   : > { %v222_v34 = vmul.f32 %v316_v27, %v214_v32  ;;  %231 = vst [vmem:[%s164_s9] sm:$0xff] %v229_v33 }
 0x15d   : > { %v230_v35 = vadd.f32 %v317_v29, %v222_v34 }
 0x15f   : > { %232 = vst [vmem:[%s164_s9 + $0x8] sm:$0xff] %v230_v35 }
 0x160   : > { %386 = shalt.err (!%p383_p3)
}
 0x161   : > { %s387_s27 = scalar_lea.hbm %s521_s19, 256  ;;  %s391_s30 = scalar_lea.hbm %s568_s3, 512 }
 0x162   : > { %p388_p4 = scmp.ne.s32.totalorder %s521_s19, %s387_s27  ;;  %p392_p9 = scmp.lt.s32.totalorder %s521_s19, %s568_s3 }
 0x163   : > { %p393_p10 = scmp.lt.s32.totalorder %s391_s30, %s387_s27 }
 0x164   : > { %p389_p7 = pnand %p388_p4, %p496_p5 }
 0x165   : > { %p394_p11 = por %p393_p10, %p392_p9 }
 0x166   : > { %p390_p8 = pneg %p389_p7 }
 0x168   : > { %p395_p12 = pnand %p394_p11, %p390_p8 }
 0x16a   : > { %398 = shalt.err (!%p395_p12)
}
 0x16b   : > { %s436_s6 = smov 128   ;;  %s437_s7 = smov 8  }
 0x16c   : > { %324 = dma.vmem_to_hbm [thread:$0]  (%p496_p5), %s523_s10, 256, %s521_s19, %s525_s20, %s436_s6, %s436_s6, %s437_s7  }
 0x16d PF: > { %p330_p13 = scmp.ge.s32.totalorder %s433_s15, 2  ;;  %s262_s8 = sand.u32 1, %s421_s12  }
 0x16e   : > { %s263_s9 = scalar_lea.sflag [#allocation3], %s262_s8 }
 0x16f   : > { %p327_p0 = pnand %p330_p13, %p500_p6 }
 0x171   : > { %p328_p1 = pneg %p327_p0 }
 0x173   : > { %416 = dma.done.wait (%p328_p1), %s263_s9, 256  }
 0x174   : > { %418 = vsyncadd (%p328_p1), %s263_s9, 4294967040  ;;  %p13_p2 = scmp.ge.s32.totalorder %s483_s18, 4   ;;  %s571_s12 = smov %s425_s13 }
 0x175   : > { %s572_s13 = smov %s429_s14  ;;  %s573_s14 = smov %s494_s21 }
 0x176   : > { %s574_s15 = smov %s483_s18  ;;  %15 = sbr.rel (!%p13_p2) target bundleno = 3 (0x3), region = 67 }
 0x17b   :  { %268 = vsyncpa [#allocation3], 1 }
 0x17c   :  { %270 = vsyncpa [#allocation3 + $0x1], 1 }

// kernel: decoder_forward.17
= control target key start
LH: loop header
LB: loop body
LE: loop exit
PB: predicated region body
PF: predicated region fallthrough
CT: control target
= control target key end

     0   :  { %s1025_s24 = smov 0   ;;  %s1027_s25 = smov 0   ;;  %s1142_s0 = inlined_call_operand.vmem [shape: bf16[4,32,32], index: 0, kind: input, shape index: {}]   ;;  %s1143_s1 = inlined_call_operand.vmem [shape: bf16[4,32,32], index: 1, kind: input, shape index: {}]   ;;  %s1144_s2 = inlined_call_operand.vmem [shape: bf16[4,32,32], index: 2, kind: input, shape index: {}]   ;;  %s1145_s3 = inlined_call_operand.vmem [shape: bf16[2,16,16], index: 3, kind: input, shape index: {}]   ;;  %s1146_s4 = inlined_call_operand.vmem [shape: bf16[4,32,128], index: 4, kind: input, shape index: {}]   ;;  %s1147_s5 = inlined_call_operand.vmem [shape: f32[1,128], index: 5, kind: input, shape index: {}]   ;;  %s1148_s6 = inlined_call_operand.vmem [shape: f32[2,16,128], index: 6, kind: input, shape index: {}]   ;;  %s1149_s7 = inlined_call_operand.vmem [shape: f32[2,16,128], index: 7, kind: output, shape index: {}]  }
   0x1   :  { %s1029_s26 = smov 0   ;;  %s1031_s27 = smov 0  }
   0x2   :  { %s1033_s28 = smov 0  }
   0x3 LB: > { %s26_s29 = sadd.s32 1, %s973_s26  ;;  %s29_s30 = sadd.s32 1, %s977_s27  ;;  %s981_s28 = sphi %s1033_s28, %s17_s28   ;;  %s977_s27 = sphi %s1031_s27, %s1153_s27   ;;  %s973_s26 = sphi %s1029_s26, %s1152_s26   ;;  %s969_s25 = sphi %s1027_s25, %s1151_s25   ;;  %s965_s24 = sphi %s1025_s24, %s1150_s24  }
   0x4   : > { %p27_p0 = scmp.ge.s32.totalorder %s26_s29, 4  ;;  %p822_p1 = scmp.ge.s32.totalorder %s981_s28, 1 }
   0x5   : > { %p320_p2 = scmp.lt.s32.totalorder %s981_s28, 9 }
   0x6   : > { %s1155_s29 = smov (%p27_p0, %s26_s29), 0  ;;  %s1157_s30 = smov (!%p27_p0, %s29_s30), %s977_s27 }
   0x7   : > { %p321_p3 = pnand %p822_p1, %p320_p2  ;;  %p31_p4 = scmp.ge.s32.totalorder %s1157_s30, 2 }
   0x8   : > { %s823_s8 = sshll.u32 (!%p321_p3), %s969_s25, 1  ;;  %p390_p5 = scmp.lt.s32.totalorder (!%p321_p3), %s965_s24, 3 }
   0x9   : > { %s1159_s30 = smov (%p31_p4, %s1157_s30), 0  ;;  %324 = sbr.rel (%p321_p3) target bundleno = 963 (0x3c3), region = 48 }
   0xa   : > { %p392_p6 = scmp.lt.s32.totalorder (!%p321_p3), %s823_s8, 3  ;;  %p419_p7 = scmp.lt.s32.totalorder (!%p321_p3), %s969_s25, 1 }
   0xb   : > { %p848_p8 = scmp.ne.s32.totalorder (!%p321_p3), %s965_s24, 0 }
   0xe   : > { %v983_v0 = vmov 0.0   ;;  %vm984_vm0 = vmmov 0   ;;  %s391_s9 = scalar_select %p390_p5, %s965_s24, 3  ;;  %vm458_vm1 = vcmask 261120   ;;  %vm506_vm2 = vcmask 130048  }
   0xf   : > { %868 = vmatprep.subr.bf16.mxu0 %v983_v0  ;;  %870 = vmatprep.mubr.msk.bf16.mxu0 %vm984_vm0, %v983_v0  ;;  %s1161_s8 = smov (!%p392_p6, %s823_s8), 3  ;;  %s1163_s25 = smov (!%p419_p7, %s969_s25), 1 }
  0x10   : > { %874 = vmatprep.subr.bf16.mxu1 %v983_v0  ;;  %876 = vmatprep.mubr.msk.bf16.mxu1 %vm984_vm0, %v983_v0  ;;  %s824_s10 = sshll.u32 %s391_s9, 2  ;;  %s854_s11 = sshll.u32 %s391_s9, 4 }
  0x11   : > { %s395_s12 = sadd.s32 %s824_s10, %s1161_s8  ;;  %s1072_s15 = scalar_lea.vmem %s1146_s4, %s854_s11 }
  0x12   : > { %s1074_s16 = sshll.u32 %s395_s12, 2  ;;  %s855_s23 = sshll.u32 %s1163_s25, 4  ;;  %v933_v32 = vld [vmem:[%s1072_s15 + $0x8] sm:$0xff]   ;;  %v934_v34 = vld [vmem:[%s1072_s15] sm:$0xff]  }
  0x13   : > { %s397_s19 = scalar_lea.vmem %s1142_s0, %s1074_s16  ;;  %s407_s22 = scalar_lea.vmem %s1143_s1, %s1074_s16 }
  0x14   : > { %v930_v1 = vld [vmem:[%s407_s22] sm:$0xff]   ;;  %s1091_s10 = scalar_lea.vmem %s1148_s6, %s855_s23  ;;  %s1096_s13 = scalar_lea.vmem %s1149_s7, %s855_s23 }
  0x15   : > { %v463_v2 = vsel %vm458_vm1, %v930_v1, 0  ;;  %v931_v3 = vld [vmem:[%s397_s19] sm:$0xff]   ;;  %s853_s14 = sshll.u32 %s1163_s25, 3  ;;  %s417_s21 = scalar_lea.vmem %s1144_s2, %s1074_s16 }
  0x16   : > { %869 = vmatpush3.bf16.xpose.msra.mxu0 %v463_v2  ;;  %s423_s20 = scalar_lea.vmem %s1145_s3, %s853_s14  ;;  %v932_v25 = vld [vmem:[%s417_s21] sm:$0xff]  }
  0x17   : > { %v858_v4 = vld [vmem:[%s423_s20] sm:$0xff]   ;;  %875 = vmatpush3.bf16.msra.mxu1 %v932_v25 }
  0x18   : > { %v859_v5 = vunpack.c.l.bf16 %v858_v4  ;;  %v860_v8 = vunpack.c.h.bf16 %v858_v4  ;;  %880 = vmatprep.subr.bf16.mxu1 %v983_v0 }
  0x1d   : > { %871 = vmatmul.mubr.msk.bf16.vlgmr.msra.gmra.mxu0 %vm458_vm1, %v931_v3 }
  0xdd   : > { %v499_v6 = vpop.f32.mrf.mxu0 }
  0xde   : > { %v500_v7 = vadd.f32 %v859_v5, %v499_v6 }
  0xdf   : > { %v872_v9 = vpop.f32.mrf.mxu0 }
  0xe0   : > { %v507_v10 = vsel %vm506_vm2, %v500_v7, -inf }
  0xe1   : > { %508 = vmax.xlane.f32.xlu0 %v507_v10  ;;  %v502_v11 = vpop.f32.mrf.mxu0 }
  0xe2   : > { %v503_v12 = vadd.f32 %v860_v8, %v502_v11 }
  0xe3   : > { %v873_v13 = vpop.f32.mrf.mxu0 }
  0xe4   : > { %v510_v14 = vsel %vm506_vm2, %v503_v12, -inf }
  0xe5   : > { %511 = vmax.xlane.f32.xlu0 %v510_v14 }
 0x16a   : > { %v509_v15 = vpop.xlane.xlu0 %508 }
 0x16b   : > { %v513_v16 = vsub.f32 %v500_v7, %v509_v15 }
 0x16d   : > { %v515_v17 = vmul.f32 1.442695, %v513_v16 }
 0x16e   : > { %v512_v18 = vpop.xlane.xlu0 %511 }
 0x16f   : > { %935 = vpow2.f32 %v515_v17  ;;  %v514_v19 = vsub.f32 %v503_v12, %v512_v18 }
 0x171   : > { %v517_v20 = vmul.f32 1.442695, %v514_v19 }
 0x173   : > { %937 = vpow2.f32 %v517_v20 }
 0x17c   : > { %v936_v21 = vpop.eup %935 }
 0x17d   : > { %v519_v22 = vsel %vm506_vm2, %v936_v21, 0.0 }
 0x17e   : > { %520 = vadd.xlane.f32.xlu1 %v519_v22 }
 0x180   : > { %v938_v23 = vpop.eup %937 }
 0x181   : > { %v522_v24 = vsel %vm506_vm2, %v938_v23, 0.0 }
 0x182   : > { %523 = vadd.xlane.f32.xlu1 %v522_v24 }
 0x207   : > { %v521_v26 = vpop.xlane.xlu1 %520 }
 0x208   : > { %939 = vrcp.f32 %v521_v26 }
 0x20b   : > { %v524_v27 = vpop.xlane.xlu1 %523 }
 0x20c   : > { %941 = vrcp.f32 %v524_v27 }
 0x215   : > { %v940_v28 = vpop.eup %939 }
 0x216   : > { %v527_v30 = vmul.f32 %v940_v28, %v936_v21 }
 0x219   : > { %v942_v29 = vpop.eup %941 }
 0x21a   : > { %v528_v31 = vmul.f32 %v942_v29, %v938_v23 }
 0x21c   : > { %v529_v33 = vpack.c.bf16 %v528_v31, %v527_v30 }
 0x21e   : > { %877 = vmatmul.mubr.msk.bf16.vlgmr.msra.gmra.mxu1 %vm506_vm2, %v529_v33 }
 0x21f   : > { %881 = vmatpush3.bf16.msra.mxu1 %v933_v32  ;;  %884 = vmatprep.mubr.msk.bf16.mxu1 %vm984_vm0, %v983_v0 }
 0x220   : > { %882 = vmatprep.subr.bf16.mxu1 %v983_v0 }
 0x223   : > { %883 = vmatpush3.bf16.msra.mxu1 %v934_v34 }
 0x2de   : > { %v575_v35 = vpop.f32.mrf.mxu1 }
 0x2e0   : > { %v878_v36 = vpop.f32.mrf.mxu1 }
 0x2e2   : > { %v578_v37 = vpop.f32.mrf.mxu1 }
 0x2e3   : > { %v582_v38 = vpack.c.bf16 %v578_v37, %v575_v35 }
 0x2e4   : > { %v879_v39 = vpop.f32.mrf.mxu1 }
 0x2e5   : > { %885 = vmatmul.mubr.msk.bf16.vlgmr.msra.gmra.mxu1 %vm458_vm1, %v582_v38 }
 0x3a5   : > { %v636_v40 = vpop.f32.mrf.mxu1 }
 0x3a7   : > { %v886_v41 = vpop.f32.mrf.mxu1  ;;  %646 = sbr.rel (%p848_p8) target bundleno = 945 (0x3b1), region = 52 }
 0x3a9   : > { %v639_v42 = vpop.f32.mrf.mxu1 }
 0x3ab   : > { %v887_v43 = vpop.f32.mrf.mxu1 }
 0x3ac   : > { %v647_v44 = vld [vmem:[%s1091_s10] sm:$0xff]  ;;  %v648_v46 = vld [vmem:[%s1091_s10 + $0x8] sm:$0xff] }
 0x3ad   : > { %v849_v45 = vld [vmem:[%s1147_s5] ss:$0 sm:$0xff] }
 0x3ae   : > { %v656_v47 = vadd.f32 %v849_v45, %v647_v44  ;;  %v657_v48 = vadd.f32 %v849_v45, %v648_v46 }
 0x3b0   : > { %658 = vst [vmem:[#allocation2] sm:$0xff] %v656_v47  ;;  %659 = vst [vmem:[#allocation2 + $0x8] sm:$0xff] %v657_v48 }
 0x3b1 PF: > { %p850_p9 = scmp.ne.s32.totalorder %s965_s24, 3 }
 0x3b6   : > { %669 = sbr.rel (%p850_p9) target bundleno = 963 (0x3c3), region = 56 }
 0x3b7   : > { %v660_v49 = vld [vmem:[#allocation2] sm:$0xff]  ;;  %v661_v50 = vld [vmem:[#allocation2 + $0x8] sm:$0xff] }
 0x3b8   : > { %v662_v51 = vadd.f32 %v660_v49, %v636_v40  ;;  %v663_v52 = vadd.f32 %v661_v50, %v639_v42 }
 0x3ba   : > { %664 = vst [vmem:[#allocation2] sm:$0xff] %v662_v51  ;;  %665 = vst [vmem:[#allocation2 + $0x8] sm:$0xff] %v663_v52 }
 0x3c1   : > { %v670_v53 = vld [vmem:[#allocation2] sm:$0xff]  ;;  %v671_v54 = vld [vmem:[#allocation2 + $0x8] sm:$0xff] }
 0x3c2   : > { %672 = vst [vmem:[%s1096_s13] sm:$0xff] %v670_v53  ;;  %673 = vst [vmem:[%s1096_s13 + $0x8] sm:$0xff] %v671_v54 }
 0x3c3 PF: > { %s17_s28 = sadd.s32 1, %s981_s28   ;;  %s1150_s24 = smov %s973_s26 }
 0x3c4   : > { %p14_p10 = scmp.ge.s32.totalorder %s17_s28, 10   ;;  %s1151_s25 = smov %s977_s27 }
 0x3c5   : > { %s1152_s26 = smov %s1155_s29  ;;  %s1153_s27 = smov %s1159_s30 }
 0x3c6   :  { %16 = sbr.rel (!%p14_p10) target bundleno = 3 (0x3), region = 101 }

// kernel: decoder_forward.18
= control target key start
LH: loop header
LB: loop body
LE: loop exit
PB: predicated region body
PF: predicated region fallthrough
CT: control target
= control target key end

     0   :  { %s1116_s24 = smov 0   ;;  %s1118_s25 = smov 0   ;;  %s1284_s0 = inlined_call_operand.vmem [shape: f32[32,128], index: 0, kind: input, shape index: {}]   ;;  %s1285_s1 = inlined_call_operand.vmem [shape: f32[1,128], index: 1, kind: input, shape index: {}]   ;;  %s1286_s2 = inlined_call_operand.vmem [shape: f32[1,128], index: 2, kind: input, shape index: {}]   ;;  %s1287_s3 = inlined_call_operand.vmem [shape: bf16[128,256], index: 3, kind: input, shape index: {}]   ;;  %s1288_s4 = inlined_call_operand.vmem [shape: f32[1,256], index: 4, kind: input, shape index: {}]   ;;  %s1289_s5 = inlined_call_operand.vmem [shape: bf16[256,128], index: 5, kind: input, shape index: {}]   ;;  %s1290_s6 = inlined_call_operand.vmem [shape: f32[1,128], index: 6, kind: input, shape index: {}]   ;;  %s1291_s7 = inlined_call_operand.vmem [shape: f32[32,128], index: 7, kind: output, shape index: {}]  }
   0x1   :  { %s1120_s26 = smov 0  }
   0x2 LB: > { %s29_s27 = sadd.s32 1, %s1069_s25  ;;  %p903_p0 = scmp.ge.s32.totalorder %s1073_s26, 1  ;;  %s1073_s26 = sphi %s1120_s26, %s17_s26   ;;  %s1069_s25 = sphi %s1118_s25, %s1293_s25   ;;  %s1065_s24 = sphi %s1116_s24, %s1292_s24  }
   0x3   : > { %p31_p1 = scmp.ge.s32.totalorder %s29_s27, 2  ;;  %p282_p2 = scmp.lt.s32.totalorder %s1073_s26, 3 }
   0x5   : > { %s1295_s27 = smov (%p31_p1, %s29_s27), 0  ;;  %p283_p3 = pnand %p903_p0, %p282_p2 }
   0x6   : > { %s904_s28 = sshll.u32 (!%p283_p3), %s1065_s24, 1 }
   0x7   : > { %286 = sbr.rel (%p283_p3) target bundleno = 764 (0x2fc), region = 48  ;;  %p329_p4 = scmp.lt.s32.totalorder (!%p283_p3), %s904_s28, 3 }
   0xc   : > { %s1297_s28 = smov (!%p329_p4, %s904_s28), 3  ;;  %v1002_v10 = vld [vmem:[%s1287_s3 + $0x74] ss:$8 sps:$4 sm:$0xff]   ;;  %v1004_v11 = vld [vmem:[%s1287_s3 + $0x70] ss:$8 sps:$4 sm:$0xff]   ;;  %v1075_v24 = vmov 0  }
   0xd   : > { %s905_s29 = sshll.u32 %s1297_s28, 3  ;;  %558 = vmatprep.subr.bf16.mxu0 %v1002_v10  ;;  %v1005_v12 = vld [vmem:[%s1287_s3 + $0x64] ss:$8 sps:$4 sm:$0xff]   ;;  %v1007_v13 = vld [vmem:[%s1287_s3 + $0x60] ss:$8 sps:$4 sm:$0xff]   ;;  %590 = vmatprep.mubr.bf16.mxu0 %v1075_v24  ;;  %v1027_v27 = vld [vmem:[%s1289_s5 + $0x78] sm:$0xff]  }
   0xe   : > { %s332_s9 = scalar_lea.vmem %s1284_s0, %s905_s29  ;;  %559 = vmatpush1.bf16.msra.mxu0 %v1004_v11  ;;  %v1008_v14 = vld [vmem:[%s1287_s3 + $0x54] ss:$8 sps:$4 sm:$0xff]   ;;  %v1010_v15 = vld [vmem:[%s1287_s3 + $0x50] ss:$8 sps:$4 sm:$0xff]   ;;  %v1011_v16 = vld [vmem:[%s1287_s3 + $0x44] ss:$8 sps:$4 sm:$0xff]   ;;  %955 = vmatprep.subr.bf16.mxu1 %v1027_v27  ;;  %s355_s12 = scalar_lea.vmem %s1291_s7, %s905_s29 }
   0xf   : > { %v1142_v0 = vld [vmem:[%s332_s9] sm:$0xff]  ;;  %v1144_v1 = vld [vmem:[%s332_s9 + $0x8] sm:$0xff]  ;;  %560 = vmatprep.subr.bf16.mxu0 %v1005_v12  ;;  %v1014_v18 = vld [vmem:[%s1287_s3 + $0x34] ss:$8 sps:$4 sm:$0xff]  }
  0x10   : > { %366 = vadd.xlane.f32.xlu0 %v1142_v0  ;;  %v1013_v17 = vld [vmem:[%s1287_s3 + $0x40] ss:$8 sps:$4 sm:$0xff]   ;;  %v1016_v19 = vld [vmem:[%s1287_s3 + $0x30] ss:$8 sps:$4 sm:$0xff]   ;;  %v1017_v20 = vld [vmem:[%s1287_s3 + $0x24] ss:$8 sps:$4 sm:$0xff]  }
  0x11   : > { %v1019_v21 = vld [vmem:[%s1287_s3 + $0x20] ss:$8 sps:$4 sm:$0xff]   ;;  %v1020_v22 = vld [vmem:[%s1287_s3 + $0x14] ss:$8 sps:$4 sm:$0xff]   ;;  %v1022_v23 = vld [vmem:[%s1287_s3 + $0x10] ss:$8 sps:$4 sm:$0xff]  }
  0x12   : > { %561 = vmatpush1.bf16.msra.mxu0 %v1007_v13  ;;  %v1023_v25 = vld [vmem:[%s1287_s3 + $0x4] ss:$8 sps:$4 sm:$0xff]   ;;  %v1025_v26 = vld [vmem:[%s1287_s3] ss:$8 sps:$4 sm:$0xff]   ;;  %v1028_v28 = vld [vmem:[%s1289_s5 + $0x38] sm:$0xff]  }
  0x13   : > { %562 = vmatprep.subr.bf16.mxu0 %v1008_v14  ;;  %v1029_v29 = vld [vmem:[%s1289_s5 + $0x70] sm:$0xff]   ;;  %956 = vmatpush3.bf16.msra.mxu1 %v1028_v28  ;;  %v1031_v31 = vld [vmem:[%s1289_s5 + $0x68] sm:$0xff]   ;;  %v1033_v33 = vld [vmem:[%s1289_s5 + $0x60] sm:$0xff]  }
  0x14   : > { %368 = vadd.xlane.f32.xlu0 %v1144_v1  ;;  %v1030_v30 = vld [vmem:[%s1289_s5 + $0x30] sm:$0xff]   ;;  %957 = vmatprep.subr.bf16.mxu1 %v1029_v29  ;;  %v1032_v32 = vld [vmem:[%s1289_s5 + $0x28] sm:$0xff]   ;;  %v1034_v34 = vld [vmem:[%s1289_s5 + $0x20] sm:$0xff]  }
  0x15   : > { %v1035_v35 = vld [vmem:[%s1289_s5 + $0x58] sm:$0xff]   ;;  %v908_v55 = vld [vmem:[%s1285_s1] ss:$0 sm:$0xff] }
  0x16   : > { %563 = vmatpush1.bf16.msra.mxu0 %v1010_v15  ;;  %v1036_v36 = vld [vmem:[%s1289_s5 + $0x18] sm:$0xff]   ;;  %v909_v59 = vld [vmem:[%s1286_s2] ss:$0 sm:$0xff] }
  0x17   : > { %564 = vmatprep.subr.bf16.mxu0 %v1011_v16  ;;  %958 = vmatpush3.bf16.msra.mxu1 %v1030_v30  ;;  %v460_v13 = vld [vmem:[%s1288_s4] sm:$0x3] }
  0x18   : > { %959 = vmatprep.subr.bf16.mxu1 %v1031_v31  ;;  %v912_v30 = vld [vmem:[%s1290_s6] ss:$0 sm:$0xff] }
  0x1a   : > { %565 = vmatpush1.bf16.msra.mxu0 %v1013_v17 }
  0x1b   : > { %566 = vmatprep.subr.bf16.mxu0 %v1014_v18  ;;  %960 = vmatpush3.bf16.msra.mxu1 %v1032_v32  ;;  %v438_v32 = vadd.f32 %v912_v30, %v1142_v0 }
  0x1c   : > { %961 = vmatprep.subr.bf16.mxu1 %v1033_v33 }
  0x1e   : > { %567 = vmatpush1.bf16.msra.mxu0 %v1016_v19 }
  0x1f   : > { %568 = vmatprep.subr.bf16.mxu0 %v1017_v20  ;;  %962 = vmatpush3.bf16.msra.mxu1 %v1034_v34 }
  0x20   : > { %963 = vmatprep.subr.bf16.mxu1 %v1035_v35 }
  0x22   : > { %569 = vmatpush1.bf16.msra.mxu0 %v1019_v21 }
  0x23   : > { %570 = vmatprep.subr.bf16.mxu0 %v1020_v22  ;;  %964 = vmatpush3.bf16.msra.mxu1 %v1036_v36  ;;  %v439_v36 = vadd.f32 %v912_v30, %v1144_v1 }
  0x26   : > { %571 = vmatpush1.bf16.msra.mxu0 %v1022_v23 }
  0x27   : > { %572 = vmatprep.subr.bf16.mxu0 %v1023_v25 }
  0x2a   : > { %573 = vmatpush1.bf16.msra.mxu0 %v1025_v26 }
  0x99   : > { %v367_v2 = vpop.xlane.xlu0 %366 }
  0x9a   : > { %v371_v3 = vmul.f32 0.0078125, %v367_v2 }
  0x9c   : > { %v1149_v4 = vsub.f32 %v1142_v0, %v371_v3  ;;  %v1037_v3 = vld [vmem:[%s1289_s5 + $0x50] sm:$0xff]  }
  0x9d   : > { %v369_v5 = vpop.xlane.xlu0 %368  ;;  %965 = vmatprep.subr.bf16.mxu1 %v1037_v3 }
  0x9e   : > { %v372_v6 = vmul.f32 0.0078125, %v369_v5  ;;  %v375_v7 = vmul.f32 %v1149_v4, %v1149_v4  ;;  %v1039_v5 = vld [vmem:[%s1289_s5 + $0x48] sm:$0xff]  }
  0xa0   : > { %v1154_v8 = vsub.f32 %v1144_v1, %v372_v6  ;;  %377 = vadd.xlane.f32.xlu1 %v375_v7  ;;  %v1040_v6 = vld [vmem:[%s1289_s5 + $0x8] sm:$0xff]   ;;  %v1041_v7 = vld [vmem:[%s1289_s5 + $0x40] sm:$0xff]  }
  0xa2   : > { %v376_v9 = vmul.f32 %v1154_v8, %v1154_v8 }
  0xa4   : > { %379 = vadd.xlane.f32.xlu1 %v376_v9  ;;  %v462_v9 = vlaneseq }
  0xa6   : > { %v463_v10 = vshrl.u32 %v462_v9, 7 }
  0xa8   : > { %v468_v11 = vsub.s32 1, %v463_v10  ;;  %v464_v12 = vsub.s32 0, %v463_v10 }
  0xaa   : > { %v469_v15 = vrot.slane %v460_v13, %v468_v11  ;;  %v465_v16 = vrot.slane %v460_v13, %v464_v12 }
 0x129   : > { %v378_v37 = vpop.xlane.xlu1 %377 }
 0x12a   : > { %v381_v38 = vmul.f32 0.0078125, %v378_v37 }
 0x12c   : > { %1043 = vrsqrt.f32 %v381_v38  ;;  %vm385_vm0 = vcmp.eq.f32.partialorder %v381_v38, inf  ;;  %v388_v43 = vand.u32 2147483648, %v381_v38  ;;  %vm387_vm1 = vcmp.eq.f32.partialorder %v381_v38, 0.0 }
 0x12d   : > { %v380_v39 = vpop.xlane.xlu1 %379 }
 0x12e   : > { %v382_v40 = vmul.f32 0.0078125, %v380_v39 }
 0x130   : > { %1045 = vrsqrt.f32 %v382_v40  ;;  %vm392_vm2 = vcmp.eq.f32.partialorder %v382_v40, inf  ;;  %v395_v49 = vand.u32 2147483648, %v382_v40  ;;  %vm394_vm3 = vcmp.eq.f32.partialorder %v382_v40, 0.0 }
 0x139   : > { %v1044_v41 = vpop.eup %1043 }
 0x13a   : > { %v384_v42 = vmul.f32 %v1044_v41, %v381_v38 }
 0x13c   : > { %v386_v44 = vsel %vm385_vm0, %v381_v38, %v384_v42 }
 0x13d   : > { %v1046_v45 = vpop.eup %1045  ;;  %v389_v46 = vsel %vm387_vm1, %v388_v43, %v386_v44 }
 0x13e   : > { %v397_v47 = vadd.f32 1e-06, %v389_v46  ;;  %v391_v48 = vmul.f32 %v1046_v45, %v382_v40 }
 0x140   : > { %1047 = vrcp.f32 %v397_v47  ;;  %v393_v50 = vsel %vm392_vm2, %v382_v40, %v391_v48 }
 0x141   : > { %v396_v51 = vsel %vm394_vm3, %v395_v49, %v393_v50 }
 0x142   : > { %v398_v52 = vadd.f32 1e-06, %v396_v51 }
 0x144   : > { %1049 = vrcp.f32 %v398_v52 }
 0x14d   : > { %v1048_v53 = vpop.eup %1047 }
 0x14e   : > { %v403_v54 = vmul.f32 %v1048_v53, %v1149_v4  ;;  %v1038_v4 = vld [vmem:[%s1289_s5 + $0x10] sm:$0xff]  }
 0x14f   : > { %966 = vmatpush3.bf16.msra.mxu1 %v1038_v4 }
 0x150   : > { %v411_v57 = vmul.f32 %v908_v55, %v403_v54  ;;  %967 = vmatprep.subr.bf16.mxu1 %v1039_v5 }
 0x151   : > { %v1050_v56 = vpop.eup %1049 }
 0x152   : > { %v404_v58 = vmul.f32 %v1050_v56, %v1154_v8  ;;  %v419_v62 = vadd.f32 %v909_v59, %v411_v57  ;;  %v1042_v8 = vld [vmem:[%s1289_s5] sm:$0xff]  }
 0x153   : > { %968 = vmatpush3.bf16.msra.mxu1 %v1040_v6 }
 0x154   : > { %v412_v60 = vmul.f32 %v908_v55, %v404_v58  ;;  %969 = vmatprep.subr.bf16.mxu1 %v1041_v7 }
 0x156   : > { %v420_v61 = vadd.f32 %v909_v59, %v412_v60 }
 0x157   : > { %970 = vmatpush3.bf16.msra.mxu1 %v1042_v8 }
 0x158   : > { %v953_v63 = vpack.c.bf16 %v420_v61, %v419_v62 }
 0x15a   : > { %954 = vst [vmem:[#allocation2] sm:$0xff] %v953_v63  }
 0x161   : > { %v1026_v2 = vld [vmem:[#allocation2] sm:$0xff]  }
 0x162   : > { %591 = vmatmul.mubr.bf16.vlgmr.msra.gmra.mxu0 %v1026_v2 }
 0x222   : > { %v592_v14 = vpop.f32.mrf.mxu0 }
 0x223   : > { %v593_v21 = vadd.f32 %v592_v14, %v465_v16 }
 0x224   : > { %v594_v17 = vpop.f32.mrf.mxu0 }
 0x225   : > { %v595_v19 = vadd.f32 %v594_v17, %v469_v15  ;;  %v601_v27 = vmax.f32 %v593_v21, 0.0 }
 0x226   : > { %v596_v18 = vpop.f32.mrf.mxu0 }
 0x227   : > { %v597_v20 = vadd.f32 %v596_v18, %v465_v16  ;;  %v602_v25 = vmax.f32 %v595_v19, 0.0 }
 0x228   : > { %v598_v22 = vpop.f32.mrf.mxu0 }
 0x229   : > { %v599_v23 = vadd.f32 %v598_v22, %v469_v15  ;;  %v603_v24 = vmax.f32 %v597_v20, 0.0 }
 0x22b   : > { %v604_v26 = vmax.f32 %v599_v23, 0.0  ;;  %v605_v29 = vpack.c.bf16 %v603_v24, %v601_v27 }
 0x22d   : > { %v606_v28 = vpack.c.bf16 %v604_v26, %v602_v25 }
 0x22f   : > { %769 = vmatprep.mubr.bf16.mxu1 %v606_v28 }
 0x230   : > { %770 = vmatmul.mubr.bf16.vlgmr.msra.gmra.mxu1 %v605_v29 }
 0x2f0   : > { %v971_v31 = vpop.f32.mrf.mxu1 }
 0x2f2   : > { %v972_v33 = vpop.f32.mrf.mxu1 }
 0x2f3   : > { %v973_v34 = vadd.f32 %v972_v33, %v971_v31 }
 0x2f4   : > { %v974_v35 = vpop.f32.mrf.mxu1 }
 0x2f5   : > { %v778_v37 = vadd.f32 %v973_v34, %v438_v32 }
 0x2f6   : > { %v975_v38 = vpop.f32.mrf.mxu1 }
 0x2f7   : > { %787 = vst [vmem:[%s355_s12] sm:$0xff] %v778_v37  ;;  %v976_v39 = vadd.f32 %v975_v38, %v974_v35 }
 0x2f9   : > { %v779_v40 = vadd.f32 %v976_v39, %v439_v36 }
 0x2fb   : > { %788 = vst [vmem:[%s355_s12 + $0x8] sm:$0xff] %v779_v40 }
 0x2fc PF: > { %s17_s26 = sadd.s32 1, %s1073_s26   ;;  %s1292_s24 = smov %s1069_s25 }
 0x2fd   : > { %p14_p5 = scmp.ge.s32.totalorder %s17_s26, 4   ;;  %s1293_s25 = smov %s1295_s27 }
 0x2ff   :  { %16 = sbr.rel (!%p14_p5) target bundleno = 2 (0x2), region = 95 }

// kernel: decoder_forward.19
= control target key start
LH: loop header
LB: loop body
LE: loop exit
PB: predicated region body
PF: predicated region fallthrough
CT: control target
= control target key end

     0   :  { %s1571_s17 = smov 0   ;;  %s1573_s18 = smov 0   ;;  %s1843_s0 = inlined_call_operand.vmem [shape: f32[32,128], index: 0, kind: input, shape index: {}]   ;;  %s1844_s1 = inlined_call_operand.vmem [shape: f32[1,128], index: 1, kind: input, shape index: {}]   ;;  %s1845_s2 = inlined_call_operand.vmem [shape: f32[1,128], index: 2, kind: input, shape index: {}]   ;;  %s1846_s3 = inlined_call_operand.vmem [shape: bf16[128,128], index: 3, kind: input, shape index: {}]   ;;  %s1847_s4 = inlined_call_operand.vmem [shape: f32[1,128], index: 4, kind: input, shape index: {}]   ;;  %s1848_s5 = inlined_call_operand.vmem [shape: bf16[128,128], index: 5, kind: input, shape index: {}]   ;;  %s1849_s6 = inlined_call_operand.vmem [shape: f32[1,128], index: 6, kind: input, shape index: {}]   ;;  %s1850_s7 = inlined_call_operand.vmem [shape: bf16[128,128], index: 7, kind: input, shape index: {}]   ;;  %s1851_s8 = inlined_call_operand.vmem [shape: f32[1,128], index: 8, kind: input, shape index: {}]   ;;  %s1852_s9 = inlined_call_operand.vmem [shape: bf16[4,32,32], index: 9, kind: output, shape index: {0}]   ;;  %s1853_s10 = inlined_call_operand.vmem [shape: bf16[4,32,32], index: 10, kind: output, shape index: {1}]   ;;  %s1854_s11 = inlined_call_operand.vmem [shape: bf16[4,32,32], index: 11, kind: output, shape index: {2}]  }
   0x1   :  { %s1575_s19 = smov 0  }
   0x2 LB: > { %s1584_s20 = sadd.s32 4294967295, %s1504_s19   ;;  %s1586_s21 = sadd.s32 1, %s1504_s19   ;;  %s1504_s19 = sphi %s1575_s19, %s1858_s19   ;;  %s1500_s18 = sphi %s1573_s18, %s1857_s18   ;;  %s1496_s17 = sphi %s1571_s17, %s1856_s17  }
   0x3   : > { %s220_s22 = ssub.s32 %s1504_s19, %s1586_s21  ;;  %s223_s23 = sadd.s32 1, %s1500_s18 }
   0x4   : > { %p221_p0 = scmp.eq.s32.totalorder %s220_s22, 0  ;;  %p233_p1 = scmp.ne.s32.totalorder %s1500_s18, %s1496_s17 }
   0x5   : > { %p234_p2 = scmp.eq.s32.totalorder %s1584_s20, 1  ;;  %p1255_p3 = scmp.ge.s32.totalorder %s1504_s19, 1 }
   0x6   : > { %s1594_s24 = scalar_select %p221_p0, %s1500_s18, %s223_s23  }
   0x7   : > { %p1596_p4 = por %p234_p2, %p233_p1  ;;  %p343_p5 = scmp.lt.s32.totalorder %s1504_s19, 3 }
   0x9   : > { %p344_p6 = pnand %p1255_p3, %p343_p5 }
   0xa   : > { %s1259_s26 = sshll.u32 (!%p344_p6), %s1584_s20, 1  ;;  %s375_s12 = sand.u32 (!%p344_p6), 1, %s1496_s17  }
   0xb   : > { %347 = sbr.rel (%p344_p6) target bundleno = 717 (0x2cd), region = 56  ;;  %p391_p7 = scmp.lt.s32.totalorder (!%p344_p6), %s1259_s26, 3 }
   0xc   : > { %s1723_s13 = sshll.u32 (!%p344_p6), %s375_s12, 5  ;;  %s1508_s23 = smov (!%p344_p6), 64  }
   0xd   : > { %s1732_s17 = scalar_lea.vmem (!%p344_p6), [#allocation2], %s1723_s13  ;;  %s1737_s22 = scalar_lea.vmem (!%p344_p6), [#allocation3], %s1723_s13 }
  0x10   : > { %s1860_s26 = smov (!%p391_p7, %s1259_s26), 3  ;;  %v1450_v10 = vld [vmem:[%s1846_s3 + $0x38] sm:$0xff]   ;;  %v1506_v11 = vmov 0.0   ;;  %v1452_v13 = vld [vmem:[%s1846_s3 + $0x30] sm:$0xff]   ;;  %v1454_v15 = vld [vmem:[%s1846_s3 + $0x28] sm:$0xff]   ;;  %vm1507_vm0 = vmmov 0  }
  0x11   : > { %s1260_s27 = sshll.u32 %s1860_s26, 3  ;;  %1361 = vmatprep.subr.bf16.mxu0 %v1506_v11  ;;  %1381 = vmatprep.subr.bf16.mxu1 %v1506_v11  ;;  %v1451_v12 = vld [vmem:[%s1848_s5 + $0x38] sm:$0xff]   ;;  %v1453_v14 = vld [vmem:[%s1848_s5 + $0x30] sm:$0xff]   ;;  %v1455_v16 = vld [vmem:[%s1848_s5 + $0x28] sm:$0xff]   ;;  %vm806_vm5 = vcmask 257024   ;;  %s1509_s26 = smov 96  }
  0x12   : > { %s394_s30 = scalar_lea.vmem %s1843_s0, %s1260_s27  ;;  %1362 = vmatpush3.bf16.msra.mxu0 %v1450_v10  ;;  %1382 = vmatpush3.bf16.msra.mxu1 %v1451_v12  ;;  %v1456_v17 = vld [vmem:[%s1846_s3 + $0x20] sm:$0xff]   ;;  %v1458_v19 = vld [vmem:[%s1846_s3 + $0x18] sm:$0xff]   ;;  %v1460_v21 = vld [vmem:[%s1846_s3 + $0x10] sm:$0xff]   ;;  %s1510_s27 = smov 32  }
  0x13   : > { %v400_v0 = vld [vmem:[%s394_s30] sm:$0xff]  ;;  %v401_v1 = vld [vmem:[%s394_s30 + $0x8] sm:$0xff]  ;;  %1363 = vmatprep.subr.bf16.mxu0 %v1506_v11  ;;  %1383 = vmatprep.subr.bf16.mxu1 %v1506_v11  ;;  %v1459_v20 = vld [vmem:[%s1848_s5 + $0x18] sm:$0xff]   ;;  %s1757_s30 = scalar_lea.vmem [#allocation4], %s1723_s13  ;;  %s1331_s12 = sshll.u32 (%p1596_p4), %s1584_s20, 3 }
  0x14   : > { %404 = vadd.xlane.f32.xlu0 %v400_v0  ;;  %v1457_v18 = vld [vmem:[%s1848_s5 + $0x20] sm:$0xff]   ;;  %1377 = vmatprep.mubr.msk.bf16.mxu0 %vm1507_vm0, %v1506_v11  ;;  %v1461_v22 = vld [vmem:[%s1848_s5 + $0x10] sm:$0xff]   ;;  %v1462_v23 = vld [vmem:[%s1846_s3 + $0x8] sm:$0xff]   ;;  %s925_s15 = scalar_lea.vmem (%p1596_p4), %s1852_s9, %s1331_s12 }
  0x15   : > { %1397 = vmatprep.mubr.msk.bf16.mxu1 %vm1507_vm0, %v1506_v11  ;;  %v1463_v24 = vld [vmem:[%s1848_s5 + $0x8] sm:$0xff]   ;;  %v1464_v25 = vld [vmem:[%s1846_s3] sm:$0xff]   ;;  %v1466_v53 = vld [vmem:[%s1850_s7 + $0x38] sm:$0xff]  }
  0x16   : > { %1364 = vmatpush3.bf16.msra.mxu0 %v1452_v13  ;;  %1384 = vmatpush3.bf16.msra.mxu1 %v1453_v14  ;;  %v1465_v26 = vld [vmem:[%s1848_s5] sm:$0xff]   ;;  %v1467_v55 = vld [vmem:[%s1850_s7 + $0x30] sm:$0xff]   ;;  %v1468_v56 = vld [vmem:[%s1850_s7 + $0x28] sm:$0xff]  }
  0x17   : > { %1365 = vmatprep.subr.bf16.mxu0 %v1506_v11  ;;  %1385 = vmatprep.subr.bf16.mxu1 %v1506_v11  ;;  %v1261_v45 = vld [vmem:[%s1844_s1] ss:$0 sm:$0xff]  ;;  %v1470_v58 = vld [vmem:[%s1850_s7 + $0x18] sm:$0xff]   ;;  %v1471_v59 = vld [vmem:[%s1850_s7 + $0x10] sm:$0xff]  }
  0x18   : > { %406 = vadd.xlane.f32.xlu0 %v401_v1  ;;  %v1262_v49 = vld [vmem:[%s1845_s2] ss:$0 sm:$0xff]  ;;  %v1472_v60 = vld [vmem:[%s1850_s7 + $0x8] sm:$0xff]  }
  0x19   : > { %v1469_v57 = vld [vmem:[%s1850_s7 + $0x20] sm:$0xff]  }
  0x1a   : > { %1366 = vmatpush3.bf16.msra.mxu0 %v1454_v15  ;;  %1386 = vmatpush3.bf16.msra.mxu1 %v1455_v16  ;;  %v1473_v61 = vld [vmem:[%s1850_s7] sm:$0xff]  }
  0x1b   : > { %1367 = vmatprep.subr.bf16.mxu0 %v1506_v11  ;;  %1387 = vmatprep.subr.bf16.mxu1 %v1506_v11  ;;  %v1263_v62 = vld [vmem:[%s1847_s4] ss:$0 sm:$0xff] }
  0x1c   : > { %v1272_v63 = vld [vmem:[%s1849_s6] ss:$0 sm:$0xff] }
  0x1d   : > { %v1281_v16 = vld [vmem:[%s1851_s8] ss:$0 sm:$0xff] }
  0x1e   : > { %1368 = vmatpush3.bf16.msra.mxu0 %v1456_v17  ;;  %1388 = vmatpush3.bf16.msra.mxu1 %v1457_v18 }
  0x1f   : > { %1369 = vmatprep.subr.bf16.mxu0 %v1506_v11  ;;  %1389 = vmatprep.subr.bf16.mxu1 %v1506_v11 }
  0x22   : > { %1370 = vmatpush3.bf16.msra.mxu0 %v1458_v19  ;;  %1390 = vmatpush3.bf16.msra.mxu1 %v1459_v20 }
  0x23   : > { %1371 = vmatprep.subr.bf16.mxu0 %v1506_v11  ;;  %1391 = vmatprep.subr.bf16.mxu1 %v1506_v11 }
  0x26   : > { %1372 = vmatpush3.bf16.msra.mxu0 %v1460_v21  ;;  %1392 = vmatpush3.bf16.msra.mxu1 %v1461_v22 }
  0x27   : > { %1373 = vmatprep.subr.bf16.mxu0 %v1506_v11  ;;  %1393 = vmatprep.subr.bf16.mxu1 %v1506_v11 }
  0x2a   : > { %1374 = vmatpush3.bf16.msra.mxu0 %v1462_v23  ;;  %1394 = vmatpush3.bf16.msra.mxu1 %v1463_v24 }
  0x2b   : > { %1375 = vmatprep.subr.bf16.mxu0 %v1506_v11  ;;  %1395 = vmatprep.subr.bf16.mxu1 %v1506_v11 }
  0x2e   : > { %1376 = vmatpush3.bf16.msra.mxu0 %v1464_v25  ;;  %1396 = vmatpush3.bf16.msra.mxu1 %v1465_v26 }
  0x2f   : > { %1401 = vmatprep.subr.bf16.mxu0 %v1506_v11 }
  0x9d   : > { %v405_v2 = vpop.xlane.xlu0 %404 }
  0x9e   : > { %v409_v3 = vmul.f32 0.0078125, %v405_v2 }
  0xa0   : > { %v1604_v4 = vsub.f32 %v400_v0, %v409_v3 }
  0xa1   : > { %v407_v5 = vpop.xlane.xlu0 %406 }
  0xa2   : > { %v410_v6 = vmul.f32 0.0078125, %v407_v5  ;;  %v413_v7 = vmul.f32 %v1604_v4, %v1604_v4 }
  0xa4   : > { %v1608_v8 = vsub.f32 %v401_v1, %v410_v6  ;;  %415 = vadd.xlane.f32.xlu1 %v413_v7 }
  0xa6   : > { %v414_v9 = vmul.f32 %v1608_v8, %v1608_v8 }
  0xa8   : > { %417 = vadd.xlane.f32.xlu1 %v414_v9 }
 0x12d   : > { %v416_v27 = vpop.xlane.xlu1 %415 }
 0x12e   : > { %v419_v28 = vmul.f32 0.0078125, %v416_v27 }
 0x130   : > { %1474 = vrsqrt.f32 %v419_v28  ;;  %vm423_vm1 = vcmp.eq.f32.partialorder %v419_v28, inf  ;;  %v426_v33 = vand.u32 2147483648, %v419_v28  ;;  %vm425_vm2 = vcmp.eq.f32.partialorder %v419_v28, 0.0 }
 0x131   : > { %v418_v29 = vpop.xlane.xlu1 %417 }
 0x132   : > { %v420_v30 = vmul.f32 0.0078125, %v418_v29 }
 0x134   : > { %1476 = vrsqrt.f32 %v420_v30  ;;  %vm430_vm3 = vcmp.eq.f32.partialorder %v420_v30, inf  ;;  %v433_v39 = vand.u32 2147483648, %v420_v30  ;;  %vm432_vm4 = vcmp.eq.f32.partialorder %v420_v30, 0.0 }
 0x13d   : > { %v1475_v31 = vpop.eup %1474 }
 0x13e   : > { %v422_v32 = vmul.f32 %v1475_v31, %v419_v28 }
 0x140   : > { %v424_v34 = vsel %vm423_vm1, %v419_v28, %v422_v32 }
 0x141   : > { %v1477_v35 = vpop.eup %1476  ;;  %v427_v36 = vsel %vm425_vm2, %v426_v33, %v424_v34 }
 0x142   : > { %v435_v37 = vadd.f32 1e-06, %v427_v36  ;;  %v429_v38 = vmul.f32 %v1477_v35, %v420_v30 }
 0x144   : > { %1478 = vrcp.f32 %v435_v37  ;;  %v431_v40 = vsel %vm430_vm3, %v420_v30, %v429_v38 }
 0x145   : > { %v434_v41 = vsel %vm432_vm4, %v433_v39, %v431_v40 }
 0x146   : > { %v436_v42 = vadd.f32 1e-06, %v434_v41 }
 0x148   : > { %1480 = vrcp.f32 %v436_v42 }
 0x151   : > { %v1479_v43 = vpop.eup %1478 }
 0x152   : > { %v441_v44 = vmul.f32 %v1479_v43, %v1604_v4 }
 0x154   : > { %v449_v48 = vmul.f32 %v1261_v45, %v441_v44 }
 0x155   : > { %v1481_v46 = vpop.eup %1480 }
 0x156   : > { %v442_v47 = vmul.f32 %v1481_v46, %v1608_v8  ;;  %v457_v51 = vadd.f32 %v1262_v49, %v449_v48 }
 0x158   : > { %v450_v50 = vmul.f32 %v1261_v45, %v442_v47 }
 0x15a   : > { %v458_v52 = vadd.f32 %v1262_v49, %v450_v50 }
 0x15c   : > { %v459_v54 = vpack.c.bf16 %v458_v52, %v457_v51 }
 0x15e   : > { %1378 = vmatmul.mubr.bf16.vlgmr.msra.gmra.mxu0 %v459_v54  ;;  %1398 = vmatmul.mubr.bf16.vlgmr.msra.gmra.mxu1 %v459_v54 }
 0x15f   : > { %1402 = vmatpush3.bf16.msra.mxu0 %v1466_v53  ;;  %1417 = vmatprep.mubr.msk.bf16.mxu0 %vm1507_vm0, %v1506_v11 }
 0x160   : > { %1403 = vmatprep.subr.bf16.mxu0 %v1506_v11 }
 0x163   : > { %1404 = vmatpush3.bf16.msra.mxu0 %v1467_v55 }
 0x164   : > { %1405 = vmatprep.subr.bf16.mxu0 %v1506_v11 }
 0x167   : > { %1406 = vmatpush3.bf16.msra.mxu0 %v1468_v56 }
 0x168   : > { %1407 = vmatprep.subr.bf16.mxu0 %v1506_v11 }
 0x16b   : > { %1408 = vmatpush3.bf16.msra.mxu0 %v1469_v57 }
 0x16c   : > { %1409 = vmatprep.subr.bf16.mxu0 %v1506_v11 }
 0x16f   : > { %1410 = vmatpush3.bf16.msra.mxu0 %v1470_v58 }
 0x170   : > { %1411 = vmatprep.subr.bf16.mxu0 %v1506_v11 }
 0x173   : > { %1412 = vmatpush3.bf16.msra.mxu0 %v1471_v59 }
 0x174   : > { %1413 = vmatprep.subr.bf16.mxu0 %v1506_v11 }
 0x177   : > { %1414 = vmatpush3.bf16.msra.mxu0 %v1472_v60 }
 0x178   : > { %1415 = vmatprep.subr.bf16.mxu0 %v1506_v11 }
 0x17b   : > { %1416 = vmatpush3.bf16.msra.mxu0 %v1473_v61 }
 0x17e   : > { %1418 = vmatmul.mubr.bf16.vlgmr.msra.gmra.mxu0 %v459_v54 }
 0x21e   : > { %v565_v0 = vpop.f32.mrf.mxu0  ;;  %v678_v1 = vpop.f32.mrf.mxu1 }
 0x21f   : > { %v566_v2 = vadd.f32 %v1263_v62, %v565_v0  ;;  %v679_v3 = vadd.f32 %v1272_v63, %v678_v1 }
 0x220   : > { %v1379_v4 = vpop.f32.mrf.mxu0  ;;  %v1399_v5 = vpop.f32.mrf.mxu1 }
 0x221   : > { %v1325_v6 = vpack.c.bf16 %v566_v2, %v566_v2  ;;  %v1327_v7 = vpack.c.bf16 %v679_v3, %v679_v3 }
 0x222   : > { %v568_v8 = vpop.f32.mrf.mxu0  ;;  %v681_v9 = vpop.f32.mrf.mxu1 }
 0x223   : > { %807 = vst.msk [vmem:[%s1732_s17] sm:$0xf] %vm806_vm5, %v1325_v6  ;;  %843 = vst.msk [vmem:[%s1737_s22] sm:$0xf] %vm806_vm5, %v1327_v7  ;;  %v569_v10 = vadd.f32 %v1263_v62, %v568_v8  ;;  %v682_v11 = vadd.f32 %v1272_v63, %v681_v9  ;;  %818 = vrot.lane.b32.xlu1 %v1325_v6, %s1508_s23  ;;  %809 = vrot.lane.b32.xlu0 %v1325_v6, %s1509_s26 }
 0x224   : > { %v1380_v12 = vpop.f32.mrf.mxu0  ;;  %v1400_v13 = vpop.f32.mrf.mxu1 }
 0x225   : > { %v1326_v14 = vpack.c.bf16 %v569_v10, %v569_v10  ;;  %v1328_v15 = vpack.c.bf16 %v682_v11, %v682_v11 }
 0x227   : > { %808 = vst.msk [vmem:[%s1732_s17 + $0x4] sm:$0xf] %vm806_vm5, %v1326_v14  ;;  %844 = vst.msk [vmem:[%s1737_s22 + $0x4] sm:$0xf] %vm806_vm5, %v1328_v15  ;;  %827 = vrot.lane.b32.xlu0 %v1325_v6, %s1510_s27  ;;  %811 = vrot.lane.b32.xlu1 %v1326_v14, %s1509_s26 }
 0x22b   : > { %845 = vrot.lane.b32.xlu0 %v1327_v7, %s1509_s26  ;;  %820 = vrot.lane.b32.xlu1 %v1326_v14, %s1508_s23 }
 0x22e   : > { %v942_v43 = vld [vmem:[%s1732_s17] sm:$0xff] (%p1596_p4)  }
 0x22f   : > { %854 = vrot.lane.b32.xlu0 %v1327_v7, %s1508_s23  ;;  %829 = vrot.lane.b32.xlu1 %v1326_v14, %s1510_s27  ;;  %943 = vst [vmem:[%s925_s15] sm:$0xff] (%p1596_p4), %v942_v43  }
 0x233   : > { %863 = vrot.lane.b32.xlu0 %v1327_v7, %s1510_s27  ;;  %847 = vrot.lane.b32.xlu1 %v1328_v15, %s1509_s26 }
 0x237   : > { %856 = vrot.lane.b32.xlu1 %v1328_v15, %s1508_s23 }
 0x23b   : > { %865 = vrot.lane.b32.xlu1 %v1328_v15, %s1510_s27 }
 0x23e   : > { %v791_v17 = vpop.f32.mrf.mxu0 }
 0x23f   : > { %v792_v18 = vadd.f32 %v1281_v16, %v791_v17 }
 0x240   : > { %v1419_v19 = vpop.f32.mrf.mxu0 }
 0x241   : > { %v1329_v20 = vpack.c.bf16 %v792_v18, %v792_v18 }
 0x242   : > { %v794_v21 = vpop.f32.mrf.mxu0 }
 0x243   : > { %879 = vst.msk [vmem:[%s1757_s30] sm:$0xf] %vm806_vm5, %v1329_v20  ;;  %v795_v22 = vadd.f32 %v1281_v16, %v794_v21  ;;  %881 = vrot.lane.b32.xlu0 %v1329_v20, %s1509_s26 }
 0x244   : > { %v1420_v23 = vpop.f32.mrf.mxu0 }
 0x245   : > { %v1330_v24 = vpack.c.bf16 %v795_v22, %v795_v22 }
 0x247   : > { %880 = vst.msk [vmem:[%s1757_s30 + $0x4] sm:$0xf] %vm806_vm5, %v1330_v24  ;;  %890 = vrot.lane.b32.xlu0 %v1329_v20, %s1508_s23  ;;  %883 = vrot.lane.b32.xlu1 %v1330_v24, %s1509_s26 }
 0x24b   : > { %899 = vrot.lane.b32.xlu0 %v1329_v20, %s1510_s27  ;;  %892 = vrot.lane.b32.xlu1 %v1330_v24, %s1508_s23 }
 0x24f   : > { %901 = vrot.lane.b32.xlu1 %v1330_v24, %s1510_s27 }
 0x295   : > { %v819_v25 = vpop.permute.xlu1 %818  ;;  %v810_v26 = vpop.permute.xlu0 %809 }
 0x296   : > { %1294 = vst.msk [vmem:[%s1732_s17 + $0x10] sm:$0xf] %vm806_vm5, %v819_v25  ;;  %1292 = vst.msk [vmem:[%s1732_s17 + $0x8] sm:$0xf] %vm806_vm5, %v810_v26 }
 0x299   : > { %v828_v27 = vpop.permute.xlu0 %827  ;;  %v812_v28 = vpop.permute.xlu1 %811 }
 0x29a   : > { %1296 = vst.msk [vmem:[%s1732_s17 + $0x18] sm:$0xf] %vm806_vm5, %v828_v27  ;;  %1293 = vst.msk [vmem:[%s1732_s17 + $0xc] sm:$0xf] %vm806_vm5, %v812_v28 }
 0x29d   : > { %v846_v29 = vpop.permute.xlu0 %845  ;;  %v821_v30 = vpop.permute.xlu1 %820 }
 0x29e   : > { %1300 = vst.msk [vmem:[%s1737_s22 + $0x8] sm:$0xf] %vm806_vm5, %v846_v29  ;;  %1295 = vst.msk [vmem:[%s1732_s17 + $0x14] sm:$0xf] %vm806_vm5, %v821_v30 }
 0x2a1   : > { %v855_v31 = vpop.permute.xlu0 %854  ;;  %v830_v32 = vpop.permute.xlu1 %829  ;;  %v946_v44 = vld [vmem:[%s1732_s17 + $0x8] sm:$0xff] (%p1596_p4)  }
 0x2a2   : > { %1302 = vst.msk [vmem:[%s1737_s22 + $0x10] sm:$0xf] %vm806_vm5, %v855_v31  ;;  %1297 = vst.msk [vmem:[%s1732_s17 + $0x1c] sm:$0xf] %vm806_vm5, %v830_v32 }
 0x2a3   : > { %947 = vst [vmem:[%s925_s15 + $0x10] sm:$0xff] (%p1596_p4), %v946_v44  }
 0x2a5   : > { %v864_v33 = vpop.permute.xlu0 %863  ;;  %v848_v34 = vpop.permute.xlu1 %847  ;;  %v950_v45 = vld [vmem:[%s1732_s17 + $0x10] sm:$0xff] (%p1596_p4)  }
 0x2a6   : > { %1304 = vst.msk [vmem:[%s1737_s22 + $0x18] sm:$0xf] %vm806_vm5, %v864_v33  ;;  %1301 = vst.msk [vmem:[%s1737_s22 + $0xc] sm:$0xf] %vm806_vm5, %v848_v34 }
 0x2a7   : > { %951 = vst [vmem:[%s925_s15 + $0x20] sm:$0xff] (%p1596_p4), %v950_v45  }
 0x2a9   : > { %v857_v35 = vpop.permute.xlu1 %856  ;;  %v954_v46 = vld [vmem:[%s1732_s17 + $0x18] sm:$0xff] (%p1596_p4)  }
 0x2aa   : > { %1303 = vst.msk [vmem:[%s1737_s22 + $0x14] sm:$0xf] %vm806_vm5, %v857_v35  ;;  %955 = vst [vmem:[%s925_s15 + $0x30] sm:$0xff] (%p1596_p4), %v954_v46  }
 0x2ad   : > { %v866_v36 = vpop.permute.xlu1 %865 }
 0x2ae   : > { %1305 = vst.msk [vmem:[%s1737_s22 + $0x1c] sm:$0xf] %vm806_vm5, %v866_v36 }
 0x2b5   : > { %v882_v37 = vpop.permute.xlu0 %881 }
 0x2b6   : > { %1308 = vst.msk [vmem:[%s1757_s30 + $0x8] sm:$0xf] %vm806_vm5, %v882_v37 }
 0x2b9   : > { %v891_v38 = vpop.permute.xlu0 %890  ;;  %v884_v39 = vpop.permute.xlu1 %883 }
 0x2ba   : > { %1310 = vst.msk [vmem:[%s1757_s30 + $0x10] sm:$0xf] %vm806_vm5, %v891_v38  ;;  %1309 = vst.msk [vmem:[%s1757_s30 + $0xc] sm:$0xf] %vm806_vm5, %v884_v39 }
 0x2bd   : > { %v900_v40 = vpop.permute.xlu0 %899  ;;  %v893_v41 = vpop.permute.xlu1 %892 }
 0x2be   : > { %1312 = vst.msk [vmem:[%s1757_s30 + $0x18] sm:$0xf] %vm806_vm5, %v900_v40  ;;  %1311 = vst.msk [vmem:[%s1757_s30 + $0x14] sm:$0xf] %vm806_vm5, %v893_v41  ;;  %922 = sbr.rel (!%p1596_p4) target bundleno = 707 (0x2c3), region = 60 }
 0x2c1   : > { %v902_v42 = vpop.permute.xlu1 %901 }
 0x2c2   : > { %1313 = vst.msk [vmem:[%s1757_s30 + $0x1c] sm:$0xf] %vm806_vm5, %v902_v42 }
 0x2c3 PF: > { %997 = sbr.rel (!%p1596_p4) target bundleno = 712 (0x2c8), region = 101  ;;  %s1332_s16 = sshll.u32 (%p1596_p4), %s1584_s20, 3  ;;  %v1017_v47 = vld [vmem:[%s1737_s22] sm:$0xff] (%p1596_p4)   ;;  %v1021_v48 = vld [vmem:[%s1737_s22 + $0x8] sm:$0xff] (%p1596_p4)   ;;  %v1025_v49 = vld [vmem:[%s1737_s22 + $0x10] sm:$0xff] (%p1596_p4)  }
 0x2c4   : > { %s1000_s17 = scalar_lea.vmem (%p1596_p4), %s1853_s10, %s1332_s16  ;;  %v1029_v50 = vld [vmem:[%s1737_s22 + $0x18] sm:$0xff] (%p1596_p4)  }
 0x2c5   : > { %1018 = vst [vmem:[%s1000_s17] sm:$0xff] (%p1596_p4), %v1017_v47   ;;  %1022 = vst [vmem:[%s1000_s17 + $0x10] sm:$0xff] (%p1596_p4), %v1021_v48  }
 0x2c6   : > { %1026 = vst [vmem:[%s1000_s17 + $0x20] sm:$0xff] (%p1596_p4), %v1025_v49   ;;  %1030 = vst [vmem:[%s1000_s17 + $0x30] sm:$0xff] (%p1596_p4), %v1029_v50  }
 0x2c8 PF: > { %1072 = sbr.rel (!%p1596_p4) target bundleno = 717 (0x2cd), region = 142  ;;  %s1333_s26 = sshll.u32 (%p1596_p4), %s1584_s20, 3  ;;  %v1092_v51 = vld [vmem:[%s1757_s30] sm:$0xff] (%p1596_p4)   ;;  %v1096_v52 = vld [vmem:[%s1757_s30 + $0x8] sm:$0xff] (%p1596_p4)   ;;  %v1100_v53 = vld [vmem:[%s1757_s30 + $0x10] sm:$0xff] (%p1596_p4)  }
 0x2c9   : > { %s1075_s22 = scalar_lea.vmem (%p1596_p4), %s1854_s11, %s1333_s26  ;;  %v1104_v54 = vld [vmem:[%s1757_s30 + $0x18] sm:$0xff] (%p1596_p4)  }
 0x2ca   : > { %1093 = vst [vmem:[%s1075_s22] sm:$0xff] (%p1596_p4), %v1092_v51   ;;  %1097 = vst [vmem:[%s1075_s22 + $0x10] sm:$0xff] (%p1596_p4), %v1096_v52  }
 0x2cb   : > { %1101 = vst [vmem:[%s1075_s22 + $0x20] sm:$0xff] (%p1596_p4), %v1100_v53   ;;  %1105 = vst [vmem:[%s1075_s22 + $0x30] sm:$0xff] (%p1596_p4), %v1104_v54  }
 0x2cd PF: > { %p19_p8 = scmp.ge.s32.totalorder %s1586_s21, 4   ;;  %s1856_s17 = smov %s1500_s18 }
 0x2ce   : > { %s1857_s18 = smov %s1594_s24  ;;  %s1858_s19 = smov %s1586_s21 }
 0x2cf   :  { %21 = sbr.rel (!%p19_p8) target bundleno = 2 (0x2), region = 242 }

</bundles_post_ra>
